<compile_context>
chip_gen: v7x
topology: tpu7x:2x2x1
jax: 0.10.0
libtpu: 0.0.40
codegen_flags: <defaults>
</compile_context>

<pallas_src>
import math

import jax
import jax.numpy as jnp
from jax import lax
from jax.experimental import pallas as pl
from jax.experimental.pallas import tpu as pltpu


# Gate order inside the packed 4*Hp column blocks: sigmoid gates first
# (input, forget, output), tanh "cell" gate last.  PyTorch order is i,f,g,o.
_GATE_ORDER = (0, 1, 3, 2)   # dst block k holds PyTorch gate _GATE_ORDER[k]


# ----------------------------------------------------------------------------
# Fused kernel: num_layers LSTM layers + PCA head, single launch.
# ----------------------------------------------------------------------------
def _make_fused_kernel(num_layers):
    def kernel(*args):
        x2d_ref = args[0]                              # (S*Bp, E)
        layer_refs = args[1:1 + 3 * num_layers]        # (wih_T, whh_T, b) per layer
        (uf_ref, w4_ref, bout_ref,                     # (Bp,4), (Hp,4), (1,1)
         out_ref, gx_ref, seq_ref) = args[1 + 3 * num_layers:]

        SB = x2d_ref.shape[0]
        Bp = uf_ref.shape[0]
        S = SB // Bp
        Hp = seq_ref.shape[1]

        def lstm_cell(gates_x, h, c, whh):
            # gates_x already contains x_t @ W_ih^T + b (hoisted projection).
            g = gates_x + jnp.dot(h, whh, preferred_element_type=jnp.float32)
            # Packed gate order [i, f, o, g]: one contiguous sigmoid pass.
            sig = jax.nn.sigmoid(g[:, 0:3 * Hp])
            i_g = sig[:, 0 * Hp:1 * Hp]
            f_g = sig[:, 1 * Hp:2 * Hp]
            o_g = sig[:, 2 * Hp:3 * Hp]
            g_g = jnp.tanh(g[:, 3 * Hp:4 * Hp])
            c_new = f_g * c + i_g * g_g
            h_new = o_g * jnp.tanh(c_new)
            return h_new, c_new

        zeros = jnp.zeros((Bp, Hp), jnp.float32)
        h_last = zeros

        for layer in range(num_layers):
            wih_ref = layer_refs[3 * layer + 0]        # (K, 4*Hp)
            whh_ref = layer_refs[3 * layer + 1]        # (Hp, 4*Hp)
            b_ref = layer_refs[3 * layer + 2]          # (1, 4*Hp)

            src_ref = x2d_ref if layer == 0 else seq_ref
            # Hoisted input projection: ONE (S*Bp, K) @ (K, 4*Hp) matmul
            # amortizes the MXU weight push over all S timesteps.
            gx_ref[...] = (jnp.dot(src_ref[...], wih_ref[...],
                                   preferred_element_type=jnp.float32)
                           + b_ref[...])

            whh = whh_ref[...]                         # hoisted: loaded once per layer
            write_seq = layer < num_layers - 1         # last layer only needs h_T

            def step(t, carry, whh=whh, write_seq=write_seq):
                h, c = carry
                row = pl.multiple_of(t * Bp, Bp)
                gates_x = gx_ref[pl.ds(row, Bp), :]
                h_new, c_new = lstm_cell(gates_x, h, c, whh)
                if write_seq:
                    seq_ref[pl.ds(row, Bp), :] = h_new
                return (h_new, c_new)

            h_last, _ = lax.fori_loop(0, S, step, (zeros, zeros), unroll=True)

        # PCA head: feature = [h, h*u0, h*u1, h*u2] @ W_out^T + b
        #         = sum_k uf[:,k] * (h @ W_k^T) + b, with uf[:,0] == 1.
        p = jnp.dot(h_last, w4_ref[...], preferred_element_type=jnp.float32)
        rating = jnp.sum(uf_ref[...] * p, axis=1, keepdims=True) + bout_ref[...]
        out_ref[...] = rating

    return kernel


# ----------------------------------------------------------------------------
# Host-side weight packing (done once, outside the per-batch forward).
# ----------------------------------------------------------------------------
def _pad_gate_cols(w_t, H, Hp):
    """(K, 4H) PyTorch [i,f,g,o] -> (K, 4Hp) packed [i,f,o,g], 128-lane aligned."""
    K = w_t.shape[0]
    out = jnp.zeros((K, 4 * Hp), w_t.dtype)
    for dst, src in enumerate(_GATE_ORDER):
        out = out.at[:, dst * Hp:dst * Hp + H].set(w_t[:, src * H:(src + 1) * H])
    return out


def _pad_rows(w, Kp):
    out = jnp.zeros((Kp,) + w.shape[1:], w.dtype)
    return out.at[:w.shape[0]].set(w)


def pack_params(params):
    """Pre-transpose / pad all weights to MXU-native, lane-aligned layout."""
    H = params["lstm_layers"][0][1].shape[1]
    Hp = -(-H // 128) * 128                       # pad each gate to >=128 lanes
    layers = []
    for layer, (w_ih, w_hh, b) in enumerate(params["lstm_layers"]):
        wih_t = _pad_gate_cols(w_ih.T, H, Hp)     # (d_in, 4Hp)
        if layer > 0:
            wih_t = _pad_rows(wih_t, Hp)          # (Hp, 4Hp): rows follow padded h
        whh_t = _pad_rows(_pad_gate_cols(w_hh.T, H, Hp), Hp)   # (Hp, 4Hp)
        b_p = _pad_gate_cols(b, H, Hp)            # (1, 4Hp)
        layers.append((wih_t, whh_t, b_p))
    # Head: Linear(4H -> 1) over [h, h*u0, h*u1, h*u2]  ->  (Hp, 4) block form.
    w4 = _pad_rows(params["w_out"].reshape(4, H).T, Hp)        # (Hp, 4)
    return {"layers": layers, "w4": w4, "b_out": params["b_out"],
            "H": H, "Hp": Hp}


# ----------------------------------------------------------------------------
# Forward wrapper
# ----------------------------------------------------------------------------
def my_lstm_forward(x, user_factors, packed):
    """x: (S, B, E), user_factors: (B, 3) -> rating (B, 1)."""
    S, B, E = x.shape
    Hp = packed["Hp"]
    Bp = -(-B // 8) * 8                            # pad batch to a sublane multiple
    num_layers = len(packed["layers"])

    xp = jnp.zeros((S, Bp, E), jnp.float32).at[:, :B, :].set(x)
    x2d = xp.reshape(S * Bp, E)                    # timestep-major rows

    uf = jnp.concatenate([jnp.ones((B, 1), jnp.float32),
                          user_factors.astype(jnp.float32)], axis=1)   # (B, 4)
    uf = jnp.zeros((Bp, 4), jnp.float32).at[:B].set(uf)

    flat_w = [w for triple in packed["layers"] for w in triple]
    operands = [x2d, *flat_w, uf, packed["w4"], packed["b_out"]]
    in_specs = [pl.BlockSpec(a.shape, lambda i: (0, 0)) for a in operands]

    out = pl.pallas_call(
        _make_fused_kernel(num_layers),
        out_shape=jax.ShapeDtypeStruct((Bp, 1), jnp.float32),
        grid_spec=pltpu.PrefetchScalarGridSpec(
            num_scalar_prefetch=0,
            grid=(1,),
            in_specs=in_specs,
            out_specs=pl.BlockSpec((Bp, 1), lambda i: (0, 0)),
            scratch_shapes=[
                pltpu.VMEM((S * Bp, 4 * Hp), jnp.float32),   # gate pre-activations
                pltpu.VMEM((S * Bp, Hp), jnp.float32),       # inter-layer h sequence
            ],
        ),
        compiler_params=pltpu.CompilerParams(
            dimension_semantics=("arbitrary",)),
    )(*operands)
    return out[:B]


# ----------------------------------------------------------------------------
# Parameter init (PyTorch nn.LSTM / nn.Linear default layout + init)
# ----------------------------------------------------------------------------
def init_params(key, embedding_dim, hidden_dim, num_layers):
    bound = 1.0 / math.sqrt(hidden_dim)
    layers = []
    for layer in range(num_layers):
        d_in = embedding_dim if layer == 0 else hidden_dim
        key, k1, k2, k3, k4 = jax.random.split(key, 5)
        w_ih = jax.random.uniform(k1, (4 * hidden_dim, d_in),
                                  jnp.float32, -bound, bound)
        w_hh = jax.random.uniform(k2, (4 * hidden_dim, hidden_dim),
                                  jnp.float32, -bound, bound)
        b_ih = jax.random.uniform(k3, (4 * hidden_dim,), jnp.float32,
                                  -bound, bound)
        b_hh = jax.random.uniform(k4, (4 * hidden_dim,), jnp.float32,
                                  -bound, bound)
        layers.append((w_ih, w_hh, (b_ih + b_hh).reshape(1, 4 * hidden_dim)))
    key, k5, k6 = jax.random.split(key, 3)
    bound_lin = 1.0 / math.sqrt(4 * hidden_dim)
    w_out = jax.random.uniform(k5, (1, 4 * hidden_dim), jnp.float32,
                               -bound_lin, bound_lin)
    b_out = jax.random.uniform(k6, (1, 1), jnp.float32, -bound_lin, bound_lin)
    return {"lstm_layers": layers, "w_out": w_out, "b_out": b_out}


# ----------------------------------------------------------------------------
# Pure-JAX reference (unpadded, PyTorch gate order) for the sanity check
# ----------------------------------------------------------------------------
def reference_forward(x, user_factors, params):
    S, B, _ = x.shape
    H = params["lstm_layers"][0][1].shape[1]
    out = x
    # TODO(synk): inter-layer dropout is train-only in nn.LSTM; inference path omits it.
    for (w_ih, w_hh, b) in params["lstm_layers"]:
        h = jnp.zeros((B, H), jnp.float32)
        c = jnp.zeros((B, H), jnp.float32)
        hs = []
        for t in range(S):
            gates = out[t] @ w_ih.T + h @ w_hh.T + b
            i_g = jax.nn.sigmoid(gates[:, 0 * H:1 * H])
            f_g = jax.nn.sigmoid(gates[:, 1 * H:2 * H])
            g_g = jnp.tanh(gates[:, 2 * H:3 * H])
            o_g = jax.nn.sigmoid(gates[:, 3 * H:4 * H])
            c = f_g * c + i_g * g_g
            h = o_g * jnp.tanh(c)
            hs.append(h)
        out = jnp.stack(hs)
    res = out[-1]
    feat = jnp.concatenate(
        [res, res * user_factors[:, 0:1], res * user_factors[:, 1:2],
         res * user_factors[:, 2:3]], axis=1)
    return feat @ params["w_out"].T + params["b_out"]


if __name__ == "__main__":
    # TODO(synk): the ids/train_csv/test_csv/userID_PCADict string lookup is
    # host-side glue; it is modeled by a dense (batch, 3) user_factors input.
    embedding_dim, hidden_dim, num_layers = 16, 32, 2
    seq_len, batch = 8, 4

    key = jax.random.PRNGKey(0)
    k_x, k_uf, k_p = jax.random.split(key, 3)

    x = jax.random.normal(k_x, (seq_len, batch, embedding_dim), jnp.float32)
    user_factors = jax.random.uniform(k_uf, (batch, 3), jnp.float32, 0.5, 1.5)
    params = init_params(k_p, embedding_dim, hidden_dim, num_layers)
    packed = pack_params(params)          # one-time host-side transpose/pad

    rating = my_lstm_forward(x, user_factors, packed)
    rating = jax.block_until_ready(rating)

    ref = reference_forward(x, user_factors, params)
    assert rating.shape == (batch, 1)
    assert jnp.allclose(rating, ref, atol=1e-3, rtol=1e-3), (rating, ref)

    print("KERNEL_OK")
</pallas_src>

<mosaic_0001>
module attributes {stable_mosaic.version = 11 : i64} {
  func.func @kernel(%arg0: i32, %arg1: memref<64x16xf32, #tpu.memory_space<vmem>>, %arg2: memref<16x512xf32, #tpu.memory_space<vmem>>, %arg3: memref<128x512xf32, #tpu.memory_space<vmem>>, %arg4: memref<1x512xf32, #tpu.memory_space<vmem>>, %arg5: memref<128x512xf32, #tpu.memory_space<vmem>>, %arg6: memref<128x512xf32, #tpu.memory_space<vmem>>, %arg7: memref<1x512xf32, #tpu.memory_space<vmem>>, %arg8: memref<8x4xf32, #tpu.memory_space<vmem>>, %arg9: memref<128x4xf32, #tpu.memory_space<vmem>>, %arg10: memref<1x1xf32, #tpu.memory_space<vmem>>, %arg11: memref<8x1xf32, #tpu.memory_space<vmem>>, %arg12: memref<64x512xf32, #tpu.memory_space<vmem>>, %arg13: memref<64x128xf32, #tpu.memory_space<vmem>>) attributes {dimension_semantics = [#tpu.dimension_semantics<arbitrary>], iteration_bounds = array<i64: 1>, scalar_prefetch = 0 : i64, scratch_operands = 2 : i64, tpu.core_type = #tpu.core_type<tc>, window_params = [{pipeline_mode = #tpu.pipeline_mode<synchronous>, transform_indices = @transform_0, window_bounds = array<i64: 64, 16>}, {pipeline_mode = #tpu.pipeline_mode<synchronous>, transform_indices = @transform_1, window_bounds = array<i64: 16, 512>}, {pipeline_mode = #tpu.pipeline_mode<synchronous>, transform_indices = @transform_2, window_bounds = array<i64: 128, 512>}, {pipeline_mode = #tpu.pipeline_mode<synchronous>, transform_indices = @transform_3, window_bounds = array<i64: 1, 512>}, {pipeline_mode = #tpu.pipeline_mode<synchronous>, transform_indices = @transform_4, window_bounds = array<i64: 128, 512>}, {pipeline_mode = #tpu.pipeline_mode<synchronous>, transform_indices = @transform_5, window_bounds = array<i64: 128, 512>}, {pipeline_mode = #tpu.pipeline_mode<synchronous>, transform_indices = @transform_6, window_bounds = array<i64: 1, 512>}, {pipeline_mode = #tpu.pipeline_mode<synchronous>, transform_indices = @transform_7, window_bounds = array<i64: 8, 4>}, {pipeline_mode = #tpu.pipeline_mode<synchronous>, transform_indices = @transform_8, window_bounds = array<i64: 128, 4>}, {pipeline_mode = #tpu.pipeline_mode<synchronous>, transform_indices = @transform_9, window_bounds = array<i64: 1, 1>}, {pipeline_mode = #tpu.pipeline_mode<synchronous>, transform_indices = @transform_10, window_bounds = array<i64: 8, 1>}]} {
    %cst = arith.constant 0.000000e+00 : f32
    %0 = vector.broadcast %cst : f32 to vector<8x128xf32>
    %c0 = arith.constant 0 : index
    %c0_0 = arith.constant 0 : index
    %1 = vector.load %arg1[%c0, %c0_0] : memref<64x16xf32, #tpu.memory_space<vmem>>, vector<64x16xf32>
    %c0_1 = arith.constant 0 : index
    %c0_2 = arith.constant 0 : index
    %2 = vector.load %arg2[%c0_1, %c0_2] : memref<16x512xf32, #tpu.memory_space<vmem>>, vector<16x512xf32>
    %cst_3 = arith.constant dense<0.000000e+00> : vector<64x512xf32>
    %3 = tpu.matmul %1, %2, %cst_3 {dimension_numbers = #tpu.dot_dimension_numbers<[1], [0], [0], [1], [0, 0, 1, 1], [], []>} : vector<64x16xf32>, vector<16x512xf32>, vector<64x512xf32> -> vector<64x512xf32>
    %c0_4 = arith.constant 0 : index
    %c0_5 = arith.constant 0 : index
    %4 = vector.load %arg4[%c0_4, %c0_5] : memref<1x512xf32, #tpu.memory_space<vmem>>, vector<1x512xf32>
    %5 = vector.broadcast %4 : vector<1x512xf32> to vector<64x512xf32>
    %6 = arith.addf %3, %5 : vector<64x512xf32>
    %c0_6 = arith.constant 0 : index
    %c0_7 = arith.constant 0 : index
    %7 = vector.load %arg12[%c0_6, %c0_7] : memref<64x512xf32, #tpu.memory_space<vmem>>, vector<64x512xf32>
    tpu.vector_store %arg12[%c0_6, %c0_7], %6 {strides = array<i32>} : memref<64x512xf32, #tpu.memory_space<vmem>>, vector<64x512xf32>,
    %c0_8 = arith.constant 0 : index
    %c0_9 = arith.constant 0 : index
    %8 = vector.load %arg3[%c0_8, %c0_9] : memref<128x512xf32, #tpu.memory_space<vmem>>, vector<128x512xf32>
    %c0_i32 = arith.constant 0 : i32
    %c8_i32 = arith.constant 8 : i32
    %9 = arith.muli %c0_i32, %c8_i32 : i32
    %10 = tpu.assume_multiple %9, 8 : i32
    %11 = arith.index_cast %10 : i32 to index
    %c0_10 = arith.constant 0 : index
    %12 = vector.load %arg12[%11, %c0_10] : memref<64x512xf32, #tpu.memory_space<vmem>>, vector<8x512xf32>
    %cst_11 = arith.constant dense<0.000000e+00> : vector<8x512xf32>
    %13 = tpu.matmul %0, %8, %cst_11 {dimension_numbers = #tpu.dot_dimension_numbers<[1], [0], [0], [1], [0, 0, 1, 1], [], []>} : vector<8x128xf32>, vector<128x512xf32>, vector<8x512xf32> -> vector<8x512xf32>
    %14 = arith.addf %12, %13 : vector<8x512xf32>
    %15 = vector.extract_strided_slice %14 {offsets = [0, 0], sizes = [8, 384], strides = [1, 1]} : vector<8x512xf32> to vector<8x384xf32>
    %16 = arith.negf %15 : vector<8x384xf32>
    %17 = math.exp %16 : vector<8x384xf32>
    %cst_12 = arith.constant 1.000000e+00 : f32
    %18 = vector.broadcast %cst_12 : f32 to vector<8x384xf32>
    %19 = arith.addf %18, %17 : vector<8x384xf32>
    %20 = arith.divf %18, %19 : vector<8x384xf32>
    %21 = vector.extract_strided_slice %20 {offsets = [0, 0], sizes = [8, 128], strides = [1, 1]} : vector<8x384xf32> to vector<8x128xf32>
    %22 = vector.extract_strided_slice %20 {offsets = [0, 128], sizes = [8, 128], strides = [1, 1]} : vector<8x384xf32> to vector<8x128xf32>
    %23 = vector.extract_strided_slice %20 {offsets = [0, 256], sizes = [8, 128], strides = [1, 1]} : vector<8x384xf32> to vector<8x128xf32>
    %24 = vector.extract_strided_slice %14 {offsets = [0, 384], sizes = [8, 128], strides = [1, 1]} : vector<8x512xf32> to vector<8x128xf32>
    %25 = math.tanh %24 : vector<8x128xf32>
    %26 = arith.mulf %22, %0 : vector<8x128xf32>
    %27 = arith.mulf %21, %25 : vector<8x128xf32>
    %28 = arith.addf %26, %27 : vector<8x128xf32>
    %29 = math.tanh %28 : vector<8x128xf32>
    %30 = arith.mulf %23, %29 : vector<8x128xf32>
    %31 = arith.index_cast %10 : i32 to index
    %c0_13 = arith.constant 0 : index
    %32 = vector.load %arg13[%31, %c0_13] : memref<64x128xf32, #tpu.memory_space<vmem>>, vector<8x128xf32>
    tpu.vector_store %arg13[%31, %c0_13], %30 {strides = array<i32>} : memref<64x128xf32, #tpu.memory_space<vmem>>, vector<8x128xf32>,
    %c1_i32 = arith.constant 1 : i32
    %c8_i32_14 = arith.constant 8 : i32
    %33 = arith.muli %c1_i32, %c8_i32_14 : i32
    %34 = tpu.assume_multiple %33, 8 : i32
    %35 = arith.index_cast %34 : i32 to index
    %c0_15 = arith.constant 0 : index
    %36 = vector.load %arg12[%35, %c0_15] : memref<64x512xf32, #tpu.memory_space<vmem>>, vector<8x512xf32>
    %cst_16 = arith.constant dense<0.000000e+00> : vector<8x512xf32>
    %37 = tpu.matmul %30, %8, %cst_16 {dimension_numbers = #tpu.dot_dimension_numbers<[1], [0], [0], [1], [0, 0, 1, 1], [], []>} : vector<8x128xf32>, vector<128x512xf32>, vector<8x512xf32> -> vector<8x512xf32>
    %38 = arith.addf %36, %37 : vector<8x512xf32>
    %39 = vector.extract_strided_slice %38 {offsets = [0, 0], sizes = [8, 384], strides = [1, 1]} : vector<8x512xf32> to vector<8x384xf32>
    %40 = arith.negf %39 : vector<8x384xf32>
    %41 = math.exp %40 : vector<8x384xf32>
    %cst_17 = arith.constant 1.000000e+00 : f32
    %42 = vector.broadcast %cst_17 : f32 to vector<8x384xf32>
    %43 = arith.addf %42, %41 : vector<8x384xf32>
    %44 = arith.divf %42, %43 : vector<8x384xf32>
    %45 = vector.extract_strided_slice %44 {offsets = [0, 0], sizes = [8, 128], strides = [1, 1]} : vector<8x384xf32> to vector<8x128xf32>
    %46 = vector.extract_strided_slice %44 {offsets = [0, 128], sizes = [8, 128], strides = [1, 1]} : vector<8x384xf32> to vector<8x128xf32>
    %47 = vector.extract_strided_slice %44 {offsets = [0, 256], sizes = [8, 128], strides = [1, 1]} : vector<8x384xf32> to vector<8x128xf32>
    %48 = vector.extract_strided_slice %38 {offsets = [0, 384], sizes = [8, 128], strides = [1, 1]} : vector<8x512xf32> to vector<8x128xf32>
    %49 = math.tanh %48 : vector<8x128xf32>
    %50 = arith.mulf %46, %28 : vector<8x128xf32>
    %51 = arith.mulf %45, %49 : vector<8x128xf32>
    %52 = arith.addf %50, %51 : vector<8x128xf32>
    %53 = math.tanh %52 : vector<8x128xf32>
    %54 = arith.mulf %47, %53 : vector<8x128xf32>
    %55 = arith.index_cast %34 : i32 to index
    %c0_18 = arith.constant 0 : index
    %56 = vector.load %arg13[%55, %c0_18] : memref<64x128xf32, #tpu.memory_space<vmem>>, vector<8x128xf32>
    tpu.vector_store %arg13[%55, %c0_18], %54 {strides = array<i32>} : memref<64x128xf32, #tpu.memory_space<vmem>>, vector<8x128xf32>,
    %c2_i32 = arith.constant 2 : i32
    %c8_i32_19 = arith.constant 8 : i32
    %57 = arith.muli %c2_i32, %c8_i32_19 : i32
    %58 = tpu.assume_multiple %57, 8 : i32
    %59 = arith.index_cast %58 : i32 to index
    %c0_20 = arith.constant 0 : index
    %60 = vector.load %arg12[%59, %c0_20] : memref<64x512xf32, #tpu.memory_space<vmem>>, vector<8x512xf32>
    %cst_21 = arith.constant dense<0.000000e+00> : vector<8x512xf32>
    %61 = tpu.matmul %54, %8, %cst_21 {dimension_numbers = #tpu.dot_dimension_numbers<[1], [0], [0], [1], [0, 0, 1, 1], [], []>} : vector<8x128xf32>, vector<128x512xf32>, vector<8x512xf32> -> vector<8x512xf32>
    %62 = arith.addf %60, %61 : vector<8x512xf32>
    %63 = vector.extract_strided_slice %62 {offsets = [0, 0], sizes = [8, 384], strides = [1, 1]} : vector<8x512xf32> to vector<8x384xf32>
    %64 = arith.negf %63 : vector<8x384xf32>
    %65 = math.exp %64 : vector<8x384xf32>
    %cst_22 = arith.constant 1.000000e+00 : f32
    %66 = vector.broadcast %cst_22 : f32 to vector<8x384xf32>
    %67 = arith.addf %66, %65 : vector<8x384xf32>
    %68 = arith.divf %66, %67 : vector<8x384xf32>
    %69 = vector.extract_strided_slice %68 {offsets = [0, 0], sizes = [8, 128], strides = [1, 1]} : vector<8x384xf32> to vector<8x128xf32>
    %70 = vector.extract_strided_slice %68 {offsets = [0, 128], sizes = [8, 128], strides = [1, 1]} : vector<8x384xf32> to vector<8x128xf32>
    %71 = vector.extract_strided_slice %68 {offsets = [0, 256], sizes = [8, 128], strides = [1, 1]} : vector<8x384xf32> to vector<8x128xf32>
    %72 = vector.extract_strided_slice %62 {offsets = [0, 384], sizes = [8, 128], strides = [1, 1]} : vector<8x512xf32> to vector<8x128xf32>
    %73 = math.tanh %72 : vector<8x128xf32>
    %74 = arith.mulf %70, %52 : vector<8x128xf32>
    %75 = arith.mulf %69, %73 : vector<8x128xf32>
    %76 = arith.addf %74, %75 : vector<8x128xf32>
    %77 = math.tanh %76 : vector<8x128xf32>
    %78 = arith.mulf %71, %77 : vector<8x128xf32>
    %79 = arith.index_cast %58 : i32 to index
    %c0_23 = arith.constant 0 : index
    %80 = vector.load %arg13[%79, %c0_23] : memref<64x128xf32, #tpu.memory_space<vmem>>, vector<8x128xf32>
    tpu.vector_store %arg13[%79, %c0_23], %78 {strides = array<i32>} : memref<64x128xf32, #tpu.memory_space<vmem>>, vector<8x128xf32>,
    %c3_i32 = arith.constant 3 : i32
    %c8_i32_24 = arith.constant 8 : i32
    %81 = arith.muli %c3_i32, %c8_i32_24 : i32
    %82 = tpu.assume_multiple %81, 8 : i32
    %83 = arith.index_cast %82 : i32 to index
    %c0_25 = arith.constant 0 : index
    %84 = vector.load %arg12[%83, %c0_25] : memref<64x512xf32, #tpu.memory_space<vmem>>, vector<8x512xf32>
    %cst_26 = arith.constant dense<0.000000e+00> : vector<8x512xf32>
    %85 = tpu.matmul %78, %8, %cst_26 {dimension_numbers = #tpu.dot_dimension_numbers<[1], [0], [0], [1], [0, 0, 1, 1], [], []>} : vector<8x128xf32>, vector<128x512xf32>, vector<8x512xf32> -> vector<8x512xf32>
    %86 = arith.addf %84, %85 : vector<8x512xf32>
    %87 = vector.extract_strided_slice %86 {offsets = [0, 0], sizes = [8, 384], strides = [1, 1]} : vector<8x512xf32> to vector<8x384xf32>
    %88 = arith.negf %87 : vector<8x384xf32>
    %89 = math.exp %88 : vector<8x384xf32>
    %cst_27 = arith.constant 1.000000e+00 : f32
    %90 = vector.broadcast %cst_27 : f32 to vector<8x384xf32>
    %91 = arith.addf %90, %89 : vector<8x384xf32>
    %92 = arith.divf %90, %91 : vector<8x384xf32>
    %93 = vector.extract_strided_slice %92 {offsets = [0, 0], sizes = [8, 128], strides = [1, 1]} : vector<8x384xf32> to vector<8x128xf32>
    %94 = vector.extract_strided_slice %92 {offsets = [0, 128], sizes = [8, 128], strides = [1, 1]} : vector<8x384xf32> to vector<8x128xf32>
    %95 = vector.extract_strided_slice %92 {offsets = [0, 256], sizes = [8, 128], strides = [1, 1]} : vector<8x384xf32> to vector<8x128xf32>
    %96 = vector.extract_strided_slice %86 {offsets = [0, 384], sizes = [8, 128], strides = [1, 1]} : vector<8x512xf32> to vector<8x128xf32>
    %97 = math.tanh %96 : vector<8x128xf32>
    %98 = arith.mulf %94, %76 : vector<8x128xf32>
    %99 = arith.mulf %93, %97 : vector<8x128xf32>
    %100 = arith.addf %98, %99 : vector<8x128xf32>
    %101 = math.tanh %100 : vector<8x128xf32>
    %102 = arith.mulf %95, %101 : vector<8x128xf32>
    %103 = arith.index_cast %82 : i32 to index
    %c0_28 = arith.constant 0 : index
    %104 = vector.load %arg13[%103, %c0_28] : memref<64x128xf32, #tpu.memory_space<vmem>>, vector<8x128xf32>
    tpu.vector_store %arg13[%103, %c0_28], %102 {strides = array<i32>} : memref<64x128xf32, #tpu.memory_space<vmem>>, vector<8x128xf32>,
    %c4_i32 = arith.constant 4 : i32
    %c8_i32_29 = arith.constant 8 : i32
    %105 = arith.muli %c4_i32, %c8_i32_29 : i32
    %106 = tpu.assume_multiple %105, 8 : i32
    %107 = arith.index_cast %106 : i32 to index
    %c0_30 = arith.constant 0 : index
    %108 = vector.load %arg12[%107, %c0_30] : memref<64x512xf32, #tpu.memory_space<vmem>>, vector<8x512xf32>
    %cst_31 = arith.constant dense<0.000000e+00> : vector<8x512xf32>
    %109 = tpu.matmul %102, %8, %cst_31 {dimension_numbers = #tpu.dot_dimension_numbers<[1], [0], [0], [1], [0, 0, 1, 1], [], []>} : vector<8x128xf32>, vector<128x512xf32>, vector<8x512xf32> -> vector<8x512xf32>
    %110 = arith.addf %108, %109 : vector<8x512xf32>
    %111 = vector.extract_strided_slice %110 {offsets = [0, 0], sizes = [8, 384], strides = [1, 1]} : vector<8x512xf32> to vector<8x384xf32>
    %112 = arith.negf %111 : vector<8x384xf32>
    %113 = math.exp %112 : vector<8x384xf32>
    %cst_32 = arith.constant 1.000000e+00 : f32
    %114 = vector.broadcast %cst_32 : f32 to vector<8x384xf32>
    %115 = arith.addf %114, %113 : vector<8x384xf32>
    %116 = arith.divf %114, %115 : vector<8x384xf32>
    %117 = vector.extract_strided_slice %116 {offsets = [0, 0], sizes = [8, 128], strides = [1, 1]} : vector<8x384xf32> to vector<8x128xf32>
    %118 = vector.extract_strided_slice %116 {offsets = [0, 128], sizes = [8, 128], strides = [1, 1]} : vector<8x384xf32> to vector<8x128xf32>
    %119 = vector.extract_strided_slice %116 {offsets = [0, 256], sizes = [8, 128], strides = [1, 1]} : vector<8x384xf32> to vector<8x128xf32>
    %120 = vector.extract_strided_slice %110 {offsets = [0, 384], sizes = [8, 128], strides = [1, 1]} : vector<8x512xf32> to vector<8x128xf32>
    %121 = math.tanh %120 : vector<8x128xf32>
    %122 = arith.mulf %118, %100 : vector<8x128xf32>
    %123 = arith.mulf %117, %121 : vector<8x128xf32>
    %124 = arith.addf %122, %123 : vector<8x128xf32>
    %125 = math.tanh %124 : vector<8x128xf32>
    %126 = arith.mulf %119, %125 : vector<8x128xf32>
    %127 = arith.index_cast %106 : i32 to index
    %c0_33 = arith.constant 0 : index
    %128 = vector.load %arg13[%127, %c0_33] : memref<64x128xf32, #tpu.memory_space<vmem>>, vector<8x128xf32>
    tpu.vector_store %arg13[%127, %c0_33], %126 {strides = array<i32>} : memref<64x128xf32, #tpu.memory_space<vmem>>, vector<8x128xf32>,
    %c5_i32 = arith.constant 5 : i32
    %c8_i32_34 = arith.constant 8 : i32
    %129 = arith.muli %c5_i32, %c8_i32_34 : i32
    %130 = tpu.assume_multiple %129, 8 : i32
    %131 = arith.index_cast %130 : i32 to index
    %c0_35 = arith.constant 0 : index
    %132 = vector.load %arg12[%131, %c0_35] : memref<64x512xf32, #tpu.memory_space<vmem>>, vector<8x512xf32>
    %cst_36 = arith.constant dense<0.000000e+00> : vector<8x512xf32>
    %133 = tpu.matmul %126, %8, %cst_36 {dimension_numbers = #tpu.dot_dimension_numbers<[1], [0], [0], [1], [0, 0, 1, 1], [], []>} : vector<8x128xf32>, vector<128x512xf32>, vector<8x512xf32> -> vector<8x512xf32>
    %134 = arith.addf %132, %133 : vector<8x512xf32>
    %135 = vector.extract_strided_slice %134 {offsets = [0, 0], sizes = [8, 384], strides = [1, 1]} : vector<8x512xf32> to vector<8x384xf32>
    %136 = arith.negf %135 : vector<8x384xf32>
    %137 = math.exp %136 : vector<8x384xf32>
    %cst_37 = arith.constant 1.000000e+00 : f32
    %138 = vector.broadcast %cst_37 : f32 to vector<8x384xf32>
    %139 = arith.addf %138, %137 : vector<8x384xf32>
    %140 = arith.divf %138, %139 : vector<8x384xf32>
    %141 = vector.extract_strided_slice %140 {offsets = [0, 0], sizes = [8, 128], strides = [1, 1]} : vector<8x384xf32> to vector<8x128xf32>
    %142 = vector.extract_strided_slice %140 {offsets = [0, 128], sizes = [8, 128], strides = [1, 1]} : vector<8x384xf32> to vector<8x128xf32>
    %143 = vector.extract_strided_slice %140 {offsets = [0, 256], sizes = [8, 128], strides = [1, 1]} : vector<8x384xf32> to vector<8x128xf32>
    %144 = vector.extract_strided_slice %134 {offsets = [0, 384], sizes = [8, 128], strides = [1, 1]} : vector<8x512xf32> to vector<8x128xf32>
    %145 = math.tanh %144 : vector<8x128xf32>
    %146 = arith.mulf %142, %124 : vector<8x128xf32>
    %147 = arith.mulf %141, %145 : vector<8x128xf32>
    %148 = arith.addf %146, %147 : vector<8x128xf32>
    %149 = math.tanh %148 : vector<8x128xf32>
    %150 = arith.mulf %143, %149 : vector<8x128xf32>
    %151 = arith.index_cast %130 : i32 to index
    %c0_38 = arith.constant 0 : index
    %152 = vector.load %arg13[%151, %c0_38] : memref<64x128xf32, #tpu.memory_space<vmem>>, vector<8x128xf32>
    tpu.vector_store %arg13[%151, %c0_38], %150 {strides = array<i32>} : memref<64x128xf32, #tpu.memory_space<vmem>>, vector<8x128xf32>,
    %c6_i32 = arith.constant 6 : i32
    %c8_i32_39 = arith.constant 8 : i32
    %153 = arith.muli %c6_i32, %c8_i32_39 : i32
    %154 = tpu.assume_multiple %153, 8 : i32
    %155 = arith.index_cast %154 : i32 to index
    %c0_40 = arith.constant 0 : index
    %156 = vector.load %arg12[%155, %c0_40] : memref<64x512xf32, #tpu.memory_space<vmem>>, vector<8x512xf32>
    %cst_41 = arith.constant dense<0.000000e+00> : vector<8x512xf32>
    %157 = tpu.matmul %150, %8, %cst_41 {dimension_numbers = #tpu.dot_dimension_numbers<[1], [0], [0], [1], [0, 0, 1, 1], [], []>} : vector<8x128xf32>, vector<128x512xf32>, vector<8x512xf32> -> vector<8x512xf32>
    %158 = arith.addf %156, %157 : vector<8x512xf32>
    %159 = vector.extract_strided_slice %158 {offsets = [0, 0], sizes = [8, 384], strides = [1, 1]} : vector<8x512xf32> to vector<8x384xf32>
    %160 = arith.negf %159 : vector<8x384xf32>
    %161 = math.exp %160 : vector<8x384xf32>
    %cst_42 = arith.constant 1.000000e+00 : f32
    %162 = vector.broadcast %cst_42 : f32 to vector<8x384xf32>
    %163 = arith.addf %162, %161 : vector<8x384xf32>
    %164 = arith.divf %162, %163 : vector<8x384xf32>
    %165 = vector.extract_strided_slice %164 {offsets = [0, 0], sizes = [8, 128], strides = [1, 1]} : vector<8x384xf32> to vector<8x128xf32>
    %166 = vector.extract_strided_slice %164 {offsets = [0, 128], sizes = [8, 128], strides = [1, 1]} : vector<8x384xf32> to vector<8x128xf32>
    %167 = vector.extract_strided_slice %164 {offsets = [0, 256], sizes = [8, 128], strides = [1, 1]} : vector<8x384xf32> to vector<8x128xf32>
    %168 = vector.extract_strided_slice %158 {offsets = [0, 384], sizes = [8, 128], strides = [1, 1]} : vector<8x512xf32> to vector<8x128xf32>
    %169 = math.tanh %168 : vector<8x128xf32>
    %170 = arith.mulf %166, %148 : vector<8x128xf32>
    %171 = arith.mulf %165, %169 : vector<8x128xf32>
    %172 = arith.addf %170, %171 : vector<8x128xf32>
    %173 = math.tanh %172 : vector<8x128xf32>
    %174 = arith.mulf %167, %173 : vector<8x128xf32>
    %175 = arith.index_cast %154 : i32 to index
    %c0_43 = arith.constant 0 : index
    %176 = vector.load %arg13[%175, %c0_43] : memref<64x128xf32, #tpu.memory_space<vmem>>, vector<8x128xf32>
    tpu.vector_store %arg13[%175, %c0_43], %174 {strides = array<i32>} : memref<64x128xf32, #tpu.memory_space<vmem>>, vector<8x128xf32>,
    %c7_i32 = arith.constant 7 : i32
    %c8_i32_44 = arith.constant 8 : i32
    %177 = arith.muli %c7_i32, %c8_i32_44 : i32
    %178 = tpu.assume_multiple %177, 8 : i32
    %179 = arith.index_cast %178 : i32 to index
    %c0_45 = arith.constant 0 : index
    %180 = vector.load %arg12[%179, %c0_45] : memref<64x512xf32, #tpu.memory_space<vmem>>, vector<8x512xf32>
    %cst_46 = arith.constant dense<0.000000e+00> : vector<8x512xf32>
    %181 = tpu.matmul %174, %8, %cst_46 {dimension_numbers = #tpu.dot_dimension_numbers<[1], [0], [0], [1], [0, 0, 1, 1], [], []>} : vector<8x128xf32>, vector<128x512xf32>, vector<8x512xf32> -> vector<8x512xf32>
    %182 = arith.addf %180, %181 : vector<8x512xf32>
    %183 = vector.extract_strided_slice %182 {offsets = [0, 0], sizes = [8, 384], strides = [1, 1]} : vector<8x512xf32> to vector<8x384xf32>
    %184 = arith.negf %183 : vector<8x384xf32>
    %185 = math.exp %184 : vector<8x384xf32>
    %cst_47 = arith.constant 1.000000e+00 : f32
    %186 = vector.broadcast %cst_47 : f32 to vector<8x384xf32>
    %187 = arith.addf %186, %185 : vector<8x384xf32>
    %188 = arith.divf %186, %187 : vector<8x384xf32>
    %189 = vector.extract_strided_slice %188 {offsets = [0, 0], sizes = [8, 128], strides = [1, 1]} : vector<8x384xf32> to vector<8x128xf32>
    %190 = vector.extract_strided_slice %188 {offsets = [0, 128], sizes = [8, 128], strides = [1, 1]} : vector<8x384xf32> to vector<8x128xf32>
    %191 = vector.extract_strided_slice %188 {offsets = [0, 256], sizes = [8, 128], strides = [1, 1]} : vector<8x384xf32> to vector<8x128xf32>
    %192 = vector.extract_strided_slice %182 {offsets = [0, 384], sizes = [8, 128], strides = [1, 1]} : vector<8x512xf32> to vector<8x128xf32>
    %193 = math.tanh %192 : vector<8x128xf32>
    %194 = arith.mulf %190, %172 : vector<8x128xf32>
    %195 = arith.mulf %189, %193 : vector<8x128xf32>
    %196 = arith.addf %194, %195 : vector<8x128xf32>
    %197 = math.tanh %196 : vector<8x128xf32>
    %198 = arith.mulf %191, %197 : vector<8x128xf32>
    %199 = arith.index_cast %178 : i32 to index
    %c0_48 = arith.constant 0 : index
    %200 = vector.load %arg13[%199, %c0_48] : memref<64x128xf32, #tpu.memory_space<vmem>>, vector<8x128xf32>
    tpu.vector_store %arg13[%199, %c0_48], %198 {strides = array<i32>} : memref<64x128xf32, #tpu.memory_space<vmem>>, vector<8x128xf32>,
    %c8_i32_49 = arith.constant 8 : i32
    %c0_50 = arith.constant 0 : index
    %c0_51 = arith.constant 0 : index
    %201 = vector.load %arg13[%c0_50, %c0_51] : memref<64x128xf32, #tpu.memory_space<vmem>>, vector<64x128xf32>
    %c0_52 = arith.constant 0 : index
    %c0_53 = arith.constant 0 : index
    %202 = vector.load %arg5[%c0_52, %c0_53] : memref<128x512xf32, #tpu.memory_space<vmem>>, vector<128x512xf32>
    %cst_54 = arith.constant dense<0.000000e+00> : vector<64x512xf32>
    %203 = tpu.matmul %201, %202, %cst_54 {dimension_numbers = #tpu.dot_dimension_numbers<[1], [0], [0], [1], [0, 0, 1, 1], [], []>} : vector<64x128xf32>, vector<128x512xf32>, vector<64x512xf32> -> vector<64x512xf32>
    %c0_55 = arith.constant 0 : index
    %c0_56 = arith.constant 0 : index
    %204 = vector.load %arg7[%c0_55, %c0_56] : memref<1x512xf32, #tpu.memory_space<vmem>>, vector<1x512xf32>
    %205 = vector.broadcast %204 : vector<1x512xf32> to vector<64x512xf32>
    %206 = arith.addf %203, %205 : vector<64x512xf32>
    %c0_57 = arith.constant 0 : index
    %c0_58 = arith.constant 0 : index
    %207 = vector.load %arg12[%c0_57, %c0_58] : memref<64x512xf32, #tpu.memory_space<vmem>>, vector<64x512xf32>
    tpu.vector_store %arg12[%c0_57, %c0_58], %206 {strides = array<i32>} : memref<64x512xf32, #tpu.memory_space<vmem>>, vector<64x512xf32>,
    %c0_59 = arith.constant 0 : index
    %c0_60 = arith.constant 0 : index
    %208 = vector.load %arg6[%c0_59, %c0_60] : memref<128x512xf32, #tpu.memory_space<vmem>>, vector<128x512xf32>
    %c0_i32_61 = arith.constant 0 : i32
    %c8_i32_62 = arith.constant 8 : i32
    %209 = arith.muli %c0_i32_61, %c8_i32_62 : i32
    %210 = tpu.assume_multiple %209, 8 : i32
    %211 = arith.index_cast %210 : i32 to index
    %c0_63 = arith.constant 0 : index
    %212 = vector.load %arg12[%211, %c0_63] : memref<64x512xf32, #tpu.memory_space<vmem>>, vector<8x512xf32>
    %cst_64 = arith.constant dense<0.000000e+00> : vector<8x512xf32>
    %213 = tpu.matmul %0, %208, %cst_64 {dimension_numbers = #tpu.dot_dimension_numbers<[1], [0], [0], [1], [0, 0, 1, 1], [], []>} : vector<8x128xf32>, vector<128x512xf32>, vector<8x512xf32> -> vector<8x512xf32>
    %214 = arith.addf %212, %213 : vector<8x512xf32>
    %215 = vector.extract_strided_slice %214 {offsets = [0, 0], sizes = [8, 384], strides = [1, 1]} : vector<8x512xf32> to vector<8x384xf32>
    %216 = arith.negf %215 : vector<8x384xf32>
    %217 = math.exp %216 : vector<8x384xf32>
    %cst_65 = arith.constant 1.000000e+00 : f32
    %218 = vector.broadcast %cst_65 : f32 to vector<8x384xf32>
    %219 = arith.addf %218, %217 : vector<8x384xf32>
    %220 = arith.divf %218, %219 : vector<8x384xf32>
    %221 = vector.extract_strided_slice %220 {offsets = [0, 0], sizes = [8, 128], strides = [1, 1]} : vector<8x384xf32> to vector<8x128xf32>
    %222 = vector.extract_strided_slice %220 {offsets = [0, 128], sizes = [8, 128], strides = [1, 1]} : vector<8x384xf32> to vector<8x128xf32>
    %223 = vector.extract_strided_slice %220 {offsets = [0, 256], sizes = [8, 128], strides = [1, 1]} : vector<8x384xf32> to vector<8x128xf32>
    %224 = vector.extract_strided_slice %214 {offsets = [0, 384], sizes = [8, 128], strides = [1, 1]} : vector<8x512xf32> to vector<8x128xf32>
    %225 = math.tanh %224 : vector<8x128xf32>
    %226 = arith.mulf %222, %0 : vector<8x128xf32>
    %227 = arith.mulf %221, %225 : vector<8x128xf32>
    %228 = arith.addf %226, %227 : vector<8x128xf32>
    %229 = math.tanh %228 : vector<8x128xf32>
    %230 = arith.mulf %223, %229 : vector<8x128xf32>
    %c1_i32_66 = arith.constant 1 : i32
    %c8_i32_67 = arith.constant 8 : i32
    %231 = arith.muli %c1_i32_66, %c8_i32_67 : i32
    %232 = tpu.assume_multiple %231, 8 : i32
    %233 = arith.index_cast %232 : i32 to index
    %c0_68 = arith.constant 0 : index
    %234 = vector.load %arg12[%233, %c0_68] : memref<64x512xf32, #tpu.memory_space<vmem>>, vector<8x512xf32>
    %cst_69 = arith.constant dense<0.000000e+00> : vector<8x512xf32>
    %235 = tpu.matmul %230, %208, %cst_69 {dimension_numbers = #tpu.dot_dimension_numbers<[1], [0], [0], [1], [0, 0, 1, 1], [], []>} : vector<8x128xf32>, vector<128x512xf32>, vector<8x512xf32> -> vector<8x512xf32>
    %236 = arith.addf %234, %235 : vector<8x512xf32>
    %237 = vector.extract_strided_slice %236 {offsets = [0, 0], sizes = [8, 384], strides = [1, 1]} : vector<8x512xf32> to vector<8x384xf32>
    %238 = arith.negf %237 : vector<8x384xf32>
    %239 = math.exp %238 : vector<8x384xf32>
    %cst_70 = arith.constant 1.000000e+00 : f32
    %240 = vector.broadcast %cst_70 : f32 to vector<8x384xf32>
    %241 = arith.addf %240, %239 : vector<8x384xf32>
    %242 = arith.divf %240, %241 : vector<8x384xf32>
    %243 = vector.extract_strided_slice %242 {offsets = [0, 0], sizes = [8, 128], strides = [1, 1]} : vector<8x384xf32> to vector<8x128xf32>
    %244 = vector.extract_strided_slice %242 {offsets = [0, 128], sizes = [8, 128], strides = [1, 1]} : vector<8x384xf32> to vector<8x128xf32>
    %245 = vector.extract_strided_slice %242 {offsets = [0, 256], sizes = [8, 128], strides = [1, 1]} : vector<8x384xf32> to vector<8x128xf32>
    %246 = vector.extract_strided_slice %236 {offsets = [0, 384], sizes = [8, 128], strides = [1, 1]} : vector<8x512xf32> to vector<8x128xf32>
    %247 = math.tanh %246 : vector<8x128xf32>
    %248 = arith.mulf %244, %228 : vector<8x128xf32>
    %249 = arith.mulf %243, %247 : vector<8x128xf32>
    %250 = arith.addf %248, %249 : vector<8x128xf32>
    %251 = math.tanh %250 : vector<8x128xf32>
    %252 = arith.mulf %245, %251 : vector<8x128xf32>
    %c2_i32_71 = arith.constant 2 : i32
    %c8_i32_72 = arith.constant 8 : i32
    %253 = arith.muli %c2_i32_71, %c8_i32_72 : i32
    %254 = tpu.assume_multiple %253, 8 : i32
    %255 = arith.index_cast %254 : i32 to index
    %c0_73 = arith.constant 0 : index
    %256 = vector.load %arg12[%255, %c0_73] : memref<64x512xf32, #tpu.memory_space<vmem>>, vector<8x512xf32>
    %cst_74 = arith.constant dense<0.000000e+00> : vector<8x512xf32>
    %257 = tpu.matmul %252, %208, %cst_74 {dimension_numbers = #tpu.dot_dimension_numbers<[1], [0], [0], [1], [0, 0, 1, 1], [], []>} : vector<8x128xf32>, vector<128x512xf32>, vector<8x512xf32> -> vector<8x512xf32>
    %258 = arith.addf %256, %257 : vector<8x512xf32>
    %259 = vector.extract_strided_slice %258 {offsets = [0, 0], sizes = [8, 384], strides = [1, 1]} : vector<8x512xf32> to vector<8x384xf32>
    %260 = arith.negf %259 : vector<8x384xf32>
    %261 = math.exp %260 : vector<8x384xf32>
    %cst_75 = arith.constant 1.000000e+00 : f32
    %262 = vector.broadcast %cst_75 : f32 to vector<8x384xf32>
    %263 = arith.addf %262, %261 : vector<8x384xf32>
    %264 = arith.divf %262, %263 : vector<8x384xf32>
    %265 = vector.extract_strided_slice %264 {offsets = [0, 0], sizes = [8, 128], strides = [1, 1]} : vector<8x384xf32> to vector<8x128xf32>
    %266 = vector.extract_strided_slice %264 {offsets = [0, 128], sizes = [8, 128], strides = [1, 1]} : vector<8x384xf32> to vector<8x128xf32>
    %267 = vector.extract_strided_slice %264 {offsets = [0, 256], sizes = [8, 128], strides = [1, 1]} : vector<8x384xf32> to vector<8x128xf32>
    %268 = vector.extract_strided_slice %258 {offsets = [0, 384], sizes = [8, 128], strides = [1, 1]} : vector<8x512xf32> to vector<8x128xf32>
    %269 = math.tanh %268 : vector<8x128xf32>
    %270 = arith.mulf %266, %250 : vector<8x128xf32>
    %271 = arith.mulf %265, %269 : vector<8x128xf32>
    %272 = arith.addf %270, %271 : vector<8x128xf32>
    %273 = math.tanh %272 : vector<8x128xf32>
    %274 = arith.mulf %267, %273 : vector<8x128xf32>
    %c3_i32_76 = arith.constant 3 : i32
    %c8_i32_77 = arith.constant 8 : i32
    %275 = arith.muli %c3_i32_76, %c8_i32_77 : i32
    %276 = tpu.assume_multiple %275, 8 : i32
    %277 = arith.index_cast %276 : i32 to index
    %c0_78 = arith.constant 0 : index
    %278 = vector.load %arg12[%277, %c0_78] : memref<64x512xf32, #tpu.memory_space<vmem>>, vector<8x512xf32>
    %cst_79 = arith.constant dense<0.000000e+00> : vector<8x512xf32>
    %279 = tpu.matmul %274, %208, %cst_79 {dimension_numbers = #tpu.dot_dimension_numbers<[1], [0], [0], [1], [0, 0, 1, 1], [], []>} : vector<8x128xf32>, vector<128x512xf32>, vector<8x512xf32> -> vector<8x512xf32>
    %280 = arith.addf %278, %279 : vector<8x512xf32>
    %281 = vector.extract_strided_slice %280 {offsets = [0, 0], sizes = [8, 384], strides = [1, 1]} : vector<8x512xf32> to vector<8x384xf32>
    %282 = arith.negf %281 : vector<8x384xf32>
    %283 = math.exp %282 : vector<8x384xf32>
    %cst_80 = arith.constant 1.000000e+00 : f32
    %284 = vector.broadcast %cst_80 : f32 to vector<8x384xf32>
    %285 = arith.addf %284, %283 : vector<8x384xf32>
    %286 = arith.divf %284, %285 : vector<8x384xf32>
    %287 = vector.extract_strided_slice %286 {offsets = [0, 0], sizes = [8, 128], strides = [1, 1]} : vector<8x384xf32> to vector<8x128xf32>
    %288 = vector.extract_strided_slice %286 {offsets = [0, 128], sizes = [8, 128], strides = [1, 1]} : vector<8x384xf32> to vector<8x128xf32>
    %289 = vector.extract_strided_slice %286 {offsets = [0, 256], sizes = [8, 128], strides = [1, 1]} : vector<8x384xf32> to vector<8x128xf32>
    %290 = vector.extract_strided_slice %280 {offsets = [0, 384], sizes = [8, 128], strides = [1, 1]} : vector<8x512xf32> to vector<8x128xf32>
    %291 = math.tanh %290 : vector<8x128xf32>
    %292 = arith.mulf %288, %272 : vector<8x128xf32>
    %293 = arith.mulf %287, %291 : vector<8x128xf32>
    %294 = arith.addf %292, %293 : vector<8x128xf32>
    %295 = math.tanh %294 : vector<8x128xf32>
    %296 = arith.mulf %289, %295 : vector<8x128xf32>
    %c4_i32_81 = arith.constant 4 : i32
    %c8_i32_82 = arith.constant 8 : i32
    %297 = arith.muli %c4_i32_81, %c8_i32_82 : i32
    %298 = tpu.assume_multiple %297, 8 : i32
    %299 = arith.index_cast %298 : i32 to index
    %c0_83 = arith.constant 0 : index
    %300 = vector.load %arg12[%299, %c0_83] : memref<64x512xf32, #tpu.memory_space<vmem>>, vector<8x512xf32>
    %cst_84 = arith.constant dense<0.000000e+00> : vector<8x512xf32>
    %301 = tpu.matmul %296, %208, %cst_84 {dimension_numbers = #tpu.dot_dimension_numbers<[1], [0], [0], [1], [0, 0, 1, 1], [], []>} : vector<8x128xf32>, vector<128x512xf32>, vector<8x512xf32> -> vector<8x512xf32>
    %302 = arith.addf %300, %301 : vector<8x512xf32>
    %303 = vector.extract_strided_slice %302 {offsets = [0, 0], sizes = [8, 384], strides = [1, 1]} : vector<8x512xf32> to vector<8x384xf32>
    %304 = arith.negf %303 : vector<8x384xf32>
    %305 = math.exp %304 : vector<8x384xf32>
    %cst_85 = arith.constant 1.000000e+00 : f32
    %306 = vector.broadcast %cst_85 : f32 to vector<8x384xf32>
    %307 = arith.addf %306, %305 : vector<8x384xf32>
    %308 = arith.divf %306, %307 : vector<8x384xf32>
    %309 = vector.extract_strided_slice %308 {offsets = [0, 0], sizes = [8, 128], strides = [1, 1]} : vector<8x384xf32> to vector<8x128xf32>
    %310 = vector.extract_strided_slice %308 {offsets = [0, 128], sizes = [8, 128], strides = [1, 1]} : vector<8x384xf32> to vector<8x128xf32>
    %311 = vector.extract_strided_slice %308 {offsets = [0, 256], sizes = [8, 128], strides = [1, 1]} : vector<8x384xf32> to vector<8x128xf32>
    %312 = vector.extract_strided_slice %302 {offsets = [0, 384], sizes = [8, 128], strides = [1, 1]} : vector<8x512xf32> to vector<8x128xf32>
    %313 = math.tanh %312 : vector<8x128xf32>
    %314 = arith.mulf %310, %294 : vector<8x128xf32>
    %315 = arith.mulf %309, %313 : vector<8x128xf32>
    %316 = arith.addf %314, %315 : vector<8x128xf32>
    %317 = math.tanh %316 : vector<8x128xf32>
    %318 = arith.mulf %311, %317 : vector<8x128xf32>
    %c5_i32_86 = arith.constant 5 : i32
    %c8_i32_87 = arith.constant 8 : i32
    %319 = arith.muli %c5_i32_86, %c8_i32_87 : i32
    %320 = tpu.assume_multiple %319, 8 : i32
    %321 = arith.index_cast %320 : i32 to index
    %c0_88 = arith.constant 0 : index
    %322 = vector.load %arg12[%321, %c0_88] : memref<64x512xf32, #tpu.memory_space<vmem>>, vector<8x512xf32>
    %cst_89 = arith.constant dense<0.000000e+00> : vector<8x512xf32>
    %323 = tpu.matmul %318, %208, %cst_89 {dimension_numbers = #tpu.dot_dimension_numbers<[1], [0], [0], [1], [0, 0, 1, 1], [], []>} : vector<8x128xf32>, vector<128x512xf32>, vector<8x512xf32> -> vector<8x512xf32>
    %324 = arith.addf %322, %323 : vector<8x512xf32>
    %325 = vector.extract_strided_slice %324 {offsets = [0, 0], sizes = [8, 384], strides = [1, 1]} : vector<8x512xf32> to vector<8x384xf32>
    %326 = arith.negf %325 : vector<8x384xf32>
    %327 = math.exp %326 : vector<8x384xf32>
    %cst_90 = arith.constant 1.000000e+00 : f32
    %328 = vector.broadcast %cst_90 : f32 to vector<8x384xf32>
    %329 = arith.addf %328, %327 : vector<8x384xf32>
    %330 = arith.divf %328, %329 : vector<8x384xf32>
    %331 = vector.extract_strided_slice %330 {offsets = [0, 0], sizes = [8, 128], strides = [1, 1]} : vector<8x384xf32> to vector<8x128xf32>
    %332 = vector.extract_strided_slice %330 {offsets = [0, 128], sizes = [8, 128], strides = [1, 1]} : vector<8x384xf32> to vector<8x128xf32>
    %333 = vector.extract_strided_slice %330 {offsets = [0, 256], sizes = [8, 128], strides = [1, 1]} : vector<8x384xf32> to vector<8x128xf32>
    %334 = vector.extract_strided_slice %324 {offsets = [0, 384], sizes = [8, 128], strides = [1, 1]} : vector<8x512xf32> to vector<8x128xf32>
    %335 = math.tanh %334 : vector<8x128xf32>
    %336 = arith.mulf %332, %316 : vector<8x128xf32>
    %337 = arith.mulf %331, %335 : vector<8x128xf32>
    %338 = arith.addf %336, %337 : vector<8x128xf32>
    %339 = math.tanh %338 : vector<8x128xf32>
    %340 = arith.mulf %333, %339 : vector<8x128xf32>
    %c6_i32_91 = arith.constant 6 : i32
    %c8_i32_92 = arith.constant 8 : i32
    %341 = arith.muli %c6_i32_91, %c8_i32_92 : i32
    %342 = tpu.assume_multiple %341, 8 : i32
    %343 = arith.index_cast %342 : i32 to index
    %c0_93 = arith.constant 0 : index
    %344 = vector.load %arg12[%343, %c0_93] : memref<64x512xf32, #tpu.memory_space<vmem>>, vector<8x512xf32>
    %cst_94 = arith.constant dense<0.000000e+00> : vector<8x512xf32>
    %345 = tpu.matmul %340, %208, %cst_94 {dimension_numbers = #tpu.dot_dimension_numbers<[1], [0], [0], [1], [0, 0, 1, 1], [], []>} : vector<8x128xf32>, vector<128x512xf32>, vector<8x512xf32> -> vector<8x512xf32>
    %346 = arith.addf %344, %345 : vector<8x512xf32>
    %347 = vector.extract_strided_slice %346 {offsets = [0, 0], sizes = [8, 384], strides = [1, 1]} : vector<8x512xf32> to vector<8x384xf32>
    %348 = arith.negf %347 : vector<8x384xf32>
    %349 = math.exp %348 : vector<8x384xf32>
    %cst_95 = arith.constant 1.000000e+00 : f32
    %350 = vector.broadcast %cst_95 : f32 to vector<8x384xf32>
    %351 = arith.addf %350, %349 : vector<8x384xf32>
    %352 = arith.divf %350, %351 : vector<8x384xf32>
    %353 = vector.extract_strided_slice %352 {offsets = [0, 0], sizes = [8, 128], strides = [1, 1]} : vector<8x384xf32> to vector<8x128xf32>
    %354 = vector.extract_strided_slice %352 {offsets = [0, 128], sizes = [8, 128], strides = [1, 1]} : vector<8x384xf32> to vector<8x128xf32>
    %355 = vector.extract_strided_slice %352 {offsets = [0, 256], sizes = [8, 128], strides = [1, 1]} : vector<8x384xf32> to vector<8x128xf32>
    %356 = vector.extract_strided_slice %346 {offsets = [0, 384], sizes = [8, 128], strides = [1, 1]} : vector<8x512xf32> to vector<8x128xf32>
    %357 = math.tanh %356 : vector<8x128xf32>
    %358 = arith.mulf %354, %338 : vector<8x128xf32>
    %359 = arith.mulf %353, %357 : vector<8x128xf32>
    %360 = arith.addf %358, %359 : vector<8x128xf32>
    %361 = math.tanh %360 : vector<8x128xf32>
    %362 = arith.mulf %355, %361 : vector<8x128xf32>
    %c7_i32_96 = arith.constant 7 : i32
    %c8_i32_97 = arith.constant 8 : i32
    %363 = arith.muli %c7_i32_96, %c8_i32_97 : i32
    %364 = tpu.assume_multiple %363, 8 : i32
    %365 = arith.index_cast %364 : i32 to index
    %c0_98 = arith.constant 0 : index
    %366 = vector.load %arg12[%365, %c0_98] : memref<64x512xf32, #tpu.memory_space<vmem>>, vector<8x512xf32>
    %cst_99 = arith.constant dense<0.000000e+00> : vector<8x512xf32>
    %367 = tpu.matmul %362, %208, %cst_99 {dimension_numbers = #tpu.dot_dimension_numbers<[1], [0], [0], [1], [0, 0, 1, 1], [], []>} : vector<8x128xf32>, vector<128x512xf32>, vector<8x512xf32> -> vector<8x512xf32>
    %368 = arith.addf %366, %367 : vector<8x512xf32>
    %369 = vector.extract_strided_slice %368 {offsets = [0, 0], sizes = [8, 384], strides = [1, 1]} : vector<8x512xf32> to vector<8x384xf32>
    %370 = arith.negf %369 : vector<8x384xf32>
    %371 = math.exp %370 : vector<8x384xf32>
    %cst_100 = arith.constant 1.000000e+00 : f32
    %372 = vector.broadcast %cst_100 : f32 to vector<8x384xf32>
    %373 = arith.addf %372, %371 : vector<8x384xf32>
    %374 = arith.divf %372, %373 : vector<8x384xf32>
    %375 = vector.extract_strided_slice %374 {offsets = [0, 0], sizes = [8, 128], strides = [1, 1]} : vector<8x384xf32> to vector<8x128xf32>
    %376 = vector.extract_strided_slice %374 {offsets = [0, 128], sizes = [8, 128], strides = [1, 1]} : vector<8x384xf32> to vector<8x128xf32>
    %377 = vector.extract_strided_slice %374 {offsets = [0, 256], sizes = [8, 128], strides = [1, 1]} : vector<8x384xf32> to vector<8x128xf32>
    %378 = vector.extract_strided_slice %368 {offsets = [0, 384], sizes = [8, 128], strides = [1, 1]} : vector<8x512xf32> to vector<8x128xf32>
    %379 = math.tanh %378 : vector<8x128xf32>
    %380 = arith.mulf %376, %360 : vector<8x128xf32>
    %381 = arith.mulf %375, %379 : vector<8x128xf32>
    %382 = arith.addf %380, %381 : vector<8x128xf32>
    %383 = math.tanh %382 : vector<8x128xf32>
    %384 = arith.mulf %377, %383 : vector<8x128xf32>
    %c8_i32_101 = arith.constant 8 : i32
    %c0_102 = arith.constant 0 : index
    %c0_103 = arith.constant 0 : index
    %385 = vector.load %arg9[%c0_102, %c0_103] : memref<128x4xf32, #tpu.memory_space<vmem>>, vector<128x4xf32>
    %cst_104 = arith.constant dense<0.000000e+00> : vector<8x4xf32>
    %386 = tpu.matmul %384, %385, %cst_104 {dimension_numbers = #tpu.dot_dimension_numbers<[1], [0], [0], [1], [0, 0, 1, 1], [], []>} : vector<8x128xf32>, vector<128x4xf32>, vector<8x4xf32> -> vector<8x4xf32>
    %c0_105 = arith.constant 0 : index
    %c0_106 = arith.constant 0 : index
    %387 = vector.load %arg8[%c0_105, %c0_106] : memref<8x4xf32, #tpu.memory_space<vmem>>, vector<8x4xf32>
    %388 = arith.mulf %387, %386 : vector<8x4xf32>
    %cst_107 = arith.constant dense<0.000000e+00> : vector<8xf32>
    %389 = vector.multi_reduction <add>, %388, %cst_107 [1] : vector<8x4xf32> to vector<8xf32>
    %390 = vector.shape_cast %389 : vector<8xf32> to vector<8x1xf32>
    %c0_108 = arith.constant 0 : index
    %c0_109 = arith.constant 0 : index
    %391 = vector.load %arg10[%c0_108, %c0_109] : memref<1x1xf32, #tpu.memory_space<vmem>>, vector<1x1xf32>
    %392 = vector.broadcast %391 : vector<1x1xf32> to vector<8x1xf32>
    %393 = arith.addf %390, %392 : vector<8x1xf32>
    %c0_110 = arith.constant 0 : index
    %c0_111 = arith.constant 0 : index
    %394 = vector.load %arg11[%c0_110, %c0_111] : memref<8x1xf32, #tpu.memory_space<vmem>>, vector<8x1xf32>
    tpu.vector_store %arg11[%c0_110, %c0_111], %393 {strides = array<i32>} : memref<8x1xf32, #tpu.memory_space<vmem>>, vector<8x1xf32>,
    return
  }
  func.func @transform_0(%arg0: i32) -> (i32, i32) {
    %c0_i32 = arith.constant 0 : i32
    %c0_i32_0 = arith.constant 0 : i32
    %c0_i32_1 = arith.constant 0 : i32
    return %c0_i32, %c0_i32_0 : i32, i32
  }
  func.func @transform_1(%arg0: i32) -> (i32, i32) {
    %c0_i32 = arith.constant 0 : i32
    %c0_i32_0 = arith.constant 0 : i32
    %c0_i32_1 = arith.constant 0 : i32
    return %c0_i32, %c0_i32_0 : i32, i32
  }
  func.func @transform_2(%arg0: i32) -> (i32, i32) {
    %c0_i32 = arith.constant 0 : i32
    %c0_i32_0 = arith.constant 0 : i32
    %c0_i32_1 = arith.constant 0 : i32
    return %c0_i32, %c0_i32_0 : i32, i32
  }
  func.func @transform_3(%arg0: i32) -> (i32, i32) {
    %c0_i32 = arith.constant 0 : i32
    %c0_i32_0 = arith.constant 0 : i32
    %c0_i32_1 = arith.constant 0 : i32
    return %c0_i32, %c0_i32_0 : i32, i32
  }
  func.func @transform_4(%arg0: i32) -> (i32, i32) {
    %c0_i32 = arith.constant 0 : i32
    %c0_i32_0 = arith.constant 0 : i32
    %c0_i32_1 = arith.constant 0 : i32
    return %c0_i32, %c0_i32_0 : i32, i32
  }
  func.func @transform_5(%arg0: i32) -> (i32, i32) {
    %c0_i32 = arith.constant 0 : i32
    %c0_i32_0 = arith.constant 0 : i32
    %c0_i32_1 = arith.constant 0 : i32
    return %c0_i32, %c0_i32_0 : i32, i32
  }
  func.func @transform_6(%arg0: i32) -> (i32, i32) {
    %c0_i32 = arith.constant 0 : i32
    %c0_i32_0 = arith.constant 0 : i32
    %c0_i32_1 = arith.constant 0 : i32
    return %c0_i32, %c0_i32_0 : i32, i32
  }
  func.func @transform_7(%arg0: i32) -> (i32, i32) {
    %c0_i32 = arith.constant 0 : i32
    %c0_i32_0 = arith.constant 0 : i32
    %c0_i32_1 = arith.constant 0 : i32
    return %c0_i32, %c0_i32_0 : i32, i32
  }
  func.func @transform_8(%arg0: i32) -> (i32, i32) {
    %c0_i32 = arith.constant 0 : i32
    %c0_i32_0 = arith.constant 0 : i32
    %c0_i32_1 = arith.constant 0 : i32
    return %c0_i32, %c0_i32_0 : i32, i32
  }
  func.func @transform_9(%arg0: i32) -> (i32, i32) {
    %c0_i32 = arith.constant 0 : i32
    %c0_i32_0 = arith.constant 0 : i32
    %c0_i32_1 = arith.constant 0 : i32
    return %c0_i32, %c0_i32_0 : i32, i32
  }
  func.func @transform_10(%arg0: i32) -> (i32, i32) {
    %c0_i32 = arith.constant 0 : i32
    %c0_i32_0 = arith.constant 0 : i32
    %c0_i32_1 = arith.constant 0 : i32
    return %c0_i32, %c0_i32_0 : i32, i32
  }
}

</mosaic_0001>

<bundles_post_ra>
// kernel: tpu_custom_call.1
= control target key start
LH: loop header
LB: loop body
LE: loop exit
PB: predicated region body
PF: predicated region fallthrough
CT: control target
= control target key end

     0   :  { %s6667_s0 = inlined_call_operand.vmem [shape: f32[64,16], index: 0, kind: input, shape index: {}]   ;;  %s6668_s1 = inlined_call_operand.vmem [shape: f32[16,512], index: 1, kind: input, shape index: {}]   ;;  %s6669_s2 = inlined_call_operand.hbm [shape: f32[128,512], index: 2, kind: input, shape index: {}]   ;;  %s6670_s3 = inlined_call_operand.vmem [shape: f32[1,512], index: 3, kind: input, shape index: {}]   ;;  %s6671_s4 = inlined_call_operand.hbm [shape: f32[128,512], index: 4, kind: input, shape index: {}]   ;;  %s6672_s5 = inlined_call_operand.hbm [shape: f32[128,512], index: 5, kind: input, shape index: {}]   ;;  %s6673_s6 = inlined_call_operand.vmem [shape: f32[1,512], index: 6, kind: input, shape index: {}]   ;;  %s6674_s7 = inlined_call_operand.vmem [shape: f32[8,4], index: 7, kind: input, shape index: {}]   ;;  %s6675_s8 = inlined_call_operand.vmem [shape: f32[128,4], index: 8, kind: input, shape index: {}]   ;;  %s6676_s9 = inlined_call_operand.<no memory space> [shape: f32[1,1], index: 9, kind: input, shape index: {}]   ;;  %s6677_s10 = inlined_call_operand.vmem [shape: f32[8,1], index: 10, kind: output, shape index: {}]  }
   0x1   :  { %v15_v0 = vstv %s6676_s9 }
   0x2   :  { %16 = vst [vmem:[#allocation4] sm:$0x1] %v15_v0 }
   0x3   :  { %17 = vsyncpa [#allocation6], 0 }
   0x4   :  { %18 = vsyncpa [#allocation8], 0  ;;  %s5516_s15 = smov [#allocation7]   ;;  %s5517_s17 = smov [#allocation5]  }
   0x5   :  { %s42_s16 = sshll.u32 %s5516_s15, 4  ;;  %s28_s18 = sshll.u32 %s5517_s17, 4  ;;  %s43_s16 = int_to_ptr.vmem [resolvable:$true] %s42_s16  ;;  %s5582_s18 = int_to_ptr.vmem [resolvable:$true] %s28_s18 }
   0x6   :  { %s5446_s21 = scalar_lea.hbm %s6671_s4, 8192 }
   0x7   :  { %p5447_p0 = scmp.ne.s32.totalorder %s6671_s4, %s5446_s21  ;;  %p5450_p1 = scmp.lt.u32.totalorder %s5446_s21, %s6671_s4 }
   0x9   :  { %p5452_p2 = pnand %p5450_p1, %p5447_p0 }
   0xb   :  { %5455 = shalt.err (!%p5452_p2)
}
   0xc   :  { %s5456_s25 = scalar_lea.vmem %s43_s16, 8192  ;;  %p5461_p4 = scmp.lt.s32.totalorder %s43_s16, %s43_s16 }
   0xd   :  { %p5457_p3 = scmp.ne.s32.totalorder %s43_s16, %s5456_s25  ;;  %p5462_p5 = scmp.lt.s32.totalorder %s5456_s25, %s5456_s25 }
   0xf   :  { %p5463_p6 = por %p5462_p5, %p5461_p4 }
  0x11   :  { %p5464_p7 = pnand %p5463_p6, %p5457_p3 }
  0x13   :  { %5467 = shalt.err (!%p5464_p7)
}
  0x14   :  { %s5518_s26 = smov 512   ;;  %s5519_s27 = smov 32  }
  0x15   :  { %48 = dma.hbm_to_vmem [thread:$0]  %s6671_s4, 8192, %s43_s16, [#allocation8], %s5518_s26, %s5518_s26, %s5519_s27  }
  0x16   :  { %s5468_s12 = scalar_lea.hbm %s6669_s2, 8192 }
  0x17   :  { %p5469_p8 = scmp.ne.s32.totalorder %s6669_s2, %s5468_s12  ;;  %p5472_p9 = scmp.lt.u32.totalorder %s5468_s12, %s6669_s2 }
  0x19   :  { %p5474_p10 = pnand %p5472_p9, %p5469_p8 }
  0x1b   :  { %5477 = shalt.err (!%p5474_p10)
}
  0x1c   :  { %s5478_s19 = scalar_lea.vmem %s5582_s18, 8192  ;;  %p5483_p12 = scmp.lt.s32.totalorder %s5582_s18, %s5582_s18 }
  0x1d   :  { %p5479_p11 = scmp.ne.s32.totalorder %s5582_s18, %s5478_s19  ;;  %p5484_p13 = scmp.lt.s32.totalorder %s5478_s19, %s5478_s19 }
  0x1f   :  { %p5485_p0 = por %p5484_p13, %p5483_p12 }
  0x21   :  { %p5486_p1 = pnand %p5485_p0, %p5479_p11 }
  0x23   :  { %5489 = shalt.err (!%p5486_p1)
}
  0x24   :  { %34 = dma.hbm_to_vmem [thread:$0]  %s6669_s2, 8192, %s5582_s18, [#allocation6], %s5518_s26, %s5518_s26, %s5519_s27  }
  0x25   :  { %s5520_s20 = smov [#allocation9]   ;;  %s5490_s24 = scalar_lea.hbm %s6672_s5, 8192 }
  0x26   :  { %s54_s21 = sshll.u32 %s5520_s20, 4  ;;  %p5491_p2 = scmp.ne.s32.totalorder %s6672_s5, %s5490_s24  ;;  %s55_s21 = int_to_ptr.vmem [resolvable:$true] %s54_s21 }
  0x27   :  { %p5494_p3 = scmp.lt.u32.totalorder %s5490_s24, %s6672_s5 }
  0x29   :  { %p5496_p4 = pnand %p5494_p3, %p5491_p2 }
  0x2b   :  { %5499 = shalt.err (!%p5496_p4)
}
  0x2c   :  { %s5500_s30 = scalar_lea.vmem %s55_s21, 8192  ;;  %p5505_p6 = scmp.lt.s32.totalorder %s55_s21, %s55_s21 }
  0x2d   :  { %p5501_p5 = scmp.ne.s32.totalorder %s55_s21, %s5500_s30  ;;  %p5506_p7 = scmp.lt.s32.totalorder %s5500_s30, %s5500_s30 }
  0x2f   :  { %p5507_p8 = por %p5506_p7, %p5505_p6 }
  0x31   :  { %p5508_p9 = pnand %p5507_p8, %p5501_p5 }
  0x33   :  { %5511 = shalt.err (!%p5508_p9)
}
  0x34   :  { %60 = dma.hbm_to_vmem [thread:$0]  %s6672_s5, 8192, %s55_s21, [#allocation8], %s5518_s26, %s5518_s26, %s5519_s27  }
  0x35   :  { %5512 = dma.done.wait [#allocation6], 8192  }
  0x36   :  { %5513 = vsyncadd [#allocation6], 4294959104 }
  0x37   :  { %5514 = dma.done.wait [#allocation8], 16384  }
  0x38   :  { %5515 = vsyncadd [#allocation8], 4294950912  ;;  %v5521_v1 = vmov 0.0   ;;  %v87_v2 = vld [vmem:[%s6668_s1 + $0x8] sm:$0xff]  ;;  %v89_v4 = vld [vmem:[%s6668_s1 + $0x18] sm:$0xff]  ;;  %vm116_vm0 = vcmask 130048  }
  0x39   :  { %205 = vmatprep.mubr.f32.mxu0 %v5521_v1  ;;  %318 = vmatprep.mubr.f32.mxu1 %v5521_v1  ;;  %v91_v3 = vld [vmem:[%s6668_s1 + $0x28] sm:$0xff]  ;;  %v93_v6 = vld [vmem:[%s6668_s1 + $0x38] sm:$0xff]  ;;  %v86_v7 = vld [vmem:[%s6668_s1] sm:$0xff]  ;;  %vm5523_vm1 = vmmov 0   ;;  %vm3790_vm2 = vcmask 31744   ;;  %vm3802_vm3 = vcmask 7168  }
  0x3a   :  { %v3934_v5 = vpack.c.bf16 %v91_v3, %v87_v2  ;;  %v90_v8 = vld [vmem:[%s6668_s1 + $0x20] sm:$0xff]  ;;  %v3938_v9 = vpack.c.bf16 %v93_v6, %v89_v4  ;;  %v88_v11 = vld [vmem:[%s6668_s1 + $0x10] sm:$0xff]  ;;  %v79_v34 = vld [vmem:[%s6667_s0 + $0x8] sm:$0xff] }
  0x3b   :  { %v3936_v10 = vpack.c.bf16 %v90_v8, %v86_v7  ;;  %v92_v12 = vld [vmem:[%s6668_s1 + $0x30] sm:$0xff]  ;;  %v78_v13 = vld [vmem:[%s6667_s0] sm:$0xff]  ;;  %v81_v2 = vld [vmem:[%s6667_s0 + $0x18] sm:$0xff] }
  0x3c   :  { %3935 = vmatprep.subr.bf16.mxu0 %v3934_v5  ;;  %v3940_v14 = vpack.c.bf16 %v92_v12, %v88_v11  ;;  %v400_v15 = vld [vmem:[#allocation5 + $0x8] sm:$0xff]  ;;  %v402_v17 = vld [vmem:[#allocation5 + $0x18] sm:$0xff]  ;;  %3939 = vmatprep.subr.bf16.mxu1 %v3938_v9  ;;  %v399_v20 = vld [vmem:[#allocation5] sm:$0xff] }
  0x3d   :  { %v404_v16 = vld [vmem:[#allocation5 + $0x28] sm:$0xff]  ;;  %3937 = vmatpush1.bf16.msra.mxu0 %v3936_v10  ;;  %v406_v19 = vld [vmem:[#allocation5 + $0x38] sm:$0xff]  ;;  %v403_v21 = vld [vmem:[#allocation5 + $0x20] sm:$0xff] }
  0x3e   :  { %v5663_v18 = vpack.c.bf16 %v404_v16, %v400_v15  ;;  %3941 = vmatpush1.bf16.msra.mxu1 %v3940_v14  ;;  %v5665_v22 = vpack.c.bf16 %v406_v19, %v402_v17  ;;  %v5667_v23 = vpack.c.bf16 %v403_v21, %v399_v20  ;;  %v401_v24 = vld [vmem:[#allocation5 + $0x10] sm:$0xff]  ;;  %v408_v27 = vld [vmem:[#allocation5 + $0x48] sm:$0xff]  ;;  %v410_v29 = vld [vmem:[#allocation5 + $0x58] sm:$0xff] }
  0x3f   :  { %v405_v25 = vld [vmem:[#allocation5 + $0x30] sm:$0xff]  ;;  %v412_v28 = vld [vmem:[#allocation5 + $0x68] sm:$0xff]  ;;  %v414_v31 = vld [vmem:[#allocation5 + $0x78] sm:$0xff] }
  0x40   :  { %3943 = vmatprep.subr.bf16.mxu0 %v5663_v18  ;;  %v5670_v26 = vpack.c.bf16 %v405_v25, %v401_v24  ;;  %3817 = vmatmul.mubr.msk.f32.vlgmr.msra.gmra.mrb[0].mxu0 %vm116_vm0, %v78_v13  ;;  %v5674_v30 = vpack.c.bf16 %v412_v28, %v408_v27  ;;  %v407_v32 = vld [vmem:[#allocation5 + $0x40] sm:$0xff]  ;;  %v5681_v35 = vpack.c.bf16 %v414_v31, %v410_v29  ;;  %v409_v37 = vld [vmem:[#allocation5 + $0x50] sm:$0xff]  ;;  %v416_v40 = vld [vmem:[#allocation5 + $0x88] sm:$0xff] }
  0x41   :  { %3975 = vmatprep.subr.bf16.mxu1 %v5665_v22  ;;  %v411_v33 = vld [vmem:[#allocation5 + $0x60] sm:$0xff]  ;;  %3825 = vmatmul.mubr.msk.f32.vlgmr.msra.gmra.mrb[0].mxu1 %vm116_vm0, %v78_v13  ;;  %v413_v38 = vld [vmem:[#allocation5 + $0x70] sm:$0xff]  ;;  %v420_v41 = vld [vmem:[#allocation5 + $0xa8] sm:$0xff] }
  0x42   :  { %3945 = vmatpush1.bf16.msra.mxu0 %v5667_v23  ;;  %v5683_v36 = vpack.c.bf16 %v411_v33, %v407_v32  ;;  %3977 = vmatpush1.bf16.msra.mxu1 %v5670_v26  ;;  %v5687_v39 = vpack.c.bf16 %v413_v38, %v409_v37  ;;  %v418_v42 = vld [vmem:[#allocation5 + $0x98] sm:$0xff]  ;;  %v5691_v43 = vpack.c.bf16 %v420_v41, %v416_v40  ;;  %v415_v45 = vld [vmem:[#allocation5 + $0x80] sm:$0xff]  ;;  %v80_v47 = vld [vmem:[%s6667_s0 + $0x10] sm:$0xff] }
  0x43   :  { %211 = vmatprep.mubr.f32.mxu0 %v5521_v1  ;;  %324 = vmatprep.mubr.f32.mxu1 %v5521_v1  ;;  %v422_v44 = vld [vmem:[#allocation5 + $0xb8] sm:$0xff]  ;;  %v419_v46 = vld [vmem:[#allocation5 + $0xa0] sm:$0xff]  ;;  %v417_v49 = vld [vmem:[#allocation5 + $0x90] sm:$0xff] }
  0x44   :  { %3947 = vmatprep.subr.bf16.mxu0 %v5674_v30  ;;  %3818 = vmatmul.mubr.msk.f32.gmra.mrb[2].mxu0 %vm116_vm0, %v79_v34  ;;  %v5698_v48 = vpack.c.bf16 %v422_v44, %v418_v42  ;;  %v421_v50 = vld [vmem:[#allocation5 + $0xb0] sm:$0xff]  ;;  %v5702_v51 = vpack.c.bf16 %v419_v46, %v415_v45  ;;  %v424_v52 = vld [vmem:[#allocation5 + $0xc8] sm:$0xff]  ;;  %v426_v54 = vld [vmem:[#allocation5 + $0xd8] sm:$0xff] }
  0x45   :  { %3979 = vmatprep.subr.bf16.mxu1 %v5681_v35  ;;  %3826 = vmatmul.mubr.msk.f32.gmra.mrb[2].mxu1 %vm116_vm0, %v79_v34  ;;  %v428_v53 = vld [vmem:[#allocation5 + $0xe8] sm:$0xff]  ;;  %v5706_v55 = vpack.c.bf16 %v421_v50, %v417_v49  ;;  %v430_v56 = vld [vmem:[#allocation5 + $0xf8] sm:$0xff]  ;;  %v423_v57 = vld [vmem:[#allocation5 + $0xc0] sm:$0xff] }
  0x46   :  { %3949 = vmatpush1.bf16.msra.mxu0 %v5683_v36  ;;  %3981 = vmatpush1.bf16.msra.mxu1 %v5687_v39  ;;  %v427_v58 = vld [vmem:[#allocation5 + $0xe0] sm:$0xff]  ;;  %v5710_v59 = vpack.c.bf16 %v428_v53, %v424_v52  ;;  %v425_v60 = vld [vmem:[#allocation5 + $0xd0] sm:$0xff]  ;;  %v5714_v62 = vpack.c.bf16 %v430_v56, %v426_v54  ;;  %v432_v63 = vld [vmem:[#allocation5 + $0x108] sm:$0xff] }
  0x47   :  { %217 = vmatprep.mubr.f32.mxu0 %v5521_v1  ;;  %330 = vmatprep.mubr.f32.mxu1 %v5521_v1  ;;  %v429_v61 = vld [vmem:[#allocation5 + $0xf0] sm:$0xff]  ;;  %v436_v0 = vld [vmem:[#allocation5 + $0x128] sm:$0xff]  ;;  %v5721_v3 = vpack.c.bf16 %v427_v58, %v423_v57  ;;  %v434_v4 = vld [vmem:[#allocation5 + $0x118] sm:$0xff] }
  0x48   :  { %3951 = vmatprep.subr.bf16.mxu0 %v5691_v43  ;;  %3819 = vmatmul.mubr.msk.f32.gmra.mrb[4].mxu0 %vm116_vm0, %v80_v47  ;;  %v438_v5 = vld [vmem:[#allocation5 + $0x138] sm:$0xff]  ;;  %v5725_v6 = vpack.c.bf16 %v429_v61, %v425_v60  ;;  %v431_v7 = vld [vmem:[#allocation5 + $0x100] sm:$0xff]  ;;  %v5729_v9 = vpack.c.bf16 %v436_v0, %v432_v63  ;;  %v433_v10 = vld [vmem:[#allocation5 + $0x110] sm:$0xff] }
  0x49   :  { %3983 = vmatprep.subr.bf16.mxu1 %v5698_v48  ;;  %3827 = vmatmul.mubr.msk.f32.gmra.mrb[4].mxu1 %vm116_vm0, %v80_v47  ;;  %v435_v8 = vld [vmem:[#allocation5 + $0x120] sm:$0xff]  ;;  %v437_v11 = vld [vmem:[#allocation5 + $0x130] sm:$0xff]  ;;  %v5733_v12 = vpack.c.bf16 %v438_v5, %v434_v4  ;;  %v440_v13 = vld [vmem:[#allocation5 + $0x148] sm:$0xff] }
  0x4a   :  { %3953 = vmatpush1.bf16.msra.mxu0 %v5702_v51  ;;  %3985 = vmatpush1.bf16.msra.mxu1 %v5706_v55  ;;  %v444_v14 = vld [vmem:[#allocation5 + $0x168] sm:$0xff]  ;;  %v82_v15 = vld [vmem:[%s6667_s0 + $0x20] sm:$0xff]  ;;  %v5740_v16 = vpack.c.bf16 %v435_v8, %v431_v7  ;;  %v5744_v20 = vpack.c.bf16 %v437_v11, %v433_v10  ;;  %v441_v27 = vld [vmem:[#allocation5 + $0x150] sm:$0xff]  ;;  %v96_v8 = vlaneseq }
  0x4b   :  { %223 = vmatprep.mubr.f32.mxu0 %v5521_v1  ;;  %336 = vmatprep.mubr.f32.mxu1 %v5521_v1  ;;  %v442_v17 = vld [vmem:[#allocation5 + $0x158] sm:$0xff]  ;;  %v439_v21 = vld [vmem:[#allocation5 + $0x140] sm:$0xff]  ;;  %v5748_v25 = vpack.c.bf16 %v444_v14, %v440_v13  ;;  %v445_v28 = vld [vmem:[#allocation5 + $0x170] sm:$0xff] }
  0x4c   :  { %3955 = vmatprep.subr.bf16.mxu0 %v5710_v59  ;;  %3820 = vmatmul.mubr.msk.f32.gmra.mrb[6].mxu0 %vm116_vm0, %v81_v2  ;;  %v446_v19 = vld [vmem:[#allocation5 + $0x178] sm:$0xff]  ;;  %v443_v24 = vld [vmem:[#allocation5 + $0x160] sm:$0xff]  ;;  %v448_v31 = vld [vmem:[#allocation5 + $0x188] sm:$0xff]  ;;  %v5763_v40 = vpack.c.bf16 %v445_v28, %v441_v27  ;;  %v5850_v10 = vshrl.u32 %v96_v8, 7 }
  0x4d   :  { %3987 = vmatprep.subr.bf16.mxu1 %v5714_v62  ;;  %3828 = vmatmul.mubr.msk.f32.gmra.mrb[6].mxu1 %vm116_vm0, %v81_v2  ;;  %v5752_v29 = vpack.c.bf16 %v446_v19, %v442_v17  ;;  %v452_v32 = vld [vmem:[#allocation5 + $0x1a8] sm:$0xff]  ;;  %v5759_v34 = vpack.c.bf16 %v443_v24, %v439_v21  ;;  %v450_v37 = vld [vmem:[#allocation5 + $0x198] sm:$0xff]  ;;  %v447_v41 = vld [vmem:[#allocation5 + $0x180] sm:$0xff] }
  0x4e   :  { %3957 = vmatpush1.bf16.msra.mxu0 %v5721_v3  ;;  %3989 = vmatpush1.bf16.msra.mxu1 %v5725_v6  ;;  %v83_v33 = vld [vmem:[%s6667_s0 + $0x28] sm:$0xff]  ;;  %v454_v38 = vld [vmem:[#allocation5 + $0x1b8] sm:$0xff]  ;;  %v5767_v44 = vpack.c.bf16 %v452_v32, %v448_v31  ;;  %v449_v45 = vld [vmem:[#allocation5 + $0x190] sm:$0xff]  ;;  %v98_v11 = vsub.s32 0, %v5850_v10  ;;  %v102_v14 = vsub.s32 1, %v5850_v10  ;;  %v106_v21 = vsub.s32 2, %v5850_v10 }
  0x4f   :  { %229 = vmatprep.mubr.f32.mxu0 %v5521_v1  ;;  %342 = vmatprep.mubr.f32.mxu1 %v5521_v1  ;;  %v451_v42 = vld [vmem:[#allocation5 + $0x1a0] sm:$0xff]  ;;  %v453_v46 = vld [vmem:[#allocation5 + $0x1b0] sm:$0xff]  ;;  %v5771_v47 = vpack.c.bf16 %v454_v38, %v450_v37  ;;  %v456_v49 = vld [vmem:[#allocation5 + $0x1c8] sm:$0xff] }
  0x50   :  { %3959 = vmatprep.subr.bf16.mxu0 %v5729_v9  ;;  %3821 = vmatmul.mubr.msk.f32.gmra.mrb[8].mxu0 %vm116_vm0, %v82_v15  ;;  %v460_v50 = vld [vmem:[#allocation5 + $0x1e8] sm:$0xff]  ;;  %v5778_v53 = vpack.c.bf16 %v451_v42, %v447_v41  ;;  %v458_v54 = vld [vmem:[#allocation5 + $0x1d8] sm:$0xff]  ;;  %v5782_v57 = vpack.c.bf16 %v453_v46, %v449_v45  ;;  %v455_v58 = vld [vmem:[#allocation5 + $0x1c0] sm:$0xff]  ;;  %v110_v41 = vsub.s32 3, %v5850_v10 }
  0x51   :  { %3991 = vmatprep.subr.bf16.mxu1 %v5733_v12  ;;  %3829 = vmatmul.mubr.msk.f32.gmra.mrb[8].mxu1 %vm116_vm0, %v82_v15  ;;  %v84_v52 = vld [vmem:[%s6667_s0 + $0x30] sm:$0xff]  ;;  %v462_v56 = vld [vmem:[#allocation5 + $0x1f8] sm:$0xff]  ;;  %v459_v60 = vld [vmem:[#allocation5 + $0x1e0] sm:$0xff]  ;;  %v5786_v61 = vpack.c.bf16 %v460_v50, %v456_v49 }
  0x52   :  { %3961 = vmatpush1.bf16.msra.mxu0 %v5740_v16  ;;  %3993 = vmatpush1.bf16.msra.mxu1 %v5744_v20  ;;  %v457_v63 = vld [vmem:[#allocation5 + $0x1d0] sm:$0xff]  ;;  %v5790_v2 = vpack.c.bf16 %v462_v56, %v458_v54  ;;  %v5797_v5 = vpack.c.bf16 %v459_v60, %v455_v58  ;;  %v94_v13 = vld [vmem:[%s6670_s3] sm:$0xf] }
  0x53   :  { %235 = vmatprep.mubr.f32.mxu0 %v5521_v1  ;;  %348 = vmatprep.mubr.f32.mxu1 %v5521_v1  ;;  %v461_v0 = vld [vmem:[#allocation5 + $0x1f0] sm:$0xff]  ;;  %v5859_v15 = vrot.slane %v94_v13, %v98_v11  ;;  %v5863_v17 = vrot.slane %v94_v13, %v102_v14  ;;  %v5870_v37 = vrot.slane %v94_v13, %v106_v21 }
  0x54   :  { %3963 = vmatprep.subr.bf16.mxu0 %v5748_v25  ;;  %3822 = vmatmul.mubr.msk.f32.gmra.mrb[10].mxu0 %vm116_vm0, %v83_v33  ;;  %v85_v4 = vld [vmem:[%s6667_s0 + $0x38] sm:$0xff]  ;;  %v5801_v7 = vpack.c.bf16 %v461_v0, %v457_v63  ;;  %v5876_v45 = vrot.slane %v94_v13, %v110_v41 }
  0x55   :  { %3995 = vmatprep.subr.bf16.mxu1 %v5752_v29  ;;  %3830 = vmatmul.mubr.msk.f32.gmra.mrb[10].mxu1 %vm116_vm0, %v83_v33 }
  0x56   :  { %3965 = vmatpush1.bf16.msra.mxu0 %v5759_v34  ;;  %3997 = vmatpush1.bf16.msra.mxu1 %v5763_v40 }
  0x57   :  { %241 = vmatprep.mubr.f32.mxu0 %v5521_v1  ;;  %354 = vmatprep.mubr.f32.mxu1 %v5521_v1 }
  0x58   :  { %3967 = vmatprep.subr.bf16.mxu0 %v5767_v44  ;;  %3823 = vmatmul.mubr.msk.f32.gmra.mrb[12].mxu0 %vm116_vm0, %v84_v52 }
  0x59   :  { %3999 = vmatprep.subr.bf16.mxu1 %v5771_v47  ;;  %3831 = vmatmul.mubr.msk.f32.gmra.mrb[12].mxu1 %vm116_vm0, %v84_v52 }
  0x5a   :  { %3969 = vmatpush1.bf16.msra.mxu0 %v5778_v53  ;;  %4001 = vmatpush1.bf16.msra.mxu1 %v5782_v57 }
  0x5b   :  { %247 = vmatprep.mubr.f32.mxu0 %v5521_v1  ;;  %360 = vmatprep.mubr.f32.mxu1 %v5521_v1 }
  0x5c   :  { %3971 = vmatprep.subr.bf16.mxu0 %v5786_v61  ;;  %3824 = vmatmul.mubr.msk.f32.gmra.mrb[14].mxu0 %vm116_vm0, %v85_v4 }
  0x5d   :  { %4003 = vmatprep.subr.bf16.mxu1 %v5790_v2  ;;  %3832 = vmatmul.mubr.msk.f32.gmra.mrb[14].mxu1 %vm116_vm0, %v85_v4 }
  0x5e   :  { %3973 = vmatpush1.bf16.msra.mxu0 %v5797_v5  ;;  %4005 = vmatpush1.bf16.msra.mxu1 %v5801_v7 }
  0x5f   :  { %534 = vmatprep.mubr.f32.mxu0 %v5521_v1  ;;  %605 = vmatprep.mubr.f32.mxu1 %v5521_v1 }
  0x60   :  { %4007 = vmatprep.subr.bf16.mxu0 %v5663_v18  ;;  %4039 = vmatprep.subr.bf16.mxu1 %v5665_v22 }
  0x61   :  { %535 = vmatmul.mubr.f32.vlgmr.msra.gmra.mrb[0].mxu0 %v5521_v1  ;;  %606 = vmatmul.mubr.f32.vlgmr.msra.gmra.mrb[0].mxu1 %v5521_v1 }
  0x62   :  { %4009 = vmatpush1.bf16.msra.mxu0 %v5667_v23  ;;  %4041 = vmatpush1.bf16.msra.mxu1 %v5670_v26 }
  0x63   :  { %4011 = vmatprep.subr.bf16.mxu0 %v5674_v30  ;;  %4043 = vmatprep.subr.bf16.mxu1 %v5681_v35 }
  0x64   :  { %712 = vmatprep.mubr.f32.mxu0 %v5521_v1  ;;  %783 = vmatprep.mubr.f32.mxu1 %v5521_v1 }
  0x66   :  { %4013 = vmatpush1.bf16.msra.mxu0 %v5683_v36  ;;  %4045 = vmatpush1.bf16.msra.mxu1 %v5687_v39 }
  0x67   :  { %4015 = vmatprep.subr.bf16.mxu0 %v5691_v43  ;;  %4047 = vmatprep.subr.bf16.mxu1 %v5698_v48 }
  0x6a   :  { %4017 = vmatpush1.bf16.msra.mxu0 %v5702_v51  ;;  %4049 = vmatpush1.bf16.msra.mxu1 %v5706_v55 }
  0x6b   :  { %4019 = vmatprep.subr.bf16.mxu0 %v5710_v59  ;;  %4051 = vmatprep.subr.bf16.mxu1 %v5714_v62 }
  0x6e   :  { %4021 = vmatpush1.bf16.msra.mxu0 %v5721_v3  ;;  %4053 = vmatpush1.bf16.msra.mxu1 %v5725_v6 }
  0x6f   :  { %4023 = vmatprep.subr.bf16.mxu0 %v5729_v9  ;;  %4055 = vmatprep.subr.bf16.mxu1 %v5733_v12 }
  0x72   :  { %4025 = vmatpush1.bf16.msra.mxu0 %v5740_v16  ;;  %4057 = vmatpush1.bf16.msra.mxu1 %v5744_v20 }
  0x73   :  { %4027 = vmatprep.subr.bf16.mxu0 %v5748_v25  ;;  %4059 = vmatprep.subr.bf16.mxu1 %v5752_v29 }
  0x76   :  { %4029 = vmatpush1.bf16.msra.mxu0 %v5759_v34  ;;  %4061 = vmatpush1.bf16.msra.mxu1 %v5763_v40 }
  0x77   :  { %4031 = vmatprep.subr.bf16.mxu0 %v5767_v44  ;;  %4063 = vmatprep.subr.bf16.mxu1 %v5771_v47 }
  0x7a   :  { %4033 = vmatpush1.bf16.msra.mxu0 %v5778_v53  ;;  %4065 = vmatpush1.bf16.msra.mxu1 %v5782_v57 }
  0x7b   :  { %4035 = vmatprep.subr.bf16.mxu0 %v5786_v61  ;;  %4067 = vmatprep.subr.bf16.mxu1 %v5790_v2 }
  0x7e   :  { %4037 = vmatpush1.bf16.msra.mxu0 %v5797_v5  ;;  %4069 = vmatpush1.bf16.msra.mxu1 %v5801_v7 }
  0x7f   :  { %4071 = vmatprep.subr.bf16.mxu0 %v5663_v18  ;;  %4103 = vmatprep.subr.bf16.mxu1 %v5665_v22 }
 0x134   :  { %v536_v19 = vpop.f32.mrb[0].mxu0  ;;  %v607_v27 = vpop.f32.mrb[0].mxu1 }
 0x135   :  { %v5054_v24 = vadd.f32 %v536_v19, %v5859_v15  ;;  %v538_v28 = vpop.f32.mrb[1].mxu0  ;;  %v609_v32 = vpop.f32.mrb[1].mxu1  ;;  %v5070_v42 = vadd.f32 %v607_v27, %v5870_v37 }
 0x136   :  { %v5055_v31 = vadd.f32 %v538_v28, %v5863_v17  ;;  %v5071_v49 = vadd.f32 %v609_v32, %v5876_v45 }
 0x137   :  { %v3833_v33 = vmul.f32 -1.442695, %v5054_v24  ;;  %v3835_v46 = vmul.f32 -1.442695, %v5070_v42 }
 0x138   :  { %v3834_v38 = vmul.f32 -1.442695, %v5055_v31 }
 0x139   :  { %5190 = vpow2.f32 %v3833_v33 }
 0x13a   :  { %5192 = vpow2.f32 %v3834_v38 }
 0x13b   :  { %5194 = vpow2.f32 %v3835_v46 }
 0x13c   :  { %5196 = vtanh.f32 %v5071_v49 }
 0x143   :  { %v5191_v50 = vpop.eup %5190 }
 0x144   :  { %v625_v52 = vadd.f32 1.0, %v5191_v50  ;;  %v5193_v54 = vpop.eup %5192 }
 0x145   :  { %v626_v56 = vadd.f32 1.0, %v5193_v54  ;;  %v5195_v58 = vpop.eup %5194 }
 0x146   :  { %5198 = vrcp.f32 %v625_v52  ;;  %v5197_v60 = vpop.eup %5196  ;;  %v627_v8 = vadd.f32 1.0, %v5195_v58 }
 0x147   :  { %5200 = vrcp.f32 %v626_v56 }
 0x148   :  { %5202 = vrcp.f32 %v627_v8 }
 0x150   :  { %v5199_v63 = vpop.eup %5198 }
 0x151   :  { %v636_v0 = vmul.f32 %v5199_v63, %v5197_v60  ;;  %v5201_v4 = vpop.eup %5200 }
 0x152   :  { %v635_v19 = vmul.f32 0.0, %v5201_v4  ;;  %v5203_v24 = vpop.eup %5202 }
 0x154   :  { %v5879_v13 = vadd.f32 %v636_v0, %v635_v19 }
 0x156   :  { %5204 = vtanh.f32 %v5879_v13 }
 0x160   :  { %v5205_v27 = vpop.eup %5204 }
 0x161   :  { %v5882_v28 = vmul.f32 %v5205_v27, %v5203_v24 }
 0x163   :  { %713 = vmatmul.mubr.f32.vlgmr.msra.gmra.mrb[2].mxu0 %v5882_v28  ;;  %784 = vmatmul.mubr.f32.vlgmr.msra.gmra.mrb[2].mxu1 %v5882_v28 }
 0x164   :  { %4073 = vmatpush1.bf16.msra.mxu0 %v5667_v23  ;;  %4105 = vmatpush1.bf16.msra.mxu1 %v5670_v26 }
 0x165   :  { %4075 = vmatprep.subr.bf16.mxu0 %v5674_v30  ;;  %4107 = vmatprep.subr.bf16.mxu1 %v5681_v35 }
 0x166   :  { %891 = vmatprep.mubr.f32.mxu0 %v5521_v1  ;;  %962 = vmatprep.mubr.f32.mxu1 %v5521_v1 }
 0x168   :  { %4077 = vmatpush1.bf16.msra.mxu0 %v5683_v36  ;;  %4109 = vmatpush1.bf16.msra.mxu1 %v5687_v39 }
 0x169   :  { %4079 = vmatprep.subr.bf16.mxu0 %v5691_v43  ;;  %4111 = vmatprep.subr.bf16.mxu1 %v5698_v48 }
 0x16c   :  { %4081 = vmatpush1.bf16.msra.mxu0 %v5702_v51  ;;  %4113 = vmatpush1.bf16.msra.mxu1 %v5706_v55 }
 0x16d   :  { %4083 = vmatprep.subr.bf16.mxu0 %v5710_v59  ;;  %4115 = vmatprep.subr.bf16.mxu1 %v5714_v62 }
 0x170   :  { %4085 = vmatpush1.bf16.msra.mxu0 %v5721_v3  ;;  %4117 = vmatpush1.bf16.msra.mxu1 %v5725_v6 }
 0x171   :  { %4087 = vmatprep.subr.bf16.mxu0 %v5729_v9  ;;  %4119 = vmatprep.subr.bf16.mxu1 %v5733_v12 }
 0x174   :  { %4089 = vmatpush1.bf16.msra.mxu0 %v5740_v16  ;;  %4121 = vmatpush1.bf16.msra.mxu1 %v5744_v20 }
 0x175   :  { %4091 = vmatprep.subr.bf16.mxu0 %v5748_v25  ;;  %4123 = vmatprep.subr.bf16.mxu1 %v5752_v29 }
 0x178   :  { %4093 = vmatpush1.bf16.msra.mxu0 %v5759_v34  ;;  %4125 = vmatpush1.bf16.msra.mxu1 %v5763_v40 }
 0x179   :  { %4095 = vmatprep.subr.bf16.mxu0 %v5767_v44  ;;  %4127 = vmatprep.subr.bf16.mxu1 %v5771_v47 }
 0x17c   :  { %4097 = vmatpush1.bf16.msra.mxu0 %v5778_v53  ;;  %4129 = vmatpush1.bf16.msra.mxu1 %v5782_v57 }
 0x17d   :  { %4099 = vmatprep.subr.bf16.mxu0 %v5786_v61  ;;  %4131 = vmatprep.subr.bf16.mxu1 %v5790_v2 }
 0x180   :  { %4101 = vmatpush1.bf16.msra.mxu0 %v5797_v5  ;;  %4133 = vmatpush1.bf16.msra.mxu1 %v5801_v7 }
 0x181   :  { %4135 = vmatprep.subr.bf16.mxu0 %v5663_v18  ;;  %4167 = vmatprep.subr.bf16.mxu1 %v5665_v22 }
 0x236   :  { %v714_v31 = vpop.f32.mrb[2].mxu0  ;;  %v785_v32 = vpop.f32.mrb[2].mxu1 }
 0x237   :  { %v5056_v33 = vadd.f32 %v714_v31, %v5859_v15  ;;  %v716_v38 = vpop.f32.mrb[3].mxu0  ;;  %v787_v42 = vpop.f32.mrb[3].mxu1  ;;  %v5072_v52 = vadd.f32 %v785_v32, %v5870_v37 }
 0x238   :  { %v5057_v46 = vadd.f32 %v716_v38, %v5863_v17  ;;  %v5073_v54 = vadd.f32 %v787_v42, %v5876_v45 }
 0x239   :  { %v3836_v49 = vmul.f32 -1.442695, %v5056_v33  ;;  %v3838_v56 = vmul.f32 -1.442695, %v5072_v52 }
 0x23a   :  { %v3837_v50 = vmul.f32 -1.442695, %v5057_v46 }
 0x23b   :  { %5206 = vpow2.f32 %v3836_v49 }
 0x23c   :  { %5208 = vpow2.f32 %v3837_v50 }
 0x23d   :  { %5210 = vtanh.f32 %v5073_v54 }
 0x23e   :  { %5212 = vpow2.f32 %v3838_v56 }
 0x245   :  { %v5207_v58 = vpop.eup %5206 }
 0x246   :  { %v803_v60 = vadd.f32 1.0, %v5207_v58  ;;  %v5209_v63 = vpop.eup %5208 }
 0x247   :  { %v804_v0 = vadd.f32 1.0, %v5209_v63  ;;  %v5211_v4 = vpop.eup %5210 }
 0x248   :  { %5214 = vrcp.f32 %v803_v60  ;;  %v5213_v8 = vpop.eup %5212 }
 0x249   :  { %5216 = vrcp.f32 %v804_v0  ;;  %v805_v31 = vadd.f32 1.0, %v5213_v8 }
 0x24b   :  { %5218 = vrcp.f32 %v805_v31 }
 0x252   :  { %v5215_v19 = vpop.eup %5214 }
 0x253   :  { %v814_v24 = vmul.f32 %v5215_v19, %v5211_v4  ;;  %v5217_v27 = vpop.eup %5216 }
 0x254   :  { %v813_v33 = vmul.f32 %v5217_v27, %v5879_v13 }
 0x255   :  { %v5219_v38 = vpop.eup %5218 }
 0x256   :  { %v5925_v32 = vadd.f32 %v814_v24, %v813_v33 }
 0x258   :  { %5220 = vtanh.f32 %v5925_v32 }
 0x262   :  { %v5221_v42 = vpop.eup %5220 }
 0x263   :  { %v5928_v46 = vmul.f32 %v5221_v42, %v5219_v38 }
 0x265   :  { %892 = vmatmul.mubr.f32.vlgmr.msra.gmra.mrb[4].mxu0 %v5928_v46  ;;  %963 = vmatmul.mubr.f32.vlgmr.msra.gmra.mrb[4].mxu1 %v5928_v46 }
 0x266   :  { %4137 = vmatpush1.bf16.msra.mxu0 %v5667_v23  ;;  %4169 = vmatpush1.bf16.msra.mxu1 %v5670_v26 }
 0x267   :  { %4139 = vmatprep.subr.bf16.mxu0 %v5674_v30  ;;  %4171 = vmatprep.subr.bf16.mxu1 %v5681_v35 }
 0x268   :  { %1070 = vmatprep.mubr.f32.mxu0 %v5521_v1  ;;  %1141 = vmatprep.mubr.f32.mxu1 %v5521_v1 }
 0x26a   :  { %4141 = vmatpush1.bf16.msra.mxu0 %v5683_v36  ;;  %4173 = vmatpush1.bf16.msra.mxu1 %v5687_v39 }
 0x26b   :  { %4143 = vmatprep.subr.bf16.mxu0 %v5691_v43  ;;  %4175 = vmatprep.subr.bf16.mxu1 %v5698_v48 }
 0x26e   :  { %4145 = vmatpush1.bf16.msra.mxu0 %v5702_v51  ;;  %4177 = vmatpush1.bf16.msra.mxu1 %v5706_v55 }
 0x26f   :  { %4147 = vmatprep.subr.bf16.mxu0 %v5710_v59  ;;  %4179 = vmatprep.subr.bf16.mxu1 %v5714_v62 }
 0x272   :  { %4149 = vmatpush1.bf16.msra.mxu0 %v5721_v3  ;;  %4181 = vmatpush1.bf16.msra.mxu1 %v5725_v6 }
 0x273   :  { %4151 = vmatprep.subr.bf16.mxu0 %v5729_v9  ;;  %4183 = vmatprep.subr.bf16.mxu1 %v5733_v12 }
 0x276   :  { %4153 = vmatpush1.bf16.msra.mxu0 %v5740_v16  ;;  %4185 = vmatpush1.bf16.msra.mxu1 %v5744_v20 }
 0x277   :  { %4155 = vmatprep.subr.bf16.mxu0 %v5748_v25  ;;  %4187 = vmatprep.subr.bf16.mxu1 %v5752_v29 }
 0x27a   :  { %4157 = vmatpush1.bf16.msra.mxu0 %v5759_v34  ;;  %4189 = vmatpush1.bf16.msra.mxu1 %v5763_v40 }
 0x27b   :  { %4159 = vmatprep.subr.bf16.mxu0 %v5767_v44  ;;  %4191 = vmatprep.subr.bf16.mxu1 %v5771_v47 }
 0x27e   :  { %4161 = vmatpush1.bf16.msra.mxu0 %v5778_v53  ;;  %4193 = vmatpush1.bf16.msra.mxu1 %v5782_v57 }
 0x27f   :  { %4163 = vmatprep.subr.bf16.mxu0 %v5786_v61  ;;  %4195 = vmatprep.subr.bf16.mxu1 %v5790_v2 }
 0x282   :  { %4165 = vmatpush1.bf16.msra.mxu0 %v5797_v5  ;;  %4197 = vmatpush1.bf16.msra.mxu1 %v5801_v7 }
 0x283   :  { %4199 = vmatprep.subr.bf16.mxu0 %v5663_v18  ;;  %4231 = vmatprep.subr.bf16.mxu1 %v5665_v22 }
 0x338   :  { %v893_v13 = vpop.f32.mrb[4].mxu0  ;;  %v964_v49 = vpop.f32.mrb[4].mxu1 }
 0x339   :  { %v5058_v50 = vadd.f32 %v893_v13, %v5859_v15  ;;  %v895_v52 = vpop.f32.mrb[5].mxu0  ;;  %v966_v54 = vpop.f32.mrb[5].mxu1  ;;  %v5074_v63 = vadd.f32 %v964_v49, %v5870_v37 }
 0x33a   :  { %v5059_v56 = vadd.f32 %v895_v52, %v5863_v17  ;;  %v5075_v0 = vadd.f32 %v966_v54, %v5876_v45 }
 0x33b   :  { %v3839_v58 = vmul.f32 -1.442695, %v5058_v50  ;;  %v3841_v4 = vmul.f32 -1.442695, %v5074_v63 }
 0x33c   :  { %v3840_v60 = vmul.f32 -1.442695, %v5059_v56 }
 0x33d   :  { %5222 = vpow2.f32 %v3839_v58 }
 0x33e   :  { %5224 = vpow2.f32 %v3840_v60 }
 0x33f   :  { %5226 = vtanh.f32 %v5075_v0 }
 0x340   :  { %5228 = vpow2.f32 %v3841_v4 }
 0x347   :  { %v5223_v8 = vpop.eup %5222 }
 0x348   :  { %v982_v19 = vadd.f32 1.0, %v5223_v8  ;;  %v5225_v24 = vpop.eup %5224 }
 0x349   :  { %v983_v27 = vadd.f32 1.0, %v5225_v24  ;;  %v5227_v31 = vpop.eup %5226 }
 0x34a   :  { %5230 = vrcp.f32 %v982_v19  ;;  %v5229_v33 = vpop.eup %5228 }
 0x34b   :  { %5232 = vrcp.f32 %v983_v27  ;;  %v984_v50 = vadd.f32 1.0, %v5229_v33 }
 0x34d   :  { %5234 = vrcp.f32 %v984_v50 }
 0x354   :  { %v5231_v38 = vpop.eup %5230 }
 0x355   :  { %v993_v42 = vmul.f32 %v5231_v38, %v5227_v31  ;;  %v5233_v13 = vpop.eup %5232 }
 0x356   :  { %v992_v52 = vmul.f32 %v5233_v13, %v5925_v32 }
 0x357   :  { %v5235_v54 = vpop.eup %5234 }
 0x358   :  { %v5971_v49 = vadd.f32 %v993_v42, %v992_v52 }
 0x35a   :  { %5236 = vtanh.f32 %v5971_v49 }
 0x364   :  { %v5237_v56 = vpop.eup %5236 }
 0x365   :  { %v5974_v58 = vmul.f32 %v5237_v56, %v5235_v54 }
 0x367   :  { %1071 = vmatmul.mubr.f32.vlgmr.msra.gmra.mrb[6].mxu0 %v5974_v58  ;;  %1142 = vmatmul.mubr.f32.vlgmr.msra.gmra.mrb[6].mxu1 %v5974_v58 }
 0x368   :  { %4201 = vmatpush1.bf16.msra.mxu0 %v5667_v23  ;;  %4233 = vmatpush1.bf16.msra.mxu1 %v5670_v26 }
 0x369   :  { %4203 = vmatprep.subr.bf16.mxu0 %v5674_v30  ;;  %4235 = vmatprep.subr.bf16.mxu1 %v5681_v35 }
 0x36a   :  { %1249 = vmatprep.mubr.f32.mxu0 %v5521_v1  ;;  %1320 = vmatprep.mubr.f32.mxu1 %v5521_v1 }
 0x36c   :  { %4205 = vmatpush1.bf16.msra.mxu0 %v5683_v36  ;;  %4237 = vmatpush1.bf16.msra.mxu1 %v5687_v39 }
 0x36d   :  { %4207 = vmatprep.subr.bf16.mxu0 %v5691_v43  ;;  %4239 = vmatprep.subr.bf16.mxu1 %v5698_v48 }
 0x370   :  { %4209 = vmatpush1.bf16.msra.mxu0 %v5702_v51  ;;  %4241 = vmatpush1.bf16.msra.mxu1 %v5706_v55 }
 0x371   :  { %4211 = vmatprep.subr.bf16.mxu0 %v5710_v59  ;;  %4243 = vmatprep.subr.bf16.mxu1 %v5714_v62 }
 0x374   :  { %4213 = vmatpush1.bf16.msra.mxu0 %v5721_v3  ;;  %4245 = vmatpush1.bf16.msra.mxu1 %v5725_v6 }
 0x375   :  { %4215 = vmatprep.subr.bf16.mxu0 %v5729_v9  ;;  %4247 = vmatprep.subr.bf16.mxu1 %v5733_v12 }
 0x378   :  { %4217 = vmatpush1.bf16.msra.mxu0 %v5740_v16  ;;  %4249 = vmatpush1.bf16.msra.mxu1 %v5744_v20 }
 0x379   :  { %4219 = vmatprep.subr.bf16.mxu0 %v5748_v25  ;;  %4251 = vmatprep.subr.bf16.mxu1 %v5752_v29 }
 0x37c   :  { %4221 = vmatpush1.bf16.msra.mxu0 %v5759_v34  ;;  %4253 = vmatpush1.bf16.msra.mxu1 %v5763_v40 }
 0x37d   :  { %4223 = vmatprep.subr.bf16.mxu0 %v5767_v44  ;;  %4255 = vmatprep.subr.bf16.mxu1 %v5771_v47 }
 0x380   :  { %4225 = vmatpush1.bf16.msra.mxu0 %v5778_v53  ;;  %4257 = vmatpush1.bf16.msra.mxu1 %v5782_v57 }
 0x381   :  { %4227 = vmatprep.subr.bf16.mxu0 %v5786_v61  ;;  %4259 = vmatprep.subr.bf16.mxu1 %v5790_v2 }
 0x384   :  { %4229 = vmatpush1.bf16.msra.mxu0 %v5797_v5  ;;  %4261 = vmatpush1.bf16.msra.mxu1 %v5801_v7 }
 0x385   :  { %4263 = vmatprep.subr.bf16.mxu0 %v5663_v18  ;;  %4295 = vmatprep.subr.bf16.mxu1 %v5665_v22 }
 0x43a   :  { %v1072_v32 = vpop.f32.mrb[6].mxu0  ;;  %v1143_v60 = vpop.f32.mrb[6].mxu1 }
 0x43b   :  { %v5060_v63 = vadd.f32 %v1072_v32, %v5859_v15  ;;  %v1074_v0 = vpop.f32.mrb[7].mxu0  ;;  %v1145_v4 = vpop.f32.mrb[7].mxu1  ;;  %v5076_v27 = vadd.f32 %v1143_v60, %v5870_v37 }
 0x43c   :  { %v5061_v8 = vadd.f32 %v1074_v0, %v5863_v17  ;;  %v5077_v31 = vadd.f32 %v1145_v4, %v5876_v45 }
 0x43d   :  { %v3842_v19 = vmul.f32 -1.442695, %v5060_v63  ;;  %v3844_v33 = vmul.f32 -1.442695, %v5076_v27 }
 0x43e   :  { %v3843_v24 = vmul.f32 -1.442695, %v5061_v8 }
 0x43f   :  { %5238 = vpow2.f32 %v3842_v19 }
 0x440   :  { %5240 = vpow2.f32 %v3843_v24 }
 0x441   :  { %5242 = vtanh.f32 %v5077_v31 }
 0x442   :  { %5244 = vpow2.f32 %v3844_v33 }
 0x449   :  { %v5239_v38 = vpop.eup %5238 }
 0x44a   :  { %v1161_v42 = vadd.f32 1.0, %v5239_v38  ;;  %v5241_v13 = vpop.eup %5240 }
 0x44b   :  { %v1162_v50 = vadd.f32 1.0, %v5241_v13  ;;  %v5243_v52 = vpop.eup %5242 }
 0x44c   :  { %5246 = vrcp.f32 %v1161_v42  ;;  %v5245_v54 = vpop.eup %5244 }
 0x44d   :  { %5248 = vrcp.f32 %v1162_v50  ;;  %v1163_v0 = vadd.f32 1.0, %v5245_v54 }
 0x44f   :  { %5250 = vrcp.f32 %v1163_v0 }
 0x456   :  { %v5247_v56 = vpop.eup %5246 }
 0x457   :  { %v1172_v32 = vmul.f32 %v5247_v56, %v5243_v52  ;;  %v5249_v63 = vpop.eup %5248 }
 0x458   :  { %v1171_v8 = vmul.f32 %v5249_v63, %v5971_v49 }
 0x459   :  { %v5251_v4 = vpop.eup %5250 }
 0x45a   :  { %v6017_v60 = vadd.f32 %v1172_v32, %v1171_v8 }
 0x45c   :  { %5252 = vtanh.f32 %v6017_v60 }
 0x466   :  { %v5253_v19 = vpop.eup %5252 }
 0x467   :  { %v6020_v24 = vmul.f32 %v5253_v19, %v5251_v4 }
 0x469   :  { %1250 = vmatmul.mubr.f32.vlgmr.msra.gmra.mrb[8].mxu0 %v6020_v24  ;;  %1321 = vmatmul.mubr.f32.vlgmr.msra.gmra.mrb[8].mxu1 %v6020_v24 }
 0x46a   :  { %4265 = vmatpush1.bf16.msra.mxu0 %v5667_v23  ;;  %4297 = vmatpush1.bf16.msra.mxu1 %v5670_v26 }
 0x46b   :  { %4267 = vmatprep.subr.bf16.mxu0 %v5674_v30  ;;  %4299 = vmatprep.subr.bf16.mxu1 %v5681_v35 }
 0x46c   :  { %1428 = vmatprep.mubr.f32.mxu0 %v5521_v1  ;;  %1499 = vmatprep.mubr.f32.mxu1 %v5521_v1 }
 0x46e   :  { %4269 = vmatpush1.bf16.msra.mxu0 %v5683_v36  ;;  %4301 = vmatpush1.bf16.msra.mxu1 %v5687_v39 }
 0x46f   :  { %4271 = vmatprep.subr.bf16.mxu0 %v5691_v43  ;;  %4303 = vmatprep.subr.bf16.mxu1 %v5698_v48 }
 0x472   :  { %4273 = vmatpush1.bf16.msra.mxu0 %v5702_v51  ;;  %4305 = vmatpush1.bf16.msra.mxu1 %v5706_v55 }
 0x473   :  { %4275 = vmatprep.subr.bf16.mxu0 %v5710_v59  ;;  %4307 = vmatprep.subr.bf16.mxu1 %v5714_v62 }
 0x476   :  { %4277 = vmatpush1.bf16.msra.mxu0 %v5721_v3  ;;  %4309 = vmatpush1.bf16.msra.mxu1 %v5725_v6 }
 0x477   :  { %4279 = vmatprep.subr.bf16.mxu0 %v5729_v9  ;;  %4311 = vmatprep.subr.bf16.mxu1 %v5733_v12 }
 0x47a   :  { %4281 = vmatpush1.bf16.msra.mxu0 %v5740_v16  ;;  %4313 = vmatpush1.bf16.msra.mxu1 %v5744_v20 }
 0x47b   :  { %4283 = vmatprep.subr.bf16.mxu0 %v5748_v25  ;;  %4315 = vmatprep.subr.bf16.mxu1 %v5752_v29 }
 0x47e   :  { %4285 = vmatpush1.bf16.msra.mxu0 %v5759_v34  ;;  %4317 = vmatpush1.bf16.msra.mxu1 %v5763_v40 }
 0x47f   :  { %4287 = vmatprep.subr.bf16.mxu0 %v5767_v44  ;;  %4319 = vmatprep.subr.bf16.mxu1 %v5771_v47 }
 0x482   :  { %4289 = vmatpush1.bf16.msra.mxu0 %v5778_v53  ;;  %4321 = vmatpush1.bf16.msra.mxu1 %v5782_v57 }
 0x483   :  { %4291 = vmatprep.subr.bf16.mxu0 %v5786_v61  ;;  %4323 = vmatprep.subr.bf16.mxu1 %v5790_v2 }
 0x486   :  { %4293 = vmatpush1.bf16.msra.mxu0 %v5797_v5  ;;  %4325 = vmatpush1.bf16.msra.mxu1 %v5801_v7 }
 0x487   :  { %4327 = vmatprep.subr.bf16.mxu0 %v5663_v18  ;;  %4359 = vmatprep.subr.bf16.mxu1 %v5665_v22 }
 0x53c   :  { %v1251_v49 = vpop.f32.mrb[8].mxu0  ;;  %v1322_v27 = vpop.f32.mrb[8].mxu1 }
 0x53d   :  { %v5062_v31 = vadd.f32 %v1251_v49, %v5859_v15  ;;  %v1253_v33 = vpop.f32.mrb[9].mxu0  ;;  %v1324_v38 = vpop.f32.mrb[9].mxu1  ;;  %v5078_v52 = vadd.f32 %v1322_v27, %v5870_v37 }
 0x53e   :  { %v5063_v42 = vadd.f32 %v1253_v33, %v5863_v17  ;;  %v5079_v54 = vadd.f32 %v1324_v38, %v5876_v45 }
 0x53f   :  { %v3845_v13 = vmul.f32 -1.442695, %v5062_v31  ;;  %v3847_v56 = vmul.f32 -1.442695, %v5078_v52 }
 0x540   :  { %v3846_v50 = vmul.f32 -1.442695, %v5063_v42 }
 0x541   :  { %5254 = vpow2.f32 %v3845_v13 }
 0x542   :  { %5256 = vpow2.f32 %v3846_v50 }
 0x543   :  { %5258 = vtanh.f32 %v5079_v54 }
 0x544   :  { %5260 = vpow2.f32 %v3847_v56 }
 0x54b   :  { %v5255_v32 = vpop.eup %5254 }
 0x54c   :  { %v1340_v63 = vadd.f32 1.0, %v5255_v32  ;;  %v5257_v0 = vpop.eup %5256 }
 0x54d   :  { %v1341_v8 = vadd.f32 1.0, %v5257_v0  ;;  %v5259_v4 = vpop.eup %5258 }
 0x54e   :  { %5262 = vrcp.f32 %v1340_v63  ;;  %v5261_v19 = vpop.eup %5260 }
 0x54f   :  { %5264 = vrcp.f32 %v1341_v8  ;;  %v1342_v42 = vadd.f32 1.0, %v5261_v19 }
 0x551   :  { %5266 = vrcp.f32 %v1342_v42 }
 0x558   :  { %v5263_v49 = vpop.eup %5262 }
 0x559   :  { %v1351_v31 = vmul.f32 %v5263_v49, %v5259_v4  ;;  %v5265_v33 = vpop.eup %5264 }
 0x55a   :  { %v1350_v13 = vmul.f32 %v5265_v33, %v6017_v60 }
 0x55b   :  { %v5267_v38 = vpop.eup %5266 }
 0x55c   :  { %v6063_v27 = vadd.f32 %v1351_v31, %v1350_v13 }
 0x55e   :  { %5268 = vtanh.f32 %v6063_v27 }
 0x568   :  { %v5269_v50 = vpop.eup %5268 }
 0x569   :  { %v6066_v52 = vmul.f32 %v5269_v50, %v5267_v38 }
 0x56b   :  { %1429 = vmatmul.mubr.f32.vlgmr.msra.gmra.mrb[10].mxu0 %v6066_v52  ;;  %1500 = vmatmul.mubr.f32.vlgmr.msra.gmra.mrb[10].mxu1 %v6066_v52 }
 0x56c   :  { %4329 = vmatpush1.bf16.msra.mxu0 %v5667_v23  ;;  %4361 = vmatpush1.bf16.msra.mxu1 %v5670_v26 }
 0x56d   :  { %4331 = vmatprep.subr.bf16.mxu0 %v5674_v30  ;;  %4363 = vmatprep.subr.bf16.mxu1 %v5681_v35 }
 0x56e   :  { %1607 = vmatprep.mubr.f32.mxu0 %v5521_v1  ;;  %1678 = vmatprep.mubr.f32.mxu1 %v5521_v1 }
 0x570   :  { %4333 = vmatpush1.bf16.msra.mxu0 %v5683_v36  ;;  %4365 = vmatpush1.bf16.msra.mxu1 %v5687_v39 }
 0x571   :  { %4335 = vmatprep.subr.bf16.mxu0 %v5691_v43  ;;  %4367 = vmatprep.subr.bf16.mxu1 %v5698_v48 }
 0x574   :  { %4337 = vmatpush1.bf16.msra.mxu0 %v5702_v51  ;;  %4369 = vmatpush1.bf16.msra.mxu1 %v5706_v55 }
 0x575   :  { %4339 = vmatprep.subr.bf16.mxu0 %v5710_v59  ;;  %4371 = vmatprep.subr.bf16.mxu1 %v5714_v62 }
 0x578   :  { %4341 = vmatpush1.bf16.msra.mxu0 %v5721_v3  ;;  %4373 = vmatpush1.bf16.msra.mxu1 %v5725_v6 }
 0x579   :  { %4343 = vmatprep.subr.bf16.mxu0 %v5729_v9  ;;  %4375 = vmatprep.subr.bf16.mxu1 %v5733_v12 }
 0x57c   :  { %4345 = vmatpush1.bf16.msra.mxu0 %v5740_v16  ;;  %4377 = vmatpush1.bf16.msra.mxu1 %v5744_v20 }
 0x57d   :  { %4347 = vmatprep.subr.bf16.mxu0 %v5748_v25  ;;  %4379 = vmatprep.subr.bf16.mxu1 %v5752_v29 }
 0x580   :  { %4349 = vmatpush1.bf16.msra.mxu0 %v5759_v34  ;;  %4381 = vmatpush1.bf16.msra.mxu1 %v5763_v40 }
 0x581   :  { %4351 = vmatprep.subr.bf16.mxu0 %v5767_v44  ;;  %4383 = vmatprep.subr.bf16.mxu1 %v5771_v47 }
 0x584   :  { %4353 = vmatpush1.bf16.msra.mxu0 %v5778_v53  ;;  %4385 = vmatpush1.bf16.msra.mxu1 %v5782_v57 }
 0x585   :  { %4355 = vmatprep.subr.bf16.mxu0 %v5786_v61  ;;  %4387 = vmatprep.subr.bf16.mxu1 %v5790_v2 }
 0x588   :  { %4357 = vmatpush1.bf16.msra.mxu0 %v5797_v5  ;;  %4389 = vmatpush1.bf16.msra.mxu1 %v5801_v7 }
 0x589   :  { %4391 = vmatprep.subr.bf16.mxu0 %v5663_v18  ;;  %4423 = vmatprep.subr.bf16.mxu1 %v5665_v22 }
 0x63e   :  { %v1430_v60 = vpop.f32.mrb[10].mxu0  ;;  %v1501_v54 = vpop.f32.mrb[10].mxu1 }
 0x63f   :  { %v5064_v56 = vadd.f32 %v1430_v60, %v5859_v15  ;;  %v1432_v32 = vpop.f32.mrb[11].mxu0  ;;  %v1503_v63 = vpop.f32.mrb[11].mxu1  ;;  %v5080_v19 = vadd.f32 %v1501_v54, %v5870_v37 }
 0x640   :  { %v5065_v0 = vadd.f32 %v1432_v32, %v5863_v17  ;;  %v5081_v49 = vadd.f32 %v1503_v63, %v5876_v45 }
 0x641   :  { %v3848_v8 = vmul.f32 -1.442695, %v5064_v56  ;;  %v3850_v31 = vmul.f32 -1.442695, %v5080_v19  ;;  %v1904_v19 = vld [vmem:[#allocation7 + $0x10] sm:$0xff] }
 0x642   :  { %v3849_v4 = vmul.f32 -1.442695, %v5065_v0 }
 0x643   :  { %5270 = vpow2.f32 %v3848_v8 }
 0x644   :  { %5272 = vpow2.f32 %v3849_v4 }
 0x645   :  { %5274 = vtanh.f32 %v5081_v49  ;;  %v1908_v49 = vld [vmem:[#allocation7 + $0x30] sm:$0xff] }
 0x646   :  { %5276 = vpow2.f32 %v3850_v31  ;;  %v1911_v31 = vld [vmem:[#allocation7 + $0x48] sm:$0xff] }
 0x64d   :  { %v5271_v18 = vpop.eup %5270 }
 0x64e   :  { %v1519_v33 = vadd.f32 1.0, %v5271_v18  ;;  %v5273_v22 = vpop.eup %5272  ;;  %v1915_v18 = vld [vmem:[#allocation7 + $0x68] sm:$0xff] }
 0x64f   :  { %v1520_v42 = vadd.f32 1.0, %v5273_v22  ;;  %v5275_v13 = vpop.eup %5274  ;;  %v1917_v22 = vld [vmem:[#allocation7 + $0x78] sm:$0xff] }
 0x650   :  { %5278 = vrcp.f32 %v1519_v33  ;;  %v5277_v38 = vpop.eup %5276  ;;  %v1913_v33 = vld [vmem:[#allocation7 + $0x58] sm:$0xff] }
 0x651   :  { %5280 = vrcp.f32 %v1520_v42  ;;  %v1521_v32 = vadd.f32 1.0, %v5277_v38 }
 0x653   :  { %5282 = vrcp.f32 %v1521_v32 }
 0x65a   :  { %v5279_v50 = vpop.eup %5278 }
 0x65b   :  { %v1530_v60 = vmul.f32 %v5279_v50, %v5275_v13  ;;  %v5281_v56 = vpop.eup %5280  ;;  %v4488_v50 = vpack.c.bf16 %v1908_v49, %v1904_v19  ;;  %v1934_v19 = vld [vmem:[#allocation7 + $0x100] sm:$0xff] }
 0x65c   :  { %v1529_v0 = vmul.f32 %v5281_v56, %v6063_v27  ;;  %v1906_v27 = vld [vmem:[#allocation7 + $0x20] sm:$0xff] }
 0x65d   :  { %v5283_v63 = vpop.eup %5282  ;;  %v1914_v56 = vld [vmem:[#allocation7 + $0x60] sm:$0xff] }
 0x65e   :  { %v6109_v54 = vadd.f32 %v1530_v60, %v1529_v0  ;;  %v1910_v60 = vld [vmem:[#allocation7 + $0x40] sm:$0xff]  ;;  %v4458_v0 = vpack.c.bf16 %v1915_v18, %v1911_v31 }
 0x65f   :  { %v1938_v49 = vld [vmem:[#allocation7 + $0x120] sm:$0xff] }
 0x660   :  { %5284 = vtanh.f32 %v6109_v54 }
 0x66a   :  { %v5285_v8 = vpop.eup %5284 }
 0x66b   :  { %v6112_v4 = vmul.f32 %v5285_v8, %v5283_v63  ;;  %v1912_v63 = vld [vmem:[#allocation7 + $0x50] sm:$0xff] }
 0x66c   :  { %v1916_v8 = vld [vmem:[#allocation7 + $0x70] sm:$0xff] }
 0x66d   :  { %1608 = vmatmul.mubr.f32.vlgmr.msra.gmra.mrb[12].mxu0 %v6112_v4  ;;  %1679 = vmatmul.mubr.f32.vlgmr.msra.gmra.mrb[12].mxu1 %v6112_v4 }
 0x66e   :  { %4393 = vmatpush1.bf16.msra.mxu0 %v5667_v23  ;;  %4425 = vmatpush1.bf16.msra.mxu1 %v5670_v26  ;;  %v1903_v23 = vld [vmem:[#allocation7 + $0x8] sm:$0xff] }
 0x66f   :  { %4395 = vmatprep.subr.bf16.mxu0 %v5674_v30  ;;  %4427 = vmatprep.subr.bf16.mxu1 %v5681_v35  ;;  %v1907_v26 = vld [vmem:[#allocation7 + $0x28] sm:$0xff]  ;;  %v1905_v30 = vld [vmem:[#allocation7 + $0x18] sm:$0xff] }
 0x670   :  { %1786 = vmatprep.mubr.f32.mxu0 %v5521_v1  ;;  %1857 = vmatprep.mubr.f32.mxu1 %v5521_v1  ;;  %v4454_v35 = vpack.c.bf16 %v1907_v26, %v1903_v23  ;;  %v1919_v23 = vld [vmem:[#allocation7 + $0x88] sm:$0xff] }
 0x671   :  { %v1923_v26 = vld [vmem:[#allocation7 + $0xa8] sm:$0xff] }
 0x672   :  { %4397 = vmatpush1.bf16.msra.mxu0 %v5683_v36  ;;  %4429 = vmatpush1.bf16.msra.mxu1 %v5687_v39  ;;  %v1909_v36 = vld [vmem:[#allocation7 + $0x38] sm:$0xff] }
 0x673   :  { %4399 = vmatprep.subr.bf16.mxu0 %v5691_v43  ;;  %4431 = vmatprep.subr.bf16.mxu1 %v5698_v48  ;;  %v4486_v39 = vpack.c.bf16 %v1909_v36, %v1905_v30  ;;  %v1921_v30 = vld [vmem:[#allocation7 + $0x98] sm:$0xff]  ;;  %v4460_v36 = vpack.c.bf16 %v1914_v56, %v1910_v60  ;;  %v4472_v60 = vpack.c.bf16 %v1938_v49, %v1934_v19  ;;  %v2248_v49 = vld [vmem:[#allocation9 + $0x10] sm:$0xff] }
 0x676   :  { %4401 = vmatpush1.bf16.msra.mxu0 %v5702_v51  ;;  %4433 = vmatpush1.bf16.msra.mxu1 %v5706_v55 }
 0x677   :  { %4403 = vmatprep.subr.bf16.mxu0 %v5710_v59  ;;  %4435 = vmatprep.subr.bf16.mxu1 %v5714_v62 }
 0x67a   :  { %4405 = vmatpush1.bf16.msra.mxu0 %v5721_v3  ;;  %4437 = vmatpush1.bf16.msra.mxu1 %v5725_v6 }
 0x67b   :  { %4407 = vmatprep.subr.bf16.mxu0 %v5729_v9  ;;  %4439 = vmatprep.subr.bf16.mxu1 %v5733_v12 }
 0x67e   :  { %4409 = vmatpush1.bf16.msra.mxu0 %v5740_v16  ;;  %4441 = vmatpush1.bf16.msra.mxu1 %v5744_v20 }
 0x67f   :  { %4411 = vmatprep.subr.bf16.mxu0 %v5748_v25  ;;  %4443 = vmatprep.subr.bf16.mxu1 %v5752_v29 }
 0x682   :  { %4413 = vmatpush1.bf16.msra.mxu0 %v5759_v34  ;;  %4445 = vmatpush1.bf16.msra.mxu1 %v5763_v40 }
 0x683   :  { %4415 = vmatprep.subr.bf16.mxu0 %v5767_v44  ;;  %4447 = vmatprep.subr.bf16.mxu1 %v5771_v47 }
 0x686   :  { %4417 = vmatpush1.bf16.msra.mxu0 %v5778_v53  ;;  %4449 = vmatpush1.bf16.msra.mxu1 %v5782_v57 }
 0x687   :  { %4419 = vmatprep.subr.bf16.mxu0 %v5786_v61  ;;  %4451 = vmatprep.subr.bf16.mxu1 %v5790_v2 }
 0x68a   :  { %4421 = vmatpush1.bf16.msra.mxu0 %v5797_v5  ;;  %4453 = vmatpush1.bf16.msra.mxu1 %v5801_v7  ;;  %v1902_v7 = vld [vmem:[#allocation7] sm:$0xff] }
 0x68b   :  { %4455 = vmatprep.subr.bf16.mxu0 %v4454_v35  ;;  %4487 = vmatprep.subr.bf16.mxu1 %v4486_v39  ;;  %v4456_v38 = vpack.c.bf16 %v1906_v27, %v1902_v7  ;;  %v1925_v35 = vld [vmem:[#allocation7 + $0xb8] sm:$0xff]  ;;  %v4492_v39 = vpack.c.bf16 %v1916_v8, %v1912_v63 }
 0x740   :  { %v1609_v43 = vpop.f32.mrb[12].mxu0  ;;  %v1680_v48 = vpop.f32.mrb[12].mxu1 }
 0x741   :  { %v5066_v51 = vadd.f32 %v1609_v43, %v5859_v15  ;;  %v1611_v55 = vpop.f32.mrb[13].mxu0  ;;  %v1682_v59 = vpop.f32.mrb[13].mxu1  ;;  %v5082_v9 = vadd.f32 %v1680_v48, %v5870_v37  ;;  %v1918_v43 = vld [vmem:[#allocation7 + $0x80] sm:$0xff] }
 0x742   :  { %v5067_v62 = vadd.f32 %v1611_v55, %v5863_v17  ;;  %v5083_v12 = vadd.f32 %v1682_v59, %v5876_v45  ;;  %v1922_v48 = vld [vmem:[#allocation7 + $0xa0] sm:$0xff]  ;;  %v4494_v55 = vpack.c.bf16 %v1925_v35, %v1921_v30  ;;  %v1920_v59 = vld [vmem:[#allocation7 + $0x90] sm:$0xff]  ;;  %v1951_v30 = vld [vmem:[#allocation7 + $0x188] sm:$0xff] }
 0x743   :  { %v3851_v3 = vmul.f32 -1.442695, %v5066_v51  ;;  %v3853_v16 = vmul.f32 -1.442695, %v5082_v9  ;;  %v4462_v51 = vpack.c.bf16 %v1923_v26, %v1919_v23  ;;  %v1929_v9 = vld [vmem:[#allocation7 + $0xd8] sm:$0xff]  ;;  %v1944_v23 = vld [vmem:[#allocation7 + $0x150] sm:$0xff] }
 0x744   :  { %v3852_v6 = vmul.f32 -1.442695, %v5067_v62  ;;  %v1924_v62 = vld [vmem:[#allocation7 + $0xb0] sm:$0xff]  ;;  %v1955_v35 = vld [vmem:[#allocation7 + $0x1a8] sm:$0xff] }
 0x745   :  { %5286 = vpow2.f32 %v3851_v3  ;;  %v1927_v3 = vld [vmem:[#allocation7 + $0xc8] sm:$0xff]  ;;  %v1948_v26 = vld [vmem:[#allocation7 + $0x170] sm:$0xff] }
 0x746   :  { %5288 = vpow2.f32 %v3852_v6  ;;  %v1931_v6 = vld [vmem:[#allocation7 + $0xe8] sm:$0xff] }
 0x747   :  { %5290 = vtanh.f32 %v5083_v12  ;;  %v1933_v12 = vld [vmem:[#allocation7 + $0xf8] sm:$0xff] }
 0x748   :  { %5292 = vpow2.f32 %v3853_v16  ;;  %v4464_v16 = vpack.c.bf16 %v1922_v48, %v1918_v43  ;;  %v4508_v48 = vpack.c.bf16 %v1948_v26, %v1944_v23  ;;  %v2267_v23 = vld [vmem:[#allocation9 + $0xa8] sm:$0xff]  ;;  %v2265_v26 = vld [vmem:[#allocation9 + $0x98] sm:$0xff] }
 0x74f   :  { %v5287_v20 = vpop.eup %5286 }
 0x750   :  { %v1698_v25 = vadd.f32 1.0, %v5287_v20  ;;  %v5289_v29 = vpop.eup %5288  ;;  %v4496_v20 = vpack.c.bf16 %v1924_v62, %v1920_v59  ;;  %v4478_v59 = vpack.c.bf16 %v1955_v35, %v1951_v30  ;;  %v2269_v35 = vld [vmem:[#allocation9 + $0xb8] sm:$0xff] }
 0x751   :  { %v1699_v34 = vadd.f32 1.0, %v5289_v29  ;;  %v5291_v40 = vpop.eup %5290  ;;  %v1930_v29 = vld [vmem:[#allocation7 + $0xe0] sm:$0xff] }
 0x752   :  { %5294 = vrcp.f32 %v1698_v25  ;;  %v5293_v44 = vpop.eup %5292  ;;  %v1926_v25 = vld [vmem:[#allocation7 + $0xc0] sm:$0xff] }
 0x753   :  { %5296 = vrcp.f32 %v1699_v34  ;;  %v1700_v61 = vadd.f32 1.0, %v5293_v44  ;;  %v4466_v34 = vpack.c.bf16 %v1931_v6, %v1927_v3  ;;  %v1928_v44 = vld [vmem:[#allocation7 + $0xd0] sm:$0xff]  ;;  %v4468_v7 = vpack.c.bf16 %v1930_v29, %v1926_v25 }
 0x754   :  { %v1952_v3 = vld [vmem:[#allocation7 + $0x190] sm:$0xff] }
 0x755   :  { %5298 = vrcp.f32 %v1700_v61  ;;  %v1937_v61 = vld [vmem:[#allocation7 + $0x118] sm:$0xff]  ;;  %v1956_v6 = vld [vmem:[#allocation7 + $0x1b0] sm:$0xff] }
 0x756   :  { %v4512_v29 = vpack.c.bf16 %v1956_v6, %v1952_v3  ;;  %v2275_v3 = vld [vmem:[#allocation9 + $0xe8] sm:$0xff]  ;;  %v2273_v6 = vld [vmem:[#allocation9 + $0xd8] sm:$0xff] }
 0x75c   :  { %v5295_v47 = vpop.eup %5294 }
 0x75d   :  { %v1709_v53 = vmul.f32 %v5295_v47, %v5291_v40  ;;  %v5297_v57 = vpop.eup %5296  ;;  %v4498_v40 = vpack.c.bf16 %v1933_v12, %v1929_v9  ;;  %v1932_v47 = vld [vmem:[#allocation7 + $0xf0] sm:$0xff]  ;;  %v1959_v9 = vld [vmem:[#allocation7 + $0x1c8] sm:$0xff] }
 0x75e   :  { %v1708_v2 = vmul.f32 %v5297_v57, %v6109_v54  ;;  %v4490_v54 = vpack.c.bf16 %v1917_v22, %v1913_v33  ;;  %v1939_v57 = vld [vmem:[#allocation7 + $0x128] sm:$0xff]  ;;  %v4500_v27 = vpack.c.bf16 %v1932_v47, %v1928_v44  ;;  %v1936_v33 = vld [vmem:[#allocation7 + $0x110] sm:$0xff]  ;;  %v1962_v47 = vld [vmem:[#allocation7 + $0x1e0] sm:$0xff] }
 0x75f   :  { %v5299_v42 = vpop.eup %5298  ;;  %v1940_v22 = vld [vmem:[#allocation7 + $0x130] sm:$0xff]  ;;  %v1963_v12 = vld [vmem:[#allocation7 + $0x1e8] sm:$0xff] }
 0x760   :  { %v6153_v5 = vadd.f32 %v1709_v53, %v1708_v2  ;;  %v1935_v53 = vld [vmem:[#allocation7 + $0x108] sm:$0xff]  ;;  %v1941_v2 = vld [vmem:[#allocation7 + $0x138] sm:$0xff]  ;;  %v4504_v56 = vpack.c.bf16 %v1940_v22, %v1936_v33 }
 0x761   :  { %v4470_v31 = vpack.c.bf16 %v1939_v57, %v1935_v53  ;;  %v4502_v18 = vpack.c.bf16 %v1941_v2, %v1937_v61  ;;  %v1960_v53 = vld [vmem:[#allocation7 + $0x1d0] sm:$0xff]  ;;  %v2259_v33 = vld [vmem:[#allocation9 + $0x68] sm:$0xff]  ;;  %v2257_v22 = vld [vmem:[#allocation9 + $0x58] sm:$0xff] }
 0x762   :  { %5300 = vtanh.f32 %v6153_v5  ;;  %v1964_v57 = vld [vmem:[#allocation7 + $0x1f0] sm:$0xff] }
 0x763   :  { %v4516_v2 = vpack.c.bf16 %v1964_v57, %v1960_v53  ;;  %v2283_v53 = vld [vmem:[#allocation9 + $0x128] sm:$0xff]  ;;  %v2281_v57 = vld [vmem:[#allocation9 + $0x118] sm:$0xff] }
 0x76c   :  { %v5301_v13 = vpop.eup %5300 }
 0x76d   :  { %v6156_v32 = vmul.f32 %v5301_v13, %v5299_v42  ;;  %v1943_v42 = vld [vmem:[#allocation7 + $0x148] sm:$0xff] }
 0x76e   :  { %v1947_v13 = vld [vmem:[#allocation7 + $0x168] sm:$0xff] }
 0x76f   :  { %1787 = vmatmul.mubr.f32.vlgmr.msra.gmra.mrb[14].mxu0 %v6156_v32  ;;  %1858 = vmatmul.mubr.f32.vlgmr.msra.gmra.mrb[14].mxu1 %v6156_v32  ;;  %v4474_v63 = vpack.c.bf16 %v1947_v13, %v1943_v42  ;;  %v2261_v13 = vld [vmem:[#allocation9 + $0x78] sm:$0xff] }
 0x770   :  { %4457 = vmatpush1.bf16.msra.mxu0 %v4456_v38  ;;  %4489 = vmatpush1.bf16.msra.mxu1 %v4488_v50  ;;  %v1945_v38 = vld [vmem:[#allocation7 + $0x158] sm:$0xff] }
 0x771   :  { %4459 = vmatprep.subr.bf16.mxu0 %v4458_v0  ;;  %4491 = vmatprep.subr.bf16.mxu1 %v4490_v54  ;;  %v1949_v50 = vld [vmem:[#allocation7 + $0x178] sm:$0xff]  ;;  %v1942_v0 = vld [vmem:[#allocation7 + $0x140] sm:$0xff] }
 0x772   :  { %2052 = vmatprep.mubr.f32.mxu0 %v5521_v1  ;;  %2165 = vmatprep.mubr.f32.mxu1 %v5521_v1  ;;  %v1946_v54 = vld [vmem:[#allocation7 + $0x160] sm:$0xff]  ;;  %v4506_v8 = vpack.c.bf16 %v1949_v50, %v1945_v38 }
 0x773   :  { %v4476_v43 = vpack.c.bf16 %v1946_v54, %v1942_v0  ;;  %v2254_v38 = vld [vmem:[#allocation9 + $0x40] sm:$0xff]  ;;  %v2256_v0 = vld [vmem:[#allocation9 + $0x50] sm:$0xff] }
 0x774   :  { %4461 = vmatpush1.bf16.msra.mxu0 %v4460_v36  ;;  %4493 = vmatpush1.bf16.msra.mxu1 %v4492_v39  ;;  %v1953_v36 = vld [vmem:[#allocation7 + $0x198] sm:$0xff]  ;;  %v2258_v50 = vld [vmem:[#allocation9 + $0x60] sm:$0xff]  ;;  %v2260_v54 = vld [vmem:[#allocation9 + $0x70] sm:$0xff] }
 0x775   :  { %4463 = vmatprep.subr.bf16.mxu0 %v4462_v51  ;;  %4495 = vmatprep.subr.bf16.mxu1 %v4494_v55  ;;  %v1957_v39 = vld [vmem:[#allocation7 + $0x1b8] sm:$0xff]  ;;  %v1950_v51 = vld [vmem:[#allocation7 + $0x180] sm:$0xff] }
 0x776   :  { %v1954_v55 = vld [vmem:[#allocation7 + $0x1a0] sm:$0xff]  ;;  %v4510_v62 = vpack.c.bf16 %v1957_v39, %v1953_v36 }
 0x777   :  { %v4480_v25 = vpack.c.bf16 %v1954_v55, %v1950_v51  ;;  %v2262_v36 = vld [vmem:[#allocation9 + $0x80] sm:$0xff]  ;;  %v2264_v51 = vld [vmem:[#allocation9 + $0x90] sm:$0xff] }
 0x778   :  { %4465 = vmatpush1.bf16.msra.mxu0 %v4464_v16  ;;  %4497 = vmatpush1.bf16.msra.mxu1 %v4496_v20  ;;  %v1961_v16 = vld [vmem:[#allocation7 + $0x1d8] sm:$0xff]  ;;  %v2266_v39 = vld [vmem:[#allocation9 + $0xa0] sm:$0xff]  ;;  %v2268_v55 = vld [vmem:[#allocation9 + $0xb0] sm:$0xff] }
 0x779   :  { %4467 = vmatprep.subr.bf16.mxu0 %v4466_v34  ;;  %4499 = vmatprep.subr.bf16.mxu1 %v4498_v40  ;;  %v1965_v20 = vld [vmem:[#allocation7 + $0x1f8] sm:$0xff]  ;;  %v1958_v34 = vld [vmem:[#allocation7 + $0x1c0] sm:$0xff]  ;;  %v4482_v40 = vpack.c.bf16 %v1963_v12, %v1959_v9 }
 0x77a   :  { %v4514_v44 = vpack.c.bf16 %v1965_v20, %v1961_v16  ;;  %v4484_v61 = vpack.c.bf16 %v1962_v47, %v1958_v34  ;;  %v2277_v12 = vld [vmem:[#allocation9 + $0xf8] sm:$0xff]  ;;  %v2270_v16 = vld [vmem:[#allocation9 + $0xc0] sm:$0xff]  ;;  %v2272_v34 = vld [vmem:[#allocation9 + $0xd0] sm:$0xff] }
 0x77b   :  { %v2274_v20 = vld [vmem:[#allocation9 + $0xe0] sm:$0xff]  ;;  %v2279_v47 = vld [vmem:[#allocation9 + $0x108] sm:$0xff] }
 0x77c   :  { %4469 = vmatpush1.bf16.msra.mxu0 %v4468_v7  ;;  %4501 = vmatpush1.bf16.msra.mxu1 %v4500_v27  ;;  %v2246_v7 = vld [vmem:[#allocation9] sm:$0xff] }
 0x77d   :  { %4471 = vmatprep.subr.bf16.mxu0 %v4470_v31  ;;  %4503 = vmatprep.subr.bf16.mxu1 %v4502_v18  ;;  %v2252_v31 = vld [vmem:[#allocation9 + $0x30] sm:$0xff]  ;;  %v2255_v18 = vld [vmem:[#allocation9 + $0x48] sm:$0xff] }
 0x77e   :  { %v6202_v42 = vpack.c.bf16 %v2259_v33, %v2255_v18  ;;  %v2291_v18 = vld [vmem:[#allocation9 + $0x168] sm:$0xff]  ;;  %v2289_v33 = vld [vmem:[#allocation9 + $0x158] sm:$0xff] }
 0x780   :  { %4473 = vmatpush1.bf16.msra.mxu0 %v4472_v60  ;;  %4505 = vmatpush1.bf16.msra.mxu1 %v4504_v56  ;;  %v6204_v60 = vpack.c.bf16 %v2261_v13, %v2257_v22  ;;  %v6206_v56 = vpack.c.bf16 %v2258_v50, %v2254_v38  ;;  %v2293_v22 = vld [vmem:[#allocation9 + $0x178] sm:$0xff]  ;;  %v2286_v50 = vld [vmem:[#allocation9 + $0x140] sm:$0xff] }
 0x781   :  { %4475 = vmatprep.subr.bf16.mxu0 %v4474_v63  ;;  %4507 = vmatprep.subr.bf16.mxu1 %v4506_v8  ;;  %v6209_v63 = vpack.c.bf16 %v2260_v54, %v2256_v0  ;;  %v2263_v8 = vld [vmem:[#allocation9 + $0x88] sm:$0xff]  ;;  %v6251_v38 = vpack.c.bf16 %v2293_v22, %v2289_v33  ;;  %v2290_v0 = vld [vmem:[#allocation9 + $0x160] sm:$0xff]  ;;  %v2288_v54 = vld [vmem:[#allocation9 + $0x150] sm:$0xff] }
 0x782   :  { %v6214_v30 = vpack.c.bf16 %v2267_v23, %v2263_v8  ;;  %v6254_v8 = vpack.c.bf16 %v2290_v0, %v2286_v50  ;;  %v2292_v23 = vld [vmem:[#allocation9 + $0x170] sm:$0xff] }
 0x784   :  { %4477 = vmatpush1.bf16.msra.mxu0 %v4476_v43  ;;  %4509 = vmatpush1.bf16.msra.mxu1 %v4508_v48  ;;  %v6216_v43 = vpack.c.bf16 %v2269_v35, %v2265_v26  ;;  %v6218_v48 = vpack.c.bf16 %v2266_v39, %v2262_v36  ;;  %v2295_v26 = vld [vmem:[#allocation9 + $0x188] sm:$0xff]  ;;  %v6258_v36 = vpack.c.bf16 %v2292_v23, %v2288_v54 }
 0x785   :  { %4479 = vmatprep.subr.bf16.mxu0 %v4478_v59  ;;  %4511 = vmatprep.subr.bf16.mxu1 %v4510_v62  ;;  %v6221_v59 = vpack.c.bf16 %v2268_v55, %v2264_v51  ;;  %v2271_v62 = vld [vmem:[#allocation9 + $0xc8] sm:$0xff]  ;;  %v2297_v51 = vld [vmem:[#allocation9 + $0x198] sm:$0xff] }
 0x786   :  { %v6226_v9 = vpack.c.bf16 %v2275_v3, %v2271_v62  ;;  %v2299_v35 = vld [vmem:[#allocation9 + $0x1a8] sm:$0xff]  ;;  %v2301_v55 = vld [vmem:[#allocation9 + $0x1b8] sm:$0xff]  ;;  %v2294_v62 = vld [vmem:[#allocation9 + $0x180] sm:$0xff] }
 0x787   :  { %v6260_v39 = vpack.c.bf16 %v2299_v35, %v2295_v26  ;;  %v6262_v3 = vpack.c.bf16 %v2301_v55, %v2297_v51 }
 0x788   :  { %4481 = vmatpush1.bf16.msra.mxu0 %v4480_v25  ;;  %4513 = vmatpush1.bf16.msra.mxu1 %v4512_v29  ;;  %v6228_v25 = vpack.c.bf16 %v2277_v12, %v2273_v6  ;;  %v6230_v29 = vpack.c.bf16 %v2274_v20, %v2270_v16  ;;  %v2298_v6 = vld [vmem:[#allocation9 + $0x1a0] sm:$0xff]  ;;  %v2296_v12 = vld [vmem:[#allocation9 + $0x190] sm:$0xff] }
 0x789   :  { %4483 = vmatprep.subr.bf16.mxu0 %v4482_v40  ;;  %4515 = vmatprep.subr.bf16.mxu1 %v4514_v44  ;;  %v2276_v40 = vld [vmem:[#allocation9 + $0xf0] sm:$0xff]  ;;  %v6265_v20 = vpack.c.bf16 %v2298_v6, %v2294_v62 }
 0x78a   :  { %v6233_v44 = vpack.c.bf16 %v2276_v40, %v2272_v34  ;;  %v2300_v16 = vld [vmem:[#allocation9 + $0x1b0] sm:$0xff]  ;;  %v2303_v40 = vld [vmem:[#allocation9 + $0x1c8] sm:$0xff] }
 0x78b   :  { %v6269_v34 = vpack.c.bf16 %v2300_v16, %v2296_v12 }
 0x78c   :  { %4485 = vmatpush1.bf16.msra.mxu0 %v4484_v61  ;;  %4517 = vmatpush1.bf16.msra.mxu1 %v4516_v2  ;;  %v6238_v61 = vpack.c.bf16 %v2283_v53, %v2279_v47  ;;  %v2285_v2 = vld [vmem:[#allocation9 + $0x138] sm:$0xff]  ;;  %v2307_v47 = vld [vmem:[#allocation9 + $0x1e8] sm:$0xff] }
 0x78d   :  { %v2305_v53 = vld [vmem:[#allocation9 + $0x1d8] sm:$0xff] }
 0x78f   :  { %2053 = vmatmul.mubr.f32.vlgmr.msra.gmra.mrb[16].mxu0 %v5882_v28  ;;  %2166 = vmatmul.mubr.f32.vlgmr.msra.gmra.mrb[16].mxu1 %v5882_v28  ;;  %v2247_v28 = vld [vmem:[#allocation9 + $0x8] sm:$0xff] }
 0x790   :  { %2058 = vmatprep.mubr.f32.mxu0 %v5521_v1  ;;  %2171 = vmatprep.mubr.f32.mxu1 %v5521_v1 }
 0x793   :  { %2059 = vmatmul.mubr.f32.gmra.mrb[18].mxu0 %v5928_v46  ;;  %2172 = vmatmul.mubr.f32.gmra.mrb[18].mxu1 %v5928_v46  ;;  %v2251_v46 = vld [vmem:[#allocation9 + $0x28] sm:$0xff] }
 0x794   :  { %2064 = vmatprep.mubr.f32.mxu0 %v5521_v1  ;;  %2177 = vmatprep.mubr.f32.mxu1 %v5521_v1 }
 0x797   :  { %2065 = vmatmul.mubr.f32.gmra.mrb[20].mxu0 %v5974_v58  ;;  %2178 = vmatmul.mubr.f32.gmra.mrb[20].mxu1 %v5974_v58  ;;  %v2249_v58 = vld [vmem:[#allocation9 + $0x18] sm:$0xff] }
 0x798   :  { %2070 = vmatprep.mubr.f32.mxu0 %v5521_v1  ;;  %2183 = vmatprep.mubr.f32.mxu1 %v5521_v1 }
 0x79b   :  { %2071 = vmatmul.mubr.f32.gmra.mrb[22].mxu0 %v6020_v24  ;;  %2184 = vmatmul.mubr.f32.gmra.mrb[22].mxu1 %v6020_v24  ;;  %v6190_v24 = vpack.c.bf16 %v2251_v46, %v2247_v28  ;;  %v2278_v28 = vld [vmem:[#allocation9 + $0x100] sm:$0xff] }
 0x79c   :  { %2076 = vmatprep.mubr.f32.mxu0 %v5521_v1  ;;  %2189 = vmatprep.mubr.f32.mxu1 %v5521_v1  ;;  %v2282_v46 = vld [vmem:[#allocation9 + $0x120] sm:$0xff] }
 0x79d   :  { %4519 = vmatprep.subr.bf16.mxu0 %v6190_v24 }
 0x79f   :  { %2077 = vmatmul.mubr.f32.gmra.mrb[24].mxu0 %v6066_v52  ;;  %2190 = vmatmul.mubr.f32.gmra.mrb[24].mxu1 %v6066_v52  ;;  %v2253_v52 = vld [vmem:[#allocation9 + $0x38] sm:$0xff] }
 0x7a0   :  { %2082 = vmatprep.mubr.f32.mxu0 %v5521_v1  ;;  %2195 = vmatprep.mubr.f32.mxu1 %v5521_v1  ;;  %v6192_v27 = vpack.c.bf16 %v2253_v52, %v2249_v58  ;;  %v6240_v58 = vpack.c.bf16 %v2285_v2, %v2281_v57  ;;  %v6242_v52 = vpack.c.bf16 %v2282_v46, %v2278_v28  ;;  %v2309_v2 = vld [vmem:[#allocation9 + $0x1f8] sm:$0xff]  ;;  %v2302_v28 = vld [vmem:[#allocation9 + $0x1c0] sm:$0xff] }
 0x7a1   :  { %v6274_v57 = vpack.c.bf16 %v2307_v47, %v2303_v40  ;;  %v2306_v46 = vld [vmem:[#allocation9 + $0x1e0] sm:$0xff] }
 0x7a2   :  { %4551 = vmatprep.subr.bf16.mxu1 %v6192_v27 }
 0x7a3   :  { %2083 = vmatmul.mubr.f32.gmra.mrb[26].mxu0 %v6112_v4  ;;  %2196 = vmatmul.mubr.f32.gmra.mrb[26].mxu1 %v6112_v4  ;;  %v2250_v4 = vld [vmem:[#allocation9 + $0x20] sm:$0xff] }
 0x7a4   :  { %2088 = vmatprep.mubr.f32.mxu0 %v5521_v1  ;;  %2201 = vmatprep.mubr.f32.mxu1 %v5521_v1  ;;  %v6194_v19 = vpack.c.bf16 %v2250_v4, %v2246_v7  ;;  %v2280_v7 = vld [vmem:[#allocation9 + $0x110] sm:$0xff] }
 0x7a5   :  { %v2284_v4 = vld [vmem:[#allocation9 + $0x130] sm:$0xff] }
 0x7a6   :  { %4521 = vmatpush1.bf16.msra.mxu0 %v6194_v19 }
 0x7a7   :  { %2089 = vmatmul.mubr.f32.gmra.mrb[28].mxu0 %v6156_v32  ;;  %2202 = vmatmul.mubr.f32.gmra.mrb[28].mxu1 %v6156_v32  ;;  %v6197_v32 = vpack.c.bf16 %v2252_v31, %v2248_v49  ;;  %v2287_v49 = vld [vmem:[#allocation9 + $0x148] sm:$0xff]  ;;  %v6245_v31 = vpack.c.bf16 %v2284_v4, %v2280_v7  ;;  %v6276_v7 = vpack.c.bf16 %v2309_v2, %v2305_v53 }
 0x7a8   :  { %2094 = vmatprep.mubr.f32.mxu0 %v5521_v1  ;;  %2207 = vmatprep.mubr.f32.mxu1 %v5521_v1  ;;  %v6249_v13 = vpack.c.bf16 %v2291_v18, %v2287_v49  ;;  %v6278_v4 = vpack.c.bf16 %v2306_v46, %v2302_v28  ;;  %v2304_v49 = vld [vmem:[#allocation9 + $0x1d0] sm:$0xff] }
 0x7a9   :  { %4553 = vmatpush1.bf16.msra.mxu1 %v6197_v32  ;;  %4523 = vmatprep.subr.bf16.mxu0 %v6202_v42  ;;  %v2308_v18 = vld [vmem:[#allocation9 + $0x1f0] sm:$0xff] }
 0x7aa   :  { %4555 = vmatprep.subr.bf16.mxu1 %v6204_v60  ;;  %4525 = vmatpush1.bf16.msra.mxu0 %v6206_v56  ;;  %v6281_v33 = vpack.c.bf16 %v2308_v18, %v2304_v49 }
 0x7ab   :  { %4527 = vmatprep.subr.bf16.mxu0 %v6214_v30 }
 0x7ad   :  { %4557 = vmatpush1.bf16.msra.mxu1 %v6209_v63 }
 0x7ae   :  { %4559 = vmatprep.subr.bf16.mxu1 %v6216_v43  ;;  %4529 = vmatpush1.bf16.msra.mxu0 %v6218_v48 }
 0x7af   :  { %4531 = vmatprep.subr.bf16.mxu0 %v6226_v9 }
 0x7b1   :  { %4561 = vmatpush1.bf16.msra.mxu1 %v6221_v59 }
 0x7b2   :  { %4563 = vmatprep.subr.bf16.mxu1 %v6228_v25  ;;  %4533 = vmatpush1.bf16.msra.mxu0 %v6230_v29 }
 0x7b3   :  { %4535 = vmatprep.subr.bf16.mxu0 %v6238_v61 }
 0x7b5   :  { %4565 = vmatpush1.bf16.msra.mxu1 %v6233_v44 }
 0x7b6   :  { %4567 = vmatprep.subr.bf16.mxu1 %v6240_v58  ;;  %4537 = vmatpush1.bf16.msra.mxu0 %v6242_v52 }
 0x7b7   :  { %4539 = vmatprep.subr.bf16.mxu0 %v6249_v13 }
 0x7b9   :  { %4569 = vmatpush1.bf16.msra.mxu1 %v6245_v31 }
 0x7ba   :  { %4571 = vmatprep.subr.bf16.mxu1 %v6251_v38  ;;  %4541 = vmatpush1.bf16.msra.mxu0 %v6254_v8 }
 0x7bb   :  { %4543 = vmatprep.subr.bf16.mxu0 %v6260_v39 }
 0x7bd   :  { %4573 = vmatpush1.bf16.msra.mxu1 %v6258_v36 }
 0x7be   :  { %4575 = vmatprep.subr.bf16.mxu1 %v6262_v3  ;;  %4545 = vmatpush1.bf16.msra.mxu0 %v6265_v20 }
 0x7bf   :  { %4547 = vmatprep.subr.bf16.mxu0 %v6274_v57 }
 0x7c1   :  { %4577 = vmatpush1.bf16.msra.mxu1 %v6269_v34 }
 0x7c2   :  { %4579 = vmatprep.subr.bf16.mxu1 %v6276_v7  ;;  %4549 = vmatpush1.bf16.msra.mxu0 %v6278_v4 }
 0x7c3   :  { %4583 = vmatprep.subr.bf16.mxu0 %v6190_v24 }
 0x7c5   :  { %4581 = vmatpush1.bf16.msra.mxu1 %v6281_v33 }
 0x7c6   :  { %4615 = vmatprep.subr.bf16.mxu1 %v6192_v27 }
 0x842   :  { %v1788_v22 = vpop.f32.mrb[14].mxu0  ;;  %v1859_v50 = vpop.f32.mrb[14].mxu1 }
 0x843   :  { %v5068_v0 = vadd.f32 %v1788_v22, %v5859_v15  ;;  %v1790_v54 = vpop.f32.mrb[15].mxu0  ;;  %v1861_v23 = vpop.f32.mrb[15].mxu1  ;;  %v5084_v55 = vadd.f32 %v1859_v50, %v5870_v37 }
 0x844   :  { %v5069_v26 = vadd.f32 %v1790_v54, %v5863_v17  ;;  %v5085_v62 = vadd.f32 %v1861_v23, %v5876_v45 }
 0x845   :  { %v3854_v35 = vmul.f32 -1.442695, %v5068_v0  ;;  %v3856_v6 = vmul.f32 -1.442695, %v5084_v55 }
 0x846   :  { %v3855_v51 = vmul.f32 -1.442695, %v5069_v26 }
 0x847   :  { %5302 = vpow2.f32 %v3854_v35 }
 0x848   :  { %5304 = vpow2.f32 %v3855_v51 }
 0x849   :  { %5306 = vtanh.f32 %v5085_v62 }
 0x84a   :  { %5308 = vpow2.f32 %v3856_v6 }
 0x851   :  { %v5303_v12 = vpop.eup %5302 }
 0x852   :  { %v1877_v16 = vadd.f32 1.0, %v5303_v12  ;;  %v5305_v40 = vpop.eup %5304 }
 0x853   :  { %v1878_v15 = vadd.f32 1.0, %v5305_v40  ;;  %v5307_v47 = vpop.eup %5306 }
 0x854   :  { %5310 = vrcp.f32 %v1877_v16  ;;  %v5309_v53 = vpop.eup %5308 }
 0x855   :  { %5312 = vrcp.f32 %v1878_v15  ;;  %v1879_v46 = vadd.f32 1.0, %v5309_v53 }
 0x857   :  { %5314 = vrcp.f32 %v1879_v46 }
 0x85e   :  { %v5311_v17 = vpop.eup %5310 }
 0x85f   :  { %v1888_v2 = vmul.f32 %v5311_v17, %v5307_v47  ;;  %v5313_v28 = vpop.eup %5312 }
 0x860   :  { %v1887_v49 = vmul.f32 %v5313_v28, %v6153_v5  ;;  %v1966_v5 = vld [vmem:[%s6673_s6] sm:$0xf] }
 0x861   :  { %v5315_v45 = vpop.eup %5314  ;;  %v6336_v50 = vrot.slane %v1966_v5, %v98_v11  ;;  %v6340_v0 = vrot.slane %v1966_v5, %v102_v14  ;;  %v6346_v12 = vrot.slane %v1966_v5, %v106_v21  ;;  %v6350_v11 = vrot.slane %v1966_v5, %v110_v41 }
 0x862   :  { %v1889_v37 = vadd.f32 %v1888_v2, %v1887_v49 }
 0x864   :  { %5316 = vtanh.f32 %v1889_v37 }
 0x86e   :  { %v5317_v18 = vpop.eup %5316 }
 0x86f   :  { %v1891_v22 = vmul.f32 %v5317_v18, %v5315_v45 }
 0x871   :  { %2095 = vmatmul.mubr.f32.gmra.mrb[30].mxu0 %v1891_v22  ;;  %2208 = vmatmul.mubr.f32.gmra.mrb[30].mxu1 %v1891_v22 }
 0x872   :  { %2378 = vmatprep.mubr.f32.mxu0 %v5521_v1  ;;  %2449 = vmatprep.mubr.f32.mxu1 %v5521_v1 }
 0x875   :  { %2379 = vmatmul.mubr.f32.vlgmr.msra.gmra.mrb[16].mxu0 %v5521_v1  ;;  %2450 = vmatmul.mubr.f32.vlgmr.msra.gmra.mrb[16].mxu1 %v5521_v1 }
 0x876   :  { %4585 = vmatpush1.bf16.msra.mxu0 %v6194_v19  ;;  %4617 = vmatpush1.bf16.msra.mxu1 %v6197_v32 }
 0x877   :  { %4587 = vmatprep.subr.bf16.mxu0 %v6202_v42  ;;  %4619 = vmatprep.subr.bf16.mxu1 %v6204_v60 }
 0x878   :  { %2552 = vmatprep.mubr.f32.mxu0 %v5521_v1  ;;  %2623 = vmatprep.mubr.f32.mxu1 %v5521_v1 }
 0x87a   :  { %4589 = vmatpush1.bf16.msra.mxu0 %v6206_v56  ;;  %4621 = vmatpush1.bf16.msra.mxu1 %v6209_v63 }
 0x87b   :  { %4591 = vmatprep.subr.bf16.mxu0 %v6214_v30  ;;  %4623 = vmatprep.subr.bf16.mxu1 %v6216_v43 }
 0x87e   :  { %4593 = vmatpush1.bf16.msra.mxu0 %v6218_v48  ;;  %4625 = vmatpush1.bf16.msra.mxu1 %v6221_v59 }
 0x87f   :  { %4595 = vmatprep.subr.bf16.mxu0 %v6226_v9  ;;  %4627 = vmatprep.subr.bf16.mxu1 %v6228_v25 }
 0x882   :  { %4597 = vmatpush1.bf16.msra.mxu0 %v6230_v29  ;;  %4629 = vmatpush1.bf16.msra.mxu1 %v6233_v44 }
 0x883   :  { %4599 = vmatprep.subr.bf16.mxu0 %v6238_v61  ;;  %4631 = vmatprep.subr.bf16.mxu1 %v6240_v58 }
 0x886   :  { %4601 = vmatpush1.bf16.msra.mxu0 %v6242_v52  ;;  %4633 = vmatpush1.bf16.msra.mxu1 %v6245_v31 }
 0x887   :  { %4603 = vmatprep.subr.bf16.mxu0 %v6249_v13  ;;  %4635 = vmatprep.subr.bf16.mxu1 %v6251_v38 }
 0x88a   :  { %4605 = vmatpush1.bf16.msra.mxu0 %v6254_v8  ;;  %4637 = vmatpush1.bf16.msra.mxu1 %v6258_v36 }
 0x88b   :  { %4607 = vmatprep.subr.bf16.mxu0 %v6260_v39  ;;  %4639 = vmatprep.subr.bf16.mxu1 %v6262_v3 }
 0x88e   :  { %4609 = vmatpush1.bf16.msra.mxu0 %v6265_v20  ;;  %4641 = vmatpush1.bf16.msra.mxu1 %v6269_v34 }
 0x88f   :  { %4611 = vmatprep.subr.bf16.mxu0 %v6274_v57  ;;  %4643 = vmatprep.subr.bf16.mxu1 %v6276_v7 }
 0x892   :  { %4613 = vmatpush1.bf16.msra.mxu0 %v6278_v4  ;;  %4645 = vmatpush1.bf16.msra.mxu1 %v6281_v33 }
 0x893   :  { %4647 = vmatprep.subr.bf16.mxu0 %v6190_v24  ;;  %4679 = vmatprep.subr.bf16.mxu1 %v6192_v27 }
 0x948   :  { %v2380_v54 = vpop.f32.mrb[16].mxu0  ;;  %v2451_v23 = vpop.f32.mrb[16].mxu1 }
 0x949   :  { %v5086_v26 = vadd.f32 %v2380_v54, %v6336_v50  ;;  %v2382_v35 = vpop.f32.mrb[17].mxu0  ;;  %v2453_v51 = vpop.f32.mrb[17].mxu1  ;;  %v5102_v14 = vadd.f32 %v2451_v23, %v6346_v12 }
 0x94a   :  { %v5087_v55 = vadd.f32 %v2382_v35, %v6340_v0  ;;  %v5103_v16 = vadd.f32 %v2453_v51, %v6350_v11 }
 0x94b   :  { %v3857_v62 = vmul.f32 -1.442695, %v5086_v26  ;;  %v3859_v40 = vmul.f32 -1.442695, %v5102_v14 }
 0x94c   :  { %v3858_v6 = vmul.f32 -1.442695, %v5087_v55 }
 0x94d   :  { %5318 = vpow2.f32 %v3857_v62 }
 0x94e   :  { %5320 = vpow2.f32 %v3858_v6 }
 0x94f   :  { %5322 = vtanh.f32 %v5103_v16 }
 0x950   :  { %5324 = vpow2.f32 %v3859_v40 }
 0x957   :  { %v5319_v15 = vpop.eup %5318 }
 0x958   :  { %v2469_v47 = vadd.f32 1.0, %v5319_v15  ;;  %v5321_v53 = vpop.eup %5320 }
 0x959   :  { %v2470_v17 = vadd.f32 1.0, %v5321_v53  ;;  %v5323_v21 = vpop.eup %5322 }
 0x95a   :  { %5326 = vrcp.f32 %v2469_v47  ;;  %v5325_v2 = vpop.eup %5324 }
 0x95b   :  { %5328 = vrcp.f32 %v2470_v17  ;;  %v2471_v41 = vadd.f32 1.0, %v5325_v2 }
 0x95d   :  { %5330 = vrcp.f32 %v2471_v41 }
 0x964   :  { %v5327_v28 = vpop.eup %5326 }
 0x965   :  { %v2480_v46 = vmul.f32 %v5327_v28, %v5323_v21  ;;  %v5329_v10 = vpop.eup %5328 }
 0x966   :  { %v2479_v49 = vmul.f32 0.0, %v5329_v10 }
 0x967   :  { %v5331_v45 = vpop.eup %5330 }
 0x968   :  { %v6354_v37 = vadd.f32 %v2480_v46, %v2479_v49 }
 0x96a   :  { %5332 = vtanh.f32 %v6354_v37 }
 0x974   :  { %v5333_v18 = vpop.eup %5332 }
 0x975   :  { %v2483_v22 = vmul.f32 %v5333_v18, %v5331_v45 }
 0x977   :  { %2553 = vmatmul.mubr.f32.vlgmr.msra.gmra.mrb[18].mxu0 %v2483_v22  ;;  %2624 = vmatmul.mubr.f32.vlgmr.msra.gmra.mrb[18].mxu1 %v2483_v22 }
 0x978   :  { %4649 = vmatpush1.bf16.msra.mxu0 %v6194_v19  ;;  %4681 = vmatpush1.bf16.msra.mxu1 %v6197_v32 }
 0x979   :  { %4651 = vmatprep.subr.bf16.mxu0 %v6202_v42  ;;  %4683 = vmatprep.subr.bf16.mxu1 %v6204_v60 }
 0x97a   :  { %2726 = vmatprep.mubr.f32.mxu0 %v5521_v1  ;;  %2797 = vmatprep.mubr.f32.mxu1 %v5521_v1 }
 0x97c   :  { %4653 = vmatpush1.bf16.msra.mxu0 %v6206_v56  ;;  %4685 = vmatpush1.bf16.msra.mxu1 %v6209_v63 }
 0x97d   :  { %4655 = vmatprep.subr.bf16.mxu0 %v6214_v30  ;;  %4687 = vmatprep.subr.bf16.mxu1 %v6216_v43 }
 0x980   :  { %4657 = vmatpush1.bf16.msra.mxu0 %v6218_v48  ;;  %4689 = vmatpush1.bf16.msra.mxu1 %v6221_v59 }
 0x981   :  { %4659 = vmatprep.subr.bf16.mxu0 %v6226_v9  ;;  %4691 = vmatprep.subr.bf16.mxu1 %v6228_v25 }
 0x984   :  { %4661 = vmatpush1.bf16.msra.mxu0 %v6230_v29  ;;  %4693 = vmatpush1.bf16.msra.mxu1 %v6233_v44 }
 0x985   :  { %4663 = vmatprep.subr.bf16.mxu0 %v6238_v61  ;;  %4695 = vmatprep.subr.bf16.mxu1 %v6240_v58 }
 0x988   :  { %4665 = vmatpush1.bf16.msra.mxu0 %v6242_v52  ;;  %4697 = vmatpush1.bf16.msra.mxu1 %v6245_v31 }
 0x989   :  { %4667 = vmatprep.subr.bf16.mxu0 %v6249_v13  ;;  %4699 = vmatprep.subr.bf16.mxu1 %v6251_v38 }
 0x98c   :  { %4669 = vmatpush1.bf16.msra.mxu0 %v6254_v8  ;;  %4701 = vmatpush1.bf16.msra.mxu1 %v6258_v36 }
 0x98d   :  { %4671 = vmatprep.subr.bf16.mxu0 %v6260_v39  ;;  %4703 = vmatprep.subr.bf16.mxu1 %v6262_v3 }
 0x990   :  { %4673 = vmatpush1.bf16.msra.mxu0 %v6265_v20  ;;  %4705 = vmatpush1.bf16.msra.mxu1 %v6269_v34 }
 0x991   :  { %4675 = vmatprep.subr.bf16.mxu0 %v6274_v57  ;;  %4707 = vmatprep.subr.bf16.mxu1 %v6276_v7 }
 0x994   :  { %4677 = vmatpush1.bf16.msra.mxu0 %v6278_v4  ;;  %4709 = vmatpush1.bf16.msra.mxu1 %v6281_v33 }
 0x995   :  { %4711 = vmatprep.subr.bf16.mxu0 %v6190_v24  ;;  %4743 = vmatprep.subr.bf16.mxu1 %v6192_v27 }
 0xa4a   :  { %v2554_v5 = vpop.f32.mrb[18].mxu0  ;;  %v2625_v54 = vpop.f32.mrb[18].mxu1 }
 0xa4b   :  { %v5088_v23 = vadd.f32 %v2554_v5, %v6336_v50  ;;  %v2556_v26 = vpop.f32.mrb[19].mxu0  ;;  %v2627_v35 = vpop.f32.mrb[19].mxu1  ;;  %v5104_v6 = vadd.f32 %v2625_v54, %v6346_v12 }
 0xa4c   :  { %v5089_v51 = vadd.f32 %v2556_v26, %v6340_v0  ;;  %v5105_v14 = vadd.f32 %v2627_v35, %v6350_v11 }
 0xa4d   :  { %v3860_v55 = vmul.f32 -1.442695, %v5088_v23  ;;  %v3862_v16 = vmul.f32 -1.442695, %v5104_v6 }
 0xa4e   :  { %v3861_v62 = vmul.f32 -1.442695, %v5089_v51 }
 0xa4f   :  { %5334 = vpow2.f32 %v3860_v55 }
 0xa50   :  { %5336 = vpow2.f32 %v3861_v62 }
 0xa51   :  { %5338 = vtanh.f32 %v5105_v14 }
 0xa52   :  { %5340 = vpow2.f32 %v3862_v16 }
 0xa59   :  { %v5335_v40 = vpop.eup %5334 }
 0xa5a   :  { %v2643_v15 = vadd.f32 1.0, %v5335_v40  ;;  %v5337_v47 = vpop.eup %5336 }
 0xa5b   :  { %v2644_v53 = vadd.f32 1.0, %v5337_v47  ;;  %v5339_v17 = vpop.eup %5338 }
 0xa5c   :  { %5342 = vrcp.f32 %v2643_v15  ;;  %v5341_v21 = vpop.eup %5340 }
 0xa5d   :  { %5344 = vrcp.f32 %v2644_v53  ;;  %v2645_v10 = vadd.f32 1.0, %v5341_v21 }
 0xa5f   :  { %5346 = vrcp.f32 %v2645_v10 }
 0xa66   :  { %v5343_v2 = vpop.eup %5342 }
 0xa67   :  { %v2654_v28 = vmul.f32 %v5343_v2, %v5339_v17  ;;  %v5345_v46 = vpop.eup %5344 }
 0xa68   :  { %v2653_v41 = vmul.f32 %v5345_v46, %v6354_v37 }
 0xa69   :  { %v5347_v45 = vpop.eup %5346 }
 0xa6a   :  { %v6396_v49 = vadd.f32 %v2654_v28, %v2653_v41 }
 0xa6c   :  { %5348 = vtanh.f32 %v6396_v49 }
 0xa76   :  { %v5349_v18 = vpop.eup %5348 }
 0xa77   :  { %v2657_v22 = vmul.f32 %v5349_v18, %v5347_v45 }
 0xa79   :  { %2727 = vmatmul.mubr.f32.vlgmr.msra.gmra.mrb[20].mxu0 %v2657_v22  ;;  %2798 = vmatmul.mubr.f32.vlgmr.msra.gmra.mrb[20].mxu1 %v2657_v22 }
 0xa7a   :  { %4713 = vmatpush1.bf16.msra.mxu0 %v6194_v19  ;;  %4745 = vmatpush1.bf16.msra.mxu1 %v6197_v32 }
 0xa7b   :  { %4715 = vmatprep.subr.bf16.mxu0 %v6202_v42  ;;  %4747 = vmatprep.subr.bf16.mxu1 %v6204_v60 }
 0xa7c   :  { %2900 = vmatprep.mubr.f32.mxu0 %v5521_v1  ;;  %2971 = vmatprep.mubr.f32.mxu1 %v5521_v1 }
 0xa7e   :  { %4717 = vmatpush1.bf16.msra.mxu0 %v6206_v56  ;;  %4749 = vmatpush1.bf16.msra.mxu1 %v6209_v63 }
 0xa7f   :  { %4719 = vmatprep.subr.bf16.mxu0 %v6214_v30  ;;  %4751 = vmatprep.subr.bf16.mxu1 %v6216_v43 }
 0xa82   :  { %4721 = vmatpush1.bf16.msra.mxu0 %v6218_v48  ;;  %4753 = vmatpush1.bf16.msra.mxu1 %v6221_v59 }
 0xa83   :  { %4723 = vmatprep.subr.bf16.mxu0 %v6226_v9  ;;  %4755 = vmatprep.subr.bf16.mxu1 %v6228_v25 }
 0xa86   :  { %4725 = vmatpush1.bf16.msra.mxu0 %v6230_v29  ;;  %4757 = vmatpush1.bf16.msra.mxu1 %v6233_v44 }
 0xa87   :  { %4727 = vmatprep.subr.bf16.mxu0 %v6238_v61  ;;  %4759 = vmatprep.subr.bf16.mxu1 %v6240_v58 }
 0xa8a   :  { %4729 = vmatpush1.bf16.msra.mxu0 %v6242_v52  ;;  %4761 = vmatpush1.bf16.msra.mxu1 %v6245_v31 }
 0xa8b   :  { %4731 = vmatprep.subr.bf16.mxu0 %v6249_v13  ;;  %4763 = vmatprep.subr.bf16.mxu1 %v6251_v38 }
 0xa8e   :  { %4733 = vmatpush1.bf16.msra.mxu0 %v6254_v8  ;;  %4765 = vmatpush1.bf16.msra.mxu1 %v6258_v36 }
 0xa8f   :  { %4735 = vmatprep.subr.bf16.mxu0 %v6260_v39  ;;  %4767 = vmatprep.subr.bf16.mxu1 %v6262_v3 }
 0xa92   :  { %4737 = vmatpush1.bf16.msra.mxu0 %v6265_v20  ;;  %4769 = vmatpush1.bf16.msra.mxu1 %v6269_v34 }
 0xa93   :  { %4739 = vmatprep.subr.bf16.mxu0 %v6274_v57  ;;  %4771 = vmatprep.subr.bf16.mxu1 %v6276_v7 }
 0xa96   :  { %4741 = vmatpush1.bf16.msra.mxu0 %v6278_v4  ;;  %4773 = vmatpush1.bf16.msra.mxu1 %v6281_v33 }
 0xa97   :  { %4775 = vmatprep.subr.bf16.mxu0 %v6190_v24  ;;  %4807 = vmatprep.subr.bf16.mxu1 %v6192_v27 }
 0xb4c   :  { %v2728_v37 = vpop.f32.mrb[20].mxu0  ;;  %v2799_v5 = vpop.f32.mrb[20].mxu1 }
 0xb4d   :  { %v5090_v54 = vadd.f32 %v2728_v37, %v6336_v50  ;;  %v2730_v23 = vpop.f32.mrb[21].mxu0  ;;  %v2801_v26 = vpop.f32.mrb[21].mxu1  ;;  %v5106_v62 = vadd.f32 %v2799_v5, %v6346_v12 }
 0xb4e   :  { %v5091_v35 = vadd.f32 %v2730_v23, %v6340_v0  ;;  %v5107_v6 = vadd.f32 %v2801_v26, %v6350_v11 }
 0xb4f   :  { %v3863_v51 = vmul.f32 -1.442695, %v5090_v54  ;;  %v3865_v14 = vmul.f32 -1.442695, %v5106_v62 }
 0xb50   :  { %v3864_v55 = vmul.f32 -1.442695, %v5091_v35 }
 0xb51   :  { %5350 = vpow2.f32 %v3863_v51 }
 0xb52   :  { %5352 = vpow2.f32 %v3864_v55 }
 0xb53   :  { %5354 = vtanh.f32 %v5107_v6 }
 0xb54   :  { %5356 = vpow2.f32 %v3865_v14 }
 0xb5b   :  { %v5351_v16 = vpop.eup %5350 }
 0xb5c   :  { %v2817_v40 = vadd.f32 1.0, %v5351_v16  ;;  %v5353_v15 = vpop.eup %5352 }
 0xb5d   :  { %v2818_v47 = vadd.f32 1.0, %v5353_v15  ;;  %v5355_v53 = vpop.eup %5354 }
 0xb5e   :  { %5358 = vrcp.f32 %v2817_v40  ;;  %v5357_v17 = vpop.eup %5356 }
 0xb5f   :  { %5360 = vrcp.f32 %v2818_v47  ;;  %v2819_v46 = vadd.f32 1.0, %v5357_v17 }
 0xb61   :  { %5362 = vrcp.f32 %v2819_v46 }
 0xb68   :  { %v5359_v21 = vpop.eup %5358 }
 0xb69   :  { %v2828_v2 = vmul.f32 %v5359_v21, %v5355_v53  ;;  %v5361_v28 = vpop.eup %5360 }
 0xb6a   :  { %v2827_v10 = vmul.f32 %v5361_v28, %v6396_v49 }
 0xb6b   :  { %v5363_v45 = vpop.eup %5362 }
 0xb6c   :  { %v6438_v41 = vadd.f32 %v2828_v2, %v2827_v10 }
 0xb6e   :  { %5364 = vtanh.f32 %v6438_v41 }
 0xb78   :  { %v5365_v18 = vpop.eup %5364 }
 0xb79   :  { %v2831_v22 = vmul.f32 %v5365_v18, %v5363_v45 }
 0xb7b   :  { %2901 = vmatmul.mubr.f32.vlgmr.msra.gmra.mrb[22].mxu0 %v2831_v22  ;;  %2972 = vmatmul.mubr.f32.vlgmr.msra.gmra.mrb[22].mxu1 %v2831_v22 }
 0xb7c   :  { %4777 = vmatpush1.bf16.msra.mxu0 %v6194_v19  ;;  %4809 = vmatpush1.bf16.msra.mxu1 %v6197_v32 }
 0xb7d   :  { %4779 = vmatprep.subr.bf16.mxu0 %v6202_v42  ;;  %4811 = vmatprep.subr.bf16.mxu1 %v6204_v60 }
 0xb7e   :  { %3074 = vmatprep.mubr.f32.mxu0 %v5521_v1  ;;  %3145 = vmatprep.mubr.f32.mxu1 %v5521_v1 }
 0xb80   :  { %4781 = vmatpush1.bf16.msra.mxu0 %v6206_v56  ;;  %4813 = vmatpush1.bf16.msra.mxu1 %v6209_v63 }
 0xb81   :  { %4783 = vmatprep.subr.bf16.mxu0 %v6214_v30  ;;  %4815 = vmatprep.subr.bf16.mxu1 %v6216_v43 }
 0xb84   :  { %4785 = vmatpush1.bf16.msra.mxu0 %v6218_v48  ;;  %4817 = vmatpush1.bf16.msra.mxu1 %v6221_v59 }
 0xb85   :  { %4787 = vmatprep.subr.bf16.mxu0 %v6226_v9  ;;  %4819 = vmatprep.subr.bf16.mxu1 %v6228_v25 }
 0xb88   :  { %4789 = vmatpush1.bf16.msra.mxu0 %v6230_v29  ;;  %4821 = vmatpush1.bf16.msra.mxu1 %v6233_v44 }
 0xb89   :  { %4791 = vmatprep.subr.bf16.mxu0 %v6238_v61  ;;  %4823 = vmatprep.subr.bf16.mxu1 %v6240_v58 }
 0xb8c   :  { %4793 = vmatpush1.bf16.msra.mxu0 %v6242_v52  ;;  %4825 = vmatpush1.bf16.msra.mxu1 %v6245_v31 }
 0xb8d   :  { %4795 = vmatprep.subr.bf16.mxu0 %v6249_v13  ;;  %4827 = vmatprep.subr.bf16.mxu1 %v6251_v38 }
 0xb90   :  { %4797 = vmatpush1.bf16.msra.mxu0 %v6254_v8  ;;  %4829 = vmatpush1.bf16.msra.mxu1 %v6258_v36 }
 0xb91   :  { %4799 = vmatprep.subr.bf16.mxu0 %v6260_v39  ;;  %4831 = vmatprep.subr.bf16.mxu1 %v6262_v3 }
 0xb94   :  { %4801 = vmatpush1.bf16.msra.mxu0 %v6265_v20  ;;  %4833 = vmatpush1.bf16.msra.mxu1 %v6269_v34 }
 0xb95   :  { %4803 = vmatprep.subr.bf16.mxu0 %v6274_v57  ;;  %4835 = vmatprep.subr.bf16.mxu1 %v6276_v7 }
 0xb98   :  { %4805 = vmatpush1.bf16.msra.mxu0 %v6278_v4  ;;  %4837 = vmatpush1.bf16.msra.mxu1 %v6281_v33 }
 0xb99   :  { %4839 = vmatprep.subr.bf16.mxu0 %v6190_v24  ;;  %4871 = vmatprep.subr.bf16.mxu1 %v6192_v27 }
 0xc4e   :  { %v2902_v49 = vpop.f32.mrb[22].mxu0  ;;  %v2973_v37 = vpop.f32.mrb[22].mxu1 }
 0xc4f   :  { %v5092_v5 = vadd.f32 %v2902_v49, %v6336_v50  ;;  %v2904_v54 = vpop.f32.mrb[23].mxu0  ;;  %v2975_v23 = vpop.f32.mrb[23].mxu1  ;;  %v5108_v55 = vadd.f32 %v2973_v37, %v6346_v12 }
 0xc50   :  { %v5093_v26 = vadd.f32 %v2904_v54, %v6340_v0  ;;  %v5109_v62 = vadd.f32 %v2975_v23, %v6350_v11 }
 0xc51   :  { %v3866_v35 = vmul.f32 -1.442695, %v5092_v5  ;;  %v3868_v6 = vmul.f32 -1.442695, %v5108_v55 }
 0xc52   :  { %v3867_v51 = vmul.f32 -1.442695, %v5093_v26 }
 0xc53   :  { %5366 = vpow2.f32 %v3866_v35 }
 0xc54   :  { %5368 = vpow2.f32 %v3867_v51 }
 0xc55   :  { %5370 = vtanh.f32 %v5109_v62 }
 0xc56   :  { %5372 = vpow2.f32 %v3868_v6 }
 0xc5d   :  { %v5367_v14 = vpop.eup %5366 }
 0xc5e   :  { %v2991_v16 = vadd.f32 1.0, %v5367_v14  ;;  %v5369_v40 = vpop.eup %5368 }
 0xc5f   :  { %v2992_v15 = vadd.f32 1.0, %v5369_v40  ;;  %v5371_v47 = vpop.eup %5370 }
 0xc60   :  { %5374 = vrcp.f32 %v2991_v16  ;;  %v5373_v53 = vpop.eup %5372 }
 0xc61   :  { %5376 = vrcp.f32 %v2992_v15  ;;  %v2993_v28 = vadd.f32 1.0, %v5373_v53 }
 0xc63   :  { %5378 = vrcp.f32 %v2993_v28 }
 0xc6a   :  { %v5375_v17 = vpop.eup %5374 }
 0xc6b   :  { %v3002_v21 = vmul.f32 %v5375_v17, %v5371_v47  ;;  %v5377_v2 = vpop.eup %5376 }
 0xc6c   :  { %v3001_v46 = vmul.f32 %v5377_v2, %v6438_v41 }
 0xc6d   :  { %v5379_v45 = vpop.eup %5378 }
 0xc6e   :  { %v6480_v10 = vadd.f32 %v3002_v21, %v3001_v46 }
 0xc70   :  { %5380 = vtanh.f32 %v6480_v10 }
 0xc7a   :  { %v5381_v18 = vpop.eup %5380 }
 0xc7b   :  { %v3005_v22 = vmul.f32 %v5381_v18, %v5379_v45 }
 0xc7d   :  { %3075 = vmatmul.mubr.f32.vlgmr.msra.gmra.mrb[24].mxu0 %v3005_v22  ;;  %3146 = vmatmul.mubr.f32.vlgmr.msra.gmra.mrb[24].mxu1 %v3005_v22 }
 0xc7e   :  { %4841 = vmatpush1.bf16.msra.mxu0 %v6194_v19  ;;  %4873 = vmatpush1.bf16.msra.mxu1 %v6197_v32 }
 0xc7f   :  { %4843 = vmatprep.subr.bf16.mxu0 %v6202_v42  ;;  %4875 = vmatprep.subr.bf16.mxu1 %v6204_v60 }
 0xc80   :  { %3248 = vmatprep.mubr.f32.mxu0 %v5521_v1  ;;  %3319 = vmatprep.mubr.f32.mxu1 %v5521_v1 }
 0xc82   :  { %4845 = vmatpush1.bf16.msra.mxu0 %v6206_v56  ;;  %4877 = vmatpush1.bf16.msra.mxu1 %v6209_v63 }
 0xc83   :  { %4847 = vmatprep.subr.bf16.mxu0 %v6214_v30  ;;  %4879 = vmatprep.subr.bf16.mxu1 %v6216_v43 }
 0xc86   :  { %4849 = vmatpush1.bf16.msra.mxu0 %v6218_v48  ;;  %4881 = vmatpush1.bf16.msra.mxu1 %v6221_v59 }
 0xc87   :  { %4851 = vmatprep.subr.bf16.mxu0 %v6226_v9  ;;  %4883 = vmatprep.subr.bf16.mxu1 %v6228_v25 }
 0xc8a   :  { %4853 = vmatpush1.bf16.msra.mxu0 %v6230_v29  ;;  %4885 = vmatpush1.bf16.msra.mxu1 %v6233_v44 }
 0xc8b   :  { %4855 = vmatprep.subr.bf16.mxu0 %v6238_v61  ;;  %4887 = vmatprep.subr.bf16.mxu1 %v6240_v58 }
 0xc8e   :  { %4857 = vmatpush1.bf16.msra.mxu0 %v6242_v52  ;;  %4889 = vmatpush1.bf16.msra.mxu1 %v6245_v31 }
 0xc8f   :  { %4859 = vmatprep.subr.bf16.mxu0 %v6249_v13  ;;  %4891 = vmatprep.subr.bf16.mxu1 %v6251_v38 }
 0xc92   :  { %4861 = vmatpush1.bf16.msra.mxu0 %v6254_v8  ;;  %4893 = vmatpush1.bf16.msra.mxu1 %v6258_v36 }
 0xc93   :  { %4863 = vmatprep.subr.bf16.mxu0 %v6260_v39  ;;  %4895 = vmatprep.subr.bf16.mxu1 %v6262_v3 }
 0xc96   :  { %4865 = vmatpush1.bf16.msra.mxu0 %v6265_v20  ;;  %4897 = vmatpush1.bf16.msra.mxu1 %v6269_v34 }
 0xc97   :  { %4867 = vmatprep.subr.bf16.mxu0 %v6274_v57  ;;  %4899 = vmatprep.subr.bf16.mxu1 %v6276_v7 }
 0xc9a   :  { %4869 = vmatpush1.bf16.msra.mxu0 %v6278_v4  ;;  %4901 = vmatpush1.bf16.msra.mxu1 %v6281_v33 }
 0xc9b   :  { %4903 = vmatprep.subr.bf16.mxu0 %v6190_v24  ;;  %4935 = vmatprep.subr.bf16.mxu1 %v6192_v27 }
 0xd50   :  { %v3076_v41 = vpop.f32.mrb[24].mxu0  ;;  %v3147_v49 = vpop.f32.mrb[24].mxu1 }
 0xd51   :  { %v5094_v37 = vadd.f32 %v3076_v41, %v6336_v50  ;;  %v3078_v5 = vpop.f32.mrb[25].mxu0  ;;  %v3149_v54 = vpop.f32.mrb[25].mxu1  ;;  %v5110_v51 = vadd.f32 %v3147_v49, %v6346_v12 }
 0xd52   :  { %v5095_v23 = vadd.f32 %v3078_v5, %v6340_v0  ;;  %v5111_v55 = vadd.f32 %v3149_v54, %v6350_v11 }
 0xd53   :  { %v3869_v26 = vmul.f32 -1.442695, %v5094_v37  ;;  %v3871_v62 = vmul.f32 -1.442695, %v5110_v51 }
 0xd54   :  { %v3870_v35 = vmul.f32 -1.442695, %v5095_v23 }
 0xd55   :  { %5382 = vpow2.f32 %v3869_v26 }
 0xd56   :  { %5384 = vpow2.f32 %v3870_v35 }
 0xd57   :  { %5386 = vtanh.f32 %v5111_v55 }
 0xd58   :  { %5388 = vpow2.f32 %v3871_v62 }
 0xd5f   :  { %v5383_v6 = vpop.eup %5382 }
 0xd60   :  { %v3165_v14 = vadd.f32 1.0, %v5383_v6  ;;  %v5385_v16 = vpop.eup %5384 }
 0xd61   :  { %v3166_v40 = vadd.f32 1.0, %v5385_v16  ;;  %v5387_v15 = vpop.eup %5386 }
 0xd62   :  { %5390 = vrcp.f32 %v3165_v14  ;;  %v5389_v47 = vpop.eup %5388 }
 0xd63   :  { %5392 = vrcp.f32 %v3166_v40  ;;  %v3167_v2 = vadd.f32 1.0, %v5389_v47 }
 0xd65   :  { %5394 = vrcp.f32 %v3167_v2 }
 0xd6c   :  { %v5391_v53 = vpop.eup %5390 }
 0xd6d   :  { %v3176_v17 = vmul.f32 %v5391_v53, %v5387_v15  ;;  %v5393_v21 = vpop.eup %5392 }
 0xd6e   :  { %v3175_v28 = vmul.f32 %v5393_v21, %v6480_v10 }
 0xd6f   :  { %v5395_v45 = vpop.eup %5394 }
 0xd70   :  { %v6522_v46 = vadd.f32 %v3176_v17, %v3175_v28 }
 0xd72   :  { %5396 = vtanh.f32 %v6522_v46 }
 0xd7c   :  { %v5397_v18 = vpop.eup %5396 }
 0xd7d   :  { %v3179_v22 = vmul.f32 %v5397_v18, %v5395_v45  ;;  %v3705_v18 = vld [vmem:[%s6675_s8 + $0x18] sm:$0xff] }
 0xd7f   :  { %3249 = vmatmul.mubr.f32.vlgmr.msra.gmra.mrb[26].mxu0 %v3179_v22  ;;  %3320 = vmatmul.mubr.f32.vlgmr.msra.gmra.mrb[26].mxu1 %v3179_v22 }
 0xd80   :  { %4905 = vmatpush1.bf16.msra.mxu0 %v6194_v19  ;;  %4937 = vmatpush1.bf16.msra.mxu1 %v6197_v32 }
 0xd81   :  { %4907 = vmatprep.subr.bf16.mxu0 %v6202_v42  ;;  %4939 = vmatprep.subr.bf16.mxu1 %v6204_v60 }
 0xd82   :  { %3422 = vmatprep.mubr.f32.mxu0 %v5521_v1  ;;  %3493 = vmatprep.mubr.f32.mxu1 %v5521_v1 }
 0xd84   :  { %4909 = vmatpush1.bf16.msra.mxu0 %v6206_v56  ;;  %4941 = vmatpush1.bf16.msra.mxu1 %v6209_v63 }
 0xd85   :  { %4911 = vmatprep.subr.bf16.mxu0 %v6214_v30  ;;  %4943 = vmatprep.subr.bf16.mxu1 %v6216_v43 }
 0xd88   :  { %4913 = vmatpush1.bf16.msra.mxu0 %v6218_v48  ;;  %4945 = vmatpush1.bf16.msra.mxu1 %v6221_v59 }
 0xd89   :  { %4915 = vmatprep.subr.bf16.mxu0 %v6226_v9  ;;  %4947 = vmatprep.subr.bf16.mxu1 %v6228_v25 }
 0xd8c   :  { %4917 = vmatpush1.bf16.msra.mxu0 %v6230_v29  ;;  %4949 = vmatpush1.bf16.msra.mxu1 %v6233_v44 }
 0xd8d   :  { %4919 = vmatprep.subr.bf16.mxu0 %v6238_v61  ;;  %4951 = vmatprep.subr.bf16.mxu1 %v6240_v58 }
 0xd90   :  { %4921 = vmatpush1.bf16.msra.mxu0 %v6242_v52  ;;  %4953 = vmatpush1.bf16.msra.mxu1 %v6245_v31 }
 0xd91   :  { %4923 = vmatprep.subr.bf16.mxu0 %v6249_v13  ;;  %4955 = vmatprep.subr.bf16.mxu1 %v6251_v38 }
 0xd94   :  { %4925 = vmatpush1.bf16.msra.mxu0 %v6254_v8  ;;  %4957 = vmatpush1.bf16.msra.mxu1 %v6258_v36 }
 0xd95   :  { %4927 = vmatprep.subr.bf16.mxu0 %v6260_v39  ;;  %4959 = vmatprep.subr.bf16.mxu1 %v6262_v3 }
 0xd98   :  { %4929 = vmatpush1.bf16.msra.mxu0 %v6265_v20  ;;  %4961 = vmatpush1.bf16.msra.mxu1 %v6269_v34 }
 0xd99   :  { %4931 = vmatprep.subr.bf16.mxu0 %v6274_v57  ;;  %4963 = vmatprep.subr.bf16.mxu1 %v6276_v7 }
 0xd9c   :  { %4933 = vmatpush1.bf16.msra.mxu0 %v6278_v4  ;;  %4965 = vmatpush1.bf16.msra.mxu1 %v6281_v33 }
 0xd9d   :  { %4967 = vmatprep.subr.bf16.mxu0 %v6190_v24  ;;  %4999 = vmatprep.subr.bf16.mxu1 %v6192_v27 }
 0xe52   :  { %v3250_v10 = vpop.f32.mrb[26].mxu0  ;;  %v3321_v41 = vpop.f32.mrb[26].mxu1 }
 0xe53   :  { %v5096_v49 = vadd.f32 %v3250_v10, %v6336_v50  ;;  %v3252_v37 = vpop.f32.mrb[27].mxu0  ;;  %v3323_v5 = vpop.f32.mrb[27].mxu1  ;;  %v5112_v35 = vadd.f32 %v3321_v41, %v6346_v12  ;;  %v3706_v10 = vld [vmem:[%s6675_s8 + $0x20] sm:$0xff]  ;;  %v3707_v41 = vld [vmem:[%s6675_s8 + $0x28] sm:$0xff] }
 0xe54   :  { %v5097_v54 = vadd.f32 %v3252_v37, %v6340_v0  ;;  %v5113_v51 = vadd.f32 %v3323_v5, %v6350_v11  ;;  %v3708_v37 = vld [vmem:[%s6675_s8 + $0x30] sm:$0xff]  ;;  %v3709_v5 = vld [vmem:[%s6675_s8 + $0x38] sm:$0xff] }
 0xe55   :  { %v3872_v23 = vmul.f32 -1.442695, %v5096_v49  ;;  %v3874_v55 = vmul.f32 -1.442695, %v5112_v35  ;;  %v5037_v49 = vpack.c.bf16 %v3707_v41, %v3706_v10 }
 0xe56   :  { %v3873_v26 = vmul.f32 -1.442695, %v5097_v54  ;;  %v5040_v54 = vpack.c.bf16 %v3709_v5, %v3708_v37 }
 0xe57   :  { %5398 = vpow2.f32 %v3872_v23  ;;  %v3710_v23 = vld [vmem:[%s6675_s8 + $0x40] sm:$0xff] }
 0xe58   :  { %5400 = vpow2.f32 %v3873_v26  ;;  %v3711_v26 = vld [vmem:[%s6675_s8 + $0x48] sm:$0xff] }
 0xe59   :  { %5402 = vtanh.f32 %v5113_v51  ;;  %v5043_v35 = vpack.c.bf16 %v3711_v26, %v3710_v23  ;;  %v3712_v51 = vld [vmem:[%s6675_s8 + $0x50] sm:$0xff] }
 0xe5a   :  { %5404 = vpow2.f32 %v3874_v55  ;;  %v3713_v55 = vld [vmem:[%s6675_s8 + $0x58] sm:$0xff] }
 0xe61   :  { %v5399_v24 = vpop.eup %5398 }
 0xe62   :  { %v3339_v62 = vadd.f32 1.0, %v5399_v24  ;;  %v5401_v27 = vpop.eup %5400  ;;  %v5046_v24 = vpack.c.bf16 %v3713_v55, %v3712_v51 }
 0xe63   :  { %v3340_v6 = vadd.f32 1.0, %v5401_v27  ;;  %v5403_v14 = vpop.eup %5402  ;;  %v3715_v27 = vld [vmem:[%s6675_s8 + $0x68] sm:$0xff] }
 0xe64   :  { %5406 = vrcp.f32 %v3339_v62  ;;  %v5405_v16 = vpop.eup %5404  ;;  %v3714_v62 = vld [vmem:[%s6675_s8 + $0x60] sm:$0xff] }
 0xe65   :  { %5408 = vrcp.f32 %v3340_v6  ;;  %v3341_v53 = vadd.f32 1.0, %v5405_v16  ;;  %v5049_v6 = vpack.c.bf16 %v3715_v27, %v3714_v62  ;;  %v3717_v16 = vld [vmem:[%s6675_s8 + $0x78] sm:$0xff] }
 0xe67   :  { %5410 = vrcp.f32 %v3341_v53 }
 0xe6e   :  { %v5407_v40 = vpop.eup %5406 }
 0xe6f   :  { %v3350_v15 = vmul.f32 %v5407_v40, %v5403_v14  ;;  %v5409_v47 = vpop.eup %5408  ;;  %v3716_v14 = vld [vmem:[%s6675_s8 + $0x70] sm:$0xff] }
 0xe70   :  { %v3349_v17 = vmul.f32 %v5409_v47, %v6522_v46  ;;  %v3704_v46 = vld [vmem:[%s6675_s8 + $0x10] sm:$0xff]  ;;  %v5052_v40 = vpack.c.bf16 %v3717_v16, %v3716_v14 }
 0xe71   :  { %v5411_v2 = vpop.eup %5410  ;;  %v5034_v22 = vpack.c.bf16 %v3705_v18, %v3704_v46 }
 0xe72   :  { %v6564_v21 = vadd.f32 %v3350_v15, %v3349_v17 }
 0xe74   :  { %5412 = vtanh.f32 %v6564_v21 }
 0xe7e   :  { %v5413_v28 = vpop.eup %5412 }
 0xe7f   :  { %v3353_v45 = vmul.f32 %v5413_v28, %v5411_v2 }
 0xe81   :  { %3423 = vmatmul.mubr.f32.vlgmr.msra.gmra.mrb[28].mxu0 %v3353_v45  ;;  %3494 = vmatmul.mubr.f32.vlgmr.msra.gmra.mrb[28].mxu1 %v3353_v45 }
 0xe82   :  { %4969 = vmatpush1.bf16.msra.mxu0 %v6194_v19  ;;  %5001 = vmatpush1.bf16.msra.mxu1 %v6197_v32 }
 0xe83   :  { %4971 = vmatprep.subr.bf16.mxu0 %v6202_v42  ;;  %5003 = vmatprep.subr.bf16.mxu1 %v6204_v60 }
 0xe84   :  { %3596 = vmatprep.mubr.f32.mxu0 %v5521_v1  ;;  %3667 = vmatprep.mubr.f32.mxu1 %v5521_v1 }
 0xe86   :  { %4973 = vmatpush1.bf16.msra.mxu0 %v6206_v56  ;;  %5005 = vmatpush1.bf16.msra.mxu1 %v6209_v63 }
 0xe87   :  { %4975 = vmatprep.subr.bf16.mxu0 %v6214_v30  ;;  %5007 = vmatprep.subr.bf16.mxu1 %v6216_v43 }
 0xe8a   :  { %4977 = vmatpush1.bf16.msra.mxu0 %v6218_v48  ;;  %5009 = vmatpush1.bf16.msra.mxu1 %v6221_v59 }
 0xe8b   :  { %4979 = vmatprep.subr.bf16.mxu0 %v6226_v9  ;;  %5011 = vmatprep.subr.bf16.mxu1 %v6228_v25 }
 0xe8e   :  { %4981 = vmatpush1.bf16.msra.mxu0 %v6230_v29  ;;  %5013 = vmatpush1.bf16.msra.mxu1 %v6233_v44 }
 0xe8f   :  { %4983 = vmatprep.subr.bf16.mxu0 %v6238_v61  ;;  %5015 = vmatprep.subr.bf16.mxu1 %v6240_v58 }
 0xe92   :  { %4985 = vmatpush1.bf16.msra.mxu0 %v6242_v52  ;;  %5017 = vmatpush1.bf16.msra.mxu1 %v6245_v31 }
 0xe93   :  { %4987 = vmatprep.subr.bf16.mxu0 %v6249_v13  ;;  %5019 = vmatprep.subr.bf16.mxu1 %v6251_v38 }
 0xe96   :  { %4989 = vmatpush1.bf16.msra.mxu0 %v6254_v8  ;;  %5021 = vmatpush1.bf16.msra.mxu1 %v6258_v36 }
 0xe97   :  { %4991 = vmatprep.subr.bf16.mxu0 %v6260_v39  ;;  %5023 = vmatprep.subr.bf16.mxu1 %v6262_v3 }
 0xe9a   :  { %4993 = vmatpush1.bf16.msra.mxu0 %v6265_v20  ;;  %5025 = vmatpush1.bf16.msra.mxu1 %v6269_v34 }
 0xe9b   :  { %4995 = vmatprep.subr.bf16.mxu0 %v6274_v57  ;;  %5027 = vmatprep.subr.bf16.mxu1 %v6276_v7  ;;  %v3702_v57 = vld [vmem:[%s6675_s8] sm:$0xff]  ;;  %v3703_v7 = vld [vmem:[%s6675_s8 + $0x8] sm:$0xff] }
 0xe9e   :  { %4997 = vmatpush1.bf16.msra.mxu0 %v6278_v4  ;;  %5029 = vmatpush1.bf16.msra.mxu1 %v6281_v33  ;;  %v5031_v4 = vpack.c.bf16 %v3703_v7, %v3702_v57  ;;  %v5522_v33 = vmov 0.0|0.0  }
 0xe9f   :  { %5030 = vmatprep.subr.bf16.mxu0 %v5522_v33 }
 0xf54   :  { %v3424_v19 = vpop.f32.mrb[28].mxu0  ;;  %v3495_v32 = vpop.f32.mrb[28].mxu1 }
 0xf55   :  { %v5098_v42 = vadd.f32 %v3424_v19, %v6336_v50  ;;  %v3426_v60 = vpop.f32.mrb[29].mxu0  ;;  %v3497_v56 = vpop.f32.mrb[29].mxu1  ;;  %v5114_v48 = vadd.f32 %v3495_v32, %v6346_v12 }
 0xf56   :  { %v5099_v63 = vadd.f32 %v3426_v60, %v6340_v0  ;;  %v5115_v59 = vadd.f32 %v3497_v56, %v6350_v11 }
 0xf57   :  { %v3875_v30 = vmul.f32 -1.442695, %v5098_v42  ;;  %v3877_v9 = vmul.f32 -1.442695, %v5114_v48 }
 0xf58   :  { %v3876_v43 = vmul.f32 -1.442695, %v5099_v63 }
 0xf59   :  { %5414 = vpow2.f32 %v3875_v30 }
 0xf5a   :  { %5416 = vpow2.f32 %v3876_v43 }
 0xf5b   :  { %5418 = vtanh.f32 %v5115_v59 }
 0xf5c   :  { %5420 = vpow2.f32 %v3877_v9 }
 0xf63   :  { %v5415_v25 = vpop.eup %5414 }
 0xf64   :  { %v3513_v29 = vadd.f32 1.0, %v5415_v25  ;;  %v5417_v44 = vpop.eup %5416 }
 0xf65   :  { %v3514_v61 = vadd.f32 1.0, %v5417_v44  ;;  %v5419_v58 = vpop.eup %5418  ;;  %v3788_v44 = vld [vmem:[%s6674_s7] sm:$0xff] }
 0xf66   :  { %5422 = vrcp.f32 %v3513_v29  ;;  %v5421_v52 = vpop.eup %5420 }
 0xf67   :  { %5424 = vrcp.f32 %v3514_v61  ;;  %v3515_v8 = vadd.f32 1.0, %v5421_v52 }
 0xf69   :  { %5426 = vrcp.f32 %v3515_v8 }
 0xf70   :  { %v5423_v31 = vpop.eup %5422 }
 0xf71   :  { %v3524_v13 = vmul.f32 %v5423_v31, %v5419_v58  ;;  %v5425_v38 = vpop.eup %5424 }
 0xf72   :  { %v3523_v36 = vmul.f32 %v5425_v38, %v6564_v21 }
 0xf73   :  { %v5427_v3 = vpop.eup %5426 }
 0xf74   :  { %v6604_v39 = vadd.f32 %v3524_v13, %v3523_v36  ;;  %v3881_v13 = vld [vmem:[#allocation4] ss:$0 sm:$0xff] }
 0xf76   :  { %5428 = vtanh.f32 %v6604_v39 }
 0xf80   :  { %v5429_v20 = vpop.eup %5428 }
 0xf81   :  { %v3527_v34 = vmul.f32 %v5429_v20, %v5427_v3 }
 0xf83   :  { %3597 = vmatmul.mubr.f32.vlgmr.msra.gmra.mrb[30].mxu0 %v3527_v34  ;;  %3668 = vmatmul.mubr.f32.vlgmr.msra.gmra.mrb[30].mxu1 %v3527_v34 }
 0xf84   :  { %5032 = vmatpush3.bf16.msra.mxu0 %v5031_v4  ;;  %3931 = vmatprep.mubr.msk.f32.mxu0 %vm5523_vm1, %v5521_v1 }
 0xf85   :  { %5033 = vmatprep.subr.bf16.mxu0 %v5522_v33 }
 0xf88   :  { %5035 = vmatpush3.bf16.msra.mxu0 %v5034_v22 }
 0xf89   :  { %5036 = vmatprep.subr.bf16.mxu0 %v5522_v33 }
 0xf8c   :  { %5038 = vmatpush3.bf16.msra.mxu0 %v5037_v49 }
 0xf8d   :  { %5039 = vmatprep.subr.bf16.mxu0 %v5522_v33 }
 0xf90   :  { %5041 = vmatpush3.bf16.msra.mxu0 %v5040_v54 }
 0xf91   :  { %5042 = vmatprep.subr.bf16.mxu0 %v5522_v33 }
 0xf94   :  { %5044 = vmatpush3.bf16.msra.mxu0 %v5043_v35 }
 0xf95   :  { %5045 = vmatprep.subr.bf16.mxu0 %v5522_v33 }
 0xf98   :  { %5047 = vmatpush3.bf16.msra.mxu0 %v5046_v24 }
 0xf99   :  { %5048 = vmatprep.subr.bf16.mxu0 %v5522_v33 }
 0xf9c   :  { %5050 = vmatpush3.bf16.msra.mxu0 %v5049_v6 }
 0xf9d   :  { %5051 = vmatprep.subr.bf16.mxu0 %v5522_v33 }
 0xfa0   :  { %5053 = vmatpush3.bf16.msra.mxu0 %v5052_v40 }
0x1056   :  { %v3598_v15 = vpop.f32.mrb[30].mxu0  ;;  %v3669_v47 = vpop.f32.mrb[30].mxu1 }
0x1057   :  { %v5100_v53 = vadd.f32 %v3598_v15, %v6336_v50  ;;  %v3600_v1 = vpop.f32.mrb[31].mxu0  ;;  %v3671_v17 = vpop.f32.mrb[31].mxu1  ;;  %v5116_v45 = vadd.f32 %v3669_v47, %v6346_v12 }
0x1058   :  { %v5101_v21 = vadd.f32 %v3600_v1, %v6340_v0  ;;  %v5117_v19 = vadd.f32 %v3671_v17, %v6350_v11 }
0x1059   :  { %v3878_v2 = vmul.f32 -1.442695, %v5100_v53  ;;  %v3880_v32 = vmul.f32 -1.442695, %v5116_v45 }
0x105a   :  { %v3879_v28 = vmul.f32 -1.442695, %v5101_v21 }
0x105b   :  { %5430 = vpow2.f32 %v3878_v2 }
0x105c   :  { %5432 = vpow2.f32 %v3879_v28 }
0x105d   :  { %5434 = vtanh.f32 %v5117_v19 }
0x105e   :  { %5436 = vpow2.f32 %v3880_v32 }
0x1065   :  { %v5431_v42 = vpop.eup %5430 }
0x1066   :  { %v3687_v60 = vadd.f32 1.0, %v5431_v42  ;;  %v5433_v56 = vpop.eup %5432 }
0x1067   :  { %v3688_v50 = vadd.f32 1.0, %v5433_v56  ;;  %v5435_v63 = vpop.eup %5434 }
0x1068   :  { %5438 = vrcp.f32 %v3687_v60  ;;  %v5437_v30 = vpop.eup %5436 }
0x1069   :  { %5440 = vrcp.f32 %v3688_v50  ;;  %v3689_v59 = vadd.f32 1.0, %v5437_v30 }
0x106b   :  { %5442 = vrcp.f32 %v3689_v59 }
0x1072   :  { %v5439_v0 = vpop.eup %5438 }
0x1073   :  { %v3698_v43 = vmul.f32 %v5439_v0, %v5435_v63  ;;  %v5441_v48 = vpop.eup %5440 }
0x1074   :  { %v3697_v9 = vmul.f32 %v5441_v48, %v6604_v39 }
0x1075   :  { %v5443_v11 = vpop.eup %5442 }
0x1076   :  { %v3699_v12 = vadd.f32 %v3698_v43, %v3697_v9 }
0x1078   :  { %5444 = vtanh.f32 %v3699_v12 }
0x1082   :  { %v5445_v25 = vpop.eup %5444 }
0x1083   :  { %v3701_v29 = vmul.f32 %v5445_v25, %v5443_v11 }
0x1085   :  { %3932 = vmatmul.mubr.f32.vlgmr.msra.gmra.mrb[32].mxu0 %v3701_v29 }
0x1158   :  { %v3784_v61 = vpop.f32.mrb[32].mxu0 }
0x1159   :  { %v3789_v58 = vmul.f32 %v3788_v44, %v3784_v61  ;;  %v3933_v52 = vpop.f32.mrb[33].mxu0 }
0x115b   :  { %v3791_v31 = vsel %vm3790_vm2, %v3789_v58, 0.0 }
0x115c   :  { %3792 = vadd.xlane.f32.xlu0 %v3791_v31 }
0x11e9   :  { %v3793_v38 = vpop.xlane.xlu0 %3792 }
0x11ea   :  { %v3801_v8 = vadd.f32 %v3881_v13, %v3793_v38 }
0x11ec   :  { %3803 = vst.msk [vmem:[%s6677_s10] sm:$0xff] %vm3802_vm3, %v3801_v8 }
0x11ed   :  { %3808 = vsyncpa [#allocation6], 1 }
0x11ee   :  { %3809 = vsyncpa [#allocation8], 1 }

</bundles_post_ra>
